<compile_context>
chip_gen: v5e
topology: v5e:2x2
jax: 0.10.0
libtpu: 0.0.40
codegen_flags: <defaults>
</compile_context>

<pallas_src>
import numpy as np
import jax
import jax.numpy as jnp
from jax.experimental import pallas as pl
from jax.experimental.pallas import tpu as pltpu

INC = 16
VIEWNUM = 1
M = 17
N = 17
MN = M * N                 # 289
K = MN // 2                # 144 half-spectrum coefficients (DC excluded)
MNP = 384                  # MN padded to a multiple of 128 (lane-dense)
KW = 512                   # lane width of each Re/Im block of the G/TV matmul
YOFF = 256                 # lane offset of the TVy (diag) block inside KW
KS = 3                     # guided-filter radius rx
N_NI = 96                  # number of non-hierarchical spectrum nodes
N_HIER = K - N_NI
K_NB = 4                   # neighbours per node (rows of NI / w)

_CONST_ORDER = (
    'w0r', 'w0i', 'b01', 'pf2w', 'pf2b',
    'gtvw',
    'invr', 'invi', 'eig',
    'sw', 'sb',
    'm3rw', 'm3iw', 'm3rb', 'm3ib',
    'specr', 'speci', 'dcrow',
    'bkt',
)
_BF16_CONSTS = frozenset({'pf2w', 'sw', 'gtvw', 'm3rw', 'm3iw',
                          'specr', 'speci', 'bkt'})


# --------------------------------------------------------------------------
# the single fused kernel (runs once per batch element; constants resident)
# --------------------------------------------------------------------------
def _destripe_kernel(xfr_ref, xfi_ref, xd_ref, tgt_ref,
                     w0r_ref, w0i_ref, b01_ref, pf2w_ref, pf2b_ref,
                     gtvw_ref, invr_ref, invi_ref, eig_ref,
                     sw_ref, sb_ref,
                     m3rw_ref, m3iw_ref, m3rb_ref, m3ib_ref,
                     specr_ref, speci_ref, dcrow_ref, bkt_ref,
                     out_ref):
    f32, bf16 = jnp.float32, jnp.bfloat16

    def clin(x, w, b):
        # packed complex linear: (2o, 2i) @ (2i, L) + (2o, 1)
        return jnp.dot(w, x.astype(bf16), preferred_element_type=f32) + b

    xfr = xfr_ref[...]                                       # (1, K) real part
    xfi = xfi_ref[...]                                       # (1, K) imag part

    # ---- ResLearning p : viewnum -> inc.  In-channels = 1 complex, so the
    #      two Kc=2 "matmuls" (f[0] and the residual linear, stacked) are done
    #      as VPU broadcast FMAs instead of MXU issues.
    h = w0r_ref[...] * xfr + w0i_ref[...] * xfi + b01_ref[...]   # (64, K)
    a0 = jnp.maximum(h[:2 * INC], 0.0)                       # crelu(f[0](x))
    a = clin(a0, pf2w_ref[...], pf2b_ref[...])               # f[2]
    xp = jnp.maximum(a + h[2 * INC:], 0.0)                   # (32, K)

    # ---- graph mixing (NI/w + hier_mask/hier_ind) and the TVfftx / TVffty
    #      multiplies, folded into ONE wide matmul.  Output lanes: x at
    #      [0:K], y at [YOFF:YOFF+K] of each KW-wide Re/Im half.
    t = jnp.dot(xp.astype(bf16), gtvw_ref[...], preferred_element_type=f32)
    tr, ti = t[:, :KW], t[:, KW:]                            # (32, KW) each
    xy = jnp.concatenate([tr[:INC] - ti[INC:], ti[:INC] + tr[INC:]], axis=0)

    # ---- edgeProcess applied once to [x | y], * conj(TV), complexReLU -------
    e = jnp.maximum(clin(xy, sw_ref[0], sb_ref[0]), 0.0)     # edge1 + crelu
    e = clin(e, sw_ref[1], sb_ref[1])                        # edge2
    er, ei = e[:INC], e[INC:]
    invr, invi = invr_ref[...], invi_ref[...]                # conj(TV) rows
    p = jnp.maximum(
        jnp.concatenate([er * invr - ei * invi, er * invi + ei * invr], axis=0),
        0.0)                                                 # (32, KW)
    ssum = p[:, :K] + p[:, YOFF:YOFF + K]                    # (32, K)

    # ---- latentProcess, * eigDtD, complexReLU -------------------------------
    l = jnp.maximum(clin(ssum, sw_ref[2], sb_ref[2]), 0.0)
    l = clin(l, sw_ref[3], sb_ref[3])
    l = jnp.maximum(l * eig_ref[...], 0.0)

    # ---- merge: inc -> inc -> inc -> viewnum --------------------------------
    mm = jnp.maximum(clin(l, sw_ref[4], sb_ref[4]), 0.0)
    mm = jnp.maximum(clin(mm, sw_ref[5], sb_ref[5]), 0.0)
    mmb = mm.astype(bf16)
    zr = (jnp.dot(m3rw_ref[...], mmb, preferred_element_type=f32)
          + m3rb_ref[...]).astype(bf16)                      # (1, K)
    zi = (jnp.dot(m3iw_ref[...], mmb, preferred_element_type=f32)
          + m3ib_ref[...]).astype(bf16)                      # (1, K)

    # ---- |ifft2(ifftshift(full spectrum))| : conjugate-symmetric assembly,
    #      ifftshift, 2-D iDFT and base(ones)*DC all folded into two
    #      (144, 768) matrices producing [Re | Im] lane-dense.
    aver = jnp.sum(xd_ref[...], axis=1, keepdims=True)       # (1, 1)
    o = (jnp.dot(zr, specr_ref[...], preferred_element_type=f32)
         + jnp.dot(zi, speci_ref[...], preferred_element_type=f32)
         + aver * dcrow_ref[...])                            # (1, 2*MNP)
    o_r, o_i = o[:, :MNP], o[:, MNP:]
    gnn = jnp.sqrt(o_r * o_r + o_i * o_i)                    # (1, MNP)

    # ---- GuidedFilter (Angle=[0]): target + box_norm(gnn - target) ----------
    tgt = tgt_ref[...]                                       # (1, MNP), 0-padded
    lr = tgt + jnp.dot((gnn - tgt).astype(bf16), bkt_ref[...],
                       preferred_element_type=f32)

    out_ref[...] = jnp.concatenate([gnn, lr], axis=0)        # (2, MNP)


# --------------------------------------------------------------------------
# host-side construction of parameters and folded constant matrices
# --------------------------------------------------------------------------
def build_model(seed=0):
    rng = np.random.default_rng(seed)
    Mdl = {}

    def cx_weight(out_dim, in_dim):
        sigma = 1.0 / np.sqrt(out_dim + in_dim)
        mag = rng.rayleigh(scale=sigma, size=(out_dim, in_dim))
        ph = rng.uniform(-np.pi, np.pi, size=(out_dim, in_dim))
        return (mag * np.exp(1j * ph)).astype(np.complex64)

    def cx_bias(n):
        re = rng.uniform(-0.001, 0.001, size=(n,))
        im = rng.uniform(-0.001, 0.001, size=(n,))
        return (re + 1j * im).astype(np.complex64)

    def pack_w(Wc):
        Wr = Wc.real.astype(np.float32)
        Wi = Wc.imag.astype(np.float32)
        return np.block([[Wr, -Wi], [Wi, Wr]]).astype(np.float32)

    def pack_b(bc):
        return np.concatenate([bc.real, bc.imag]).astype(np.float32)[:, None]

    # --- ResLearning p (in = 1 complex channel) ------------------------------
    Wf0, bf0 = cx_weight(INC, VIEWNUM), cx_bias(INC)
    Wf2, bf2 = cx_weight(INC, INC), cx_bias(INC)
    Wln, bln = cx_weight(INC, VIEWNUM), cx_bias(INC)
    w01 = np.concatenate([pack_w(Wf0), pack_w(Wln)], axis=0)     # (64, 2)
    Mdl['w0r'] = np.ascontiguousarray(w01[:, 0:1])
    Mdl['w0i'] = np.ascontiguousarray(w01[:, 1:2])
    Mdl['b01'] = np.concatenate([pack_b(bf0), pack_b(bln)], axis=0)
    Mdl['pf2w'], Mdl['pf2b'] = pack_w(Wf2), pack_b(bf2)

    # --- edge1, edge2, latent1, latent2, merge1, merge2 (inc->inc) -----------
    sw_l, sb_l = [], []
    for _ in range(6):
        Wc, bc = cx_weight(INC, INC), cx_bias(INC)
        sw_l.append(pack_w(Wc))
        sb_l.append(pack_b(bc))
    Mdl['sw'] = np.stack(sw_l, 0)                     # (6, 32, 32)
    Mdl['sb'] = np.stack(sb_l, 0)                     # (6, 32, 1)

    # --- merge3 (inc -> viewnum) ---------------------------------------------
    W3, b3 = cx_weight(VIEWNUM, INC), cx_bias(VIEWNUM)
    Mdl['m3rw'] = np.concatenate([W3.real, -W3.imag], 1).astype(np.float32)
    Mdl['m3iw'] = np.concatenate([W3.imag, W3.real], 1).astype(np.float32)
    Mdl['m3rb'] = np.array([[b3.real[0]]], np.float32)
    Mdl['m3ib'] = np.array([[b3.imag[0]]], np.float32)

    # --- neighbour mixing weights w (shape of NI) ----------------------------
    wmix = cx_weight(K_NB, N_NI)

    # --- base MLP on constant ones(1,1): constant-folded ---------------------
    h = np.ones((1, 1), np.float32)
    for li, (o, i) in enumerate([(INC, 1), (INC, INC), (VIEWNUM, INC)]):
        lim = 1.0 / np.sqrt(i)
        Wb = rng.uniform(-lim, lim, size=(o, i)).astype(np.float32)
        bb = rng.uniform(-lim, lim, size=(o,)).astype(np.float32)
        h = h @ Wb.T + bb[None, :]
        if li < 2:
            h = np.maximum(h, 0.0)
    base_const = float(h[0, 0])

    # --- graph indices + complex mixing matrix G -----------------------------
    # TODO(synk): NI / hier_mask / hier_ind are synthetic placeholders for the
    # graph produced upstream in the real pipeline; rebuild G from the real
    # indices at deployment.
    g = np.random.default_rng(1234)
    NI = g.integers(0, K, size=(K_NB, N_NI))
    hier_mask = g.integers(0, K, size=(N_HIER,))
    hier_ind = g.permutation(K)
    preG = np.zeros((K, K), np.complex64)
    for kk in range(K_NB):
        np.add.at(preG, (np.arange(N_NI), NI[kk]), wmix[kk])
    preG[N_NI + np.arange(N_HIER), hier_mask] = 1.0
    G = preG[hier_ind, :]                             # (K, K) complex

    # --- TV filters / eigDtD in the half spectrum ----------------------------
    def half_spec(ker):
        return (np.fft.fftshift(np.fft.fft2(ker, s=(M, N)))
                .reshape(-1)[:K].astype(np.complex64))

    tvx = half_spec(np.array([[1.0, -1.0]], np.float32))
    tvy = half_spec(np.array([[1.0], [-1.0]], np.float32))
    Mdl['eig'] = (1.0 / (np.abs(tvx) ** 2 + np.abs(tvy) ** 2)
                  ).astype(np.float32)[None, :]

    # --- graph mixing + TVfftx + diag(TVffty) folded into one (K, 2*KW) ------
    Hblk = np.zeros((K, KW), np.complex64)
    Hblk[:, :K] = G.T * tvx[None, :]                  # x branch (cat * tvx)
    Hblk[np.arange(K), YOFF + np.arange(K)] = tvy     # y branch (xp * tvy)
    Mdl['gtvw'] = np.concatenate([Hblk.real, Hblk.imag], 1).astype(np.float32)

    # --- inverse-TV rows (conjugates) on the same lane layout ----------------
    invr = np.zeros((1, KW), np.float32)
    invi = np.zeros((1, KW), np.float32)
    invr[0, :K], invi[0, :K] = tvx.real, -tvx.imag
    invr[0, YOFF:YOFF + K], invi[0, YOFF:YOFF + K] = tvy.real, -tvy.imag
    Mdl['invr'], Mdl['invi'] = invr, invi

    # --- fold assembly + ifftshift + ifft2 into real matrices ----------------
    idx = np.arange(M)
    Fm = (np.exp(2j * np.pi * np.outer(idx, idx) / M) / M).astype(np.complex64)
    Fn = (np.exp(2j * np.pi * np.outer(idx, idx) / N) / N).astype(np.complex64)
    perm = np.fft.ifftshift(np.arange(M))
    inv = np.argsort(perm)
    Fm2, Fn2 = Fm[:, inv], Fn[inv, :]                 # ifftshift folded
    oo = np.arange(MN)
    kk = np.arange(MN)
    Cfull = (Fm2[oo[:, None] // N, kk[None, :] // N]
             * Fn2[kk[None, :] % N, oo[:, None] % N])
    Cr, Ci = Cfull.real.astype(np.float64), Cfull.imag.astype(np.float64)

    P1 = np.zeros((MN, K)); P2 = np.zeros((MN, K))
    P1[np.arange(K), np.arange(K)] = 1.0
    P2[np.arange(K), np.arange(K)] = 1.0
    mir = np.arange(K + 1, MN)
    P1[mir, MN - 1 - mir] = 1.0                       # conj(flip(z)) real part
    P2[mir, MN - 1 - mir] = -1.0                      # conj(flip(z)) imag part

    ArT, AiT = (Cr @ P1).T, (Ci @ P1).T
    BrT, BiT = (-(Ci @ P2)).T, (Cr @ P2).T

    def padlane(a, width):
        out = np.zeros((a.shape[0], width), np.float64)
        out[:, :a.shape[1]] = a
        return out

    Mdl['specr'] = np.concatenate([padlane(ArT, MNP), padlane(AiT, MNP)],
                                  1).astype(np.float32)       # (K, 2*MNP)
    Mdl['speci'] = np.concatenate([padlane(BrT, MNP), padlane(BiT, MNP)],
                                  1).astype(np.float32)
    dcrow = np.zeros((1, 2 * MNP), np.float32)
    dcrow[0, :MN] = base_const * Cr[:, K]
    dcrow[0, MNP:MNP + MN] = base_const * Ci[:, K]
    Mdl['dcrow'] = dcrow

    # --- GuidedFilter (Angle=[0], ry=0): normalized vertical box -------------
    ii = np.arange(M)
    Bbox = (np.abs(ii[:, None] - ii[None, :]) <= KS).astype(np.float32)
    Bnorm = Bbox / Bbox.sum(axis=1, keepdims=True)
    bkt = np.zeros((MNP, MNP), np.float32)
    bkt[:MN, :MN] = np.kron(Bnorm, np.eye(N, dtype=np.float32)).T
    Mdl['bkt'] = bkt

    return {name: jnp.asarray(val,
                              dtype=jnp.bfloat16 if name in _BF16_CONSTS
                              else jnp.float32)
            for name, val in Mdl.items()}


# --------------------------------------------------------------------------
# forward wrapper: one batched pallas_call, constants resident across steps
# --------------------------------------------------------------------------
def _const_spec(arr):
    nd = arr.ndim
    return pl.BlockSpec(arr.shape, lambda b, _nd=nd: (0,) * _nd)


def make_destripe_forward(model):
    consts = [model[name] for name in _CONST_ORDER]
    const_specs = [_const_spec(c) for c in consts]

    @jax.jit
    def forward(Xd, Xf_re, Xf_im, target, boundary):
        del boundary                                 # identical_func (viewnum=1)
        B = Xd.shape[0]
        xfr = jnp.transpose(Xf_re, (0, 2, 1))        # (B, 1, K)
        xfi = jnp.transpose(Xf_im, (0, 2, 1))        # (B, 1, K)
        xd = Xd.reshape(B, 1, MN)                    # (B, 1, MN)
        tgt = jnp.pad(target.reshape(B, 1, MN),
                      ((0, 0), (0, 0), (0, MNP - MN)))   # (B, 1, MNP) lane-dense

        in_specs = ([pl.BlockSpec((None, 1, K), lambda b: (b, 0, 0)),
                     pl.BlockSpec((None, 1, K), lambda b: (b, 0, 0)),
                     pl.BlockSpec((None, 1, MN), lambda b: (b, 0, 0)),
                     pl.BlockSpec((None, 1, MNP), lambda b: (b, 0, 0))]
                    + const_specs)
        out_spec = pl.BlockSpec((None, 2, MNP), lambda b: (b, 0, 0))

        out = pl.pallas_call(
            _destripe_kernel,
            out_shape=jax.ShapeDtypeStruct((B, 2, MNP), jnp.float32),
            grid=(B,),
            in_specs=in_specs,
            out_specs=out_spec,
            compiler_params=pltpu.CompilerParams(
                dimension_semantics=("parallel",)),
        )(xfr, xfi, xd, tgt, *consts)

        gnn = out[:, 0, :MN].reshape(B, VIEWNUM, M, N)
        lr = out[:, 1, :MN].reshape(B, VIEWNUM, M, N)
        return gnn, gnn, lr            # outputGNNraw, outputGNN, outputLR

    return forward


if __name__ == "__main__":
    model = build_model()
    forward = make_destripe_forward(model)

    B = 8
    key = jax.random.PRNGKey(0)
    k1, k2, k3, k4 = jax.random.split(key, 4)
    Xd = jax.random.uniform(k1, (B, VIEWNUM, M, N), jnp.float32)
    Xf_re = jax.random.normal(k2, (B, K, VIEWNUM), jnp.float32)
    Xf_im = jax.random.normal(k3, (B, K, VIEWNUM), jnp.float32)
    target = jax.random.uniform(k4, (B, VIEWNUM, M, N), jnp.float32)
    boundary = jnp.zeros((B, 1, 1, N), jnp.float32)   # unused when viewnum == 1

    outs = forward(Xd, Xf_re, Xf_im, target, boundary)
    outs = jax.block_until_ready(outs)
    assert outs[0].shape == (B, VIEWNUM, M, N)
    assert outs[1].shape == (B, VIEWNUM, M, N)
    assert outs[2].shape == (B, VIEWNUM, M, N)
    assert all(bool(jnp.all(jnp.isfinite(o))) for o in outs)
    print("KERNEL_OK")
</pallas_src>

<mosaic_0001>
module attributes {stable_mosaic.version = 11 : i64} {
  func.func @_destripe_kernel(%arg0: i32, %arg1: memref<1x1x144xf32, #tpu.memory_space<vmem>>, %arg2: memref<1x1x144xf32, #tpu.memory_space<vmem>>, %arg3: memref<1x1x289xf32, #tpu.memory_space<vmem>>, %arg4: memref<1x1x384xf32, #tpu.memory_space<vmem>>, %arg5: memref<64x1xf32, #tpu.memory_space<vmem>>, %arg6: memref<64x1xf32, #tpu.memory_space<vmem>>, %arg7: memref<64x1xf32, #tpu.memory_space<vmem>>, %arg8: memref<32x32xbf16, #tpu.memory_space<vmem>>, %arg9: memref<32x1xf32, #tpu.memory_space<vmem>>, %arg10: memref<144x1024xbf16, #tpu.memory_space<vmem>>, %arg11: memref<1x512xf32, #tpu.memory_space<vmem>>, %arg12: memref<1x512xf32, #tpu.memory_space<vmem>>, %arg13: memref<1x144xf32, #tpu.memory_space<vmem>>, %arg14: memref<6x32x32xbf16, #tpu.memory_space<vmem>>, %arg15: memref<6x32x1xf32, #tpu.memory_space<vmem>>, %arg16: memref<1x32xbf16, #tpu.memory_space<vmem>>, %arg17: memref<1x32xbf16, #tpu.memory_space<vmem>>, %arg18: memref<1x1xf32, #tpu.memory_space<vmem>>, %arg19: memref<1x1xf32, #tpu.memory_space<vmem>>, %arg20: memref<144x768xbf16, #tpu.memory_space<vmem>>, %arg21: memref<144x768xbf16, #tpu.memory_space<vmem>>, %arg22: memref<1x768xf32, #tpu.memory_space<vmem>>, %arg23: memref<384x384xbf16, #tpu.memory_space<vmem>>, %arg24: memref<1x2x384xf32, #tpu.memory_space<vmem>>) attributes {dimension_semantics = [#tpu.dimension_semantics<parallel>], iteration_bounds = array<i64: 8>, scalar_prefetch = 0 : i64, scratch_operands = 0 : i64, tpu.core_type = #tpu.core_type<tc>, window_params = [{transform_indices = @transform_0, window_bounds = array<i64: 1, 1, 144>}, {transform_indices = @transform_1, window_bounds = array<i64: 1, 1, 144>}, {transform_indices = @transform_2, window_bounds = array<i64: 1, 1, 289>}, {transform_indices = @transform_3, window_bounds = array<i64: 1, 1, 384>}, {pipeline_mode = #tpu.pipeline_mode<synchronous>, transform_indices = @transform_4, window_bounds = array<i64: 64, 1>}, {pipeline_mode = #tpu.pipeline_mode<synchronous>, transform_indices = @transform_5, window_bounds = array<i64: 64, 1>}, {pipeline_mode = #tpu.pipeline_mode<synchronous>, transform_indices = @transform_6, window_bounds = array<i64: 64, 1>}, {pipeline_mode = #tpu.pipeline_mode<synchronous>, transform_indices = @transform_7, window_bounds = array<i64: 32, 32>}, {pipeline_mode = #tpu.pipeline_mode<synchronous>, transform_indices = @transform_8, window_bounds = array<i64: 32, 1>}, {pipeline_mode = #tpu.pipeline_mode<synchronous>, transform_indices = @transform_9, window_bounds = array<i64: 144, 1024>}, {pipeline_mode = #tpu.pipeline_mode<synchronous>, transform_indices = @transform_10, window_bounds = array<i64: 1, 512>}, {pipeline_mode = #tpu.pipeline_mode<synchronous>, transform_indices = @transform_11, window_bounds = array<i64: 1, 512>}, {pipeline_mode = #tpu.pipeline_mode<synchronous>, transform_indices = @transform_12, window_bounds = array<i64: 1, 144>}, {pipeline_mode = #tpu.pipeline_mode<synchronous>, transform_indices = @transform_13, window_bounds = array<i64: 6, 32, 32>}, {pipeline_mode = #tpu.pipeline_mode<synchronous>, transform_indices = @transform_14, window_bounds = array<i64: 6, 32, 1>}, {pipeline_mode = #tpu.pipeline_mode<synchronous>, transform_indices = @transform_15, window_bounds = array<i64: 1, 32>}, {pipeline_mode = #tpu.pipeline_mode<synchronous>, transform_indices = @transform_16, window_bounds = array<i64: 1, 32>}, {pipeline_mode = #tpu.pipeline_mode<synchronous>, transform_indices = @transform_17, window_bounds = array<i64: 1, 1>}, {pipeline_mode = #tpu.pipeline_mode<synchronous>, transform_indices = @transform_18, window_bounds = array<i64: 1, 1>}, {pipeline_mode = #tpu.pipeline_mode<synchronous>, transform_indices = @transform_19, window_bounds = array<i64: 144, 768>}, {pipeline_mode = #tpu.pipeline_mode<synchronous>, transform_indices = @transform_20, window_bounds = array<i64: 144, 768>}, {pipeline_mode = #tpu.pipeline_mode<synchronous>, transform_indices = @transform_21, window_bounds = array<i64: 1, 768>}, {pipeline_mode = #tpu.pipeline_mode<synchronous>, transform_indices = @transform_22, window_bounds = array<i64: 384, 384>}, {transform_indices = @transform_23, window_bounds = array<i64: 1, 2, 384>}]} {
    %c0 = arith.constant 0 : index
    %c0_0 = arith.constant 0 : index
    %c0_1 = arith.constant 0 : index
    %0 = vector.load %arg1[%c0, %c0_0, %c0_1] : memref<1x1x144xf32, #tpu.memory_space<vmem>>, vector<1x1x144xf32>
    %1 = vector.shape_cast %0 : vector<1x1x144xf32> to vector<1x144xf32>
    %c0_2 = arith.constant 0 : index
    %c0_3 = arith.constant 0 : index
    %c0_4 = arith.constant 0 : index
    %2 = vector.load %arg2[%c0_2, %c0_3, %c0_4] : memref<1x1x144xf32, #tpu.memory_space<vmem>>, vector<1x1x144xf32>
    %3 = vector.shape_cast %2 : vector<1x1x144xf32> to vector<1x144xf32>
    %c0_5 = arith.constant 0 : index
    %c0_6 = arith.constant 0 : index
    %4 = vector.load %arg5[%c0_5, %c0_6] : memref<64x1xf32, #tpu.memory_space<vmem>>, vector<64x1xf32>
    %5 = vector.broadcast %4 : vector<64x1xf32> to vector<64x144xf32>
    %6 = vector.broadcast %1 : vector<1x144xf32> to vector<64x144xf32>
    %7 = arith.mulf %5, %6 : vector<64x144xf32>
    %c0_7 = arith.constant 0 : index
    %c0_8 = arith.constant 0 : index
    %8 = vector.load %arg6[%c0_7, %c0_8] : memref<64x1xf32, #tpu.memory_space<vmem>>, vector<64x1xf32>
    %9 = vector.broadcast %8 : vector<64x1xf32> to vector<64x144xf32>
    %10 = vector.broadcast %3 : vector<1x144xf32> to vector<64x144xf32>
    %11 = arith.mulf %9, %10 : vector<64x144xf32>
    %12 = arith.addf %7, %11 : vector<64x144xf32>
    %c0_9 = arith.constant 0 : index
    %c0_10 = arith.constant 0 : index
    %13 = vector.load %arg7[%c0_9, %c0_10] : memref<64x1xf32, #tpu.memory_space<vmem>>, vector<64x1xf32>
    %14 = vector.broadcast %13 : vector<64x1xf32> to vector<64x144xf32>
    %15 = arith.addf %12, %14 : vector<64x144xf32>
    %16 = vector.extract_strided_slice %15 {offsets = [0, 0], sizes = [32, 144], strides = [1, 1]} : vector<64x144xf32> to vector<32x144xf32>
    %cst = arith.constant 0.000000e+00 : f32
    %17 = vector.broadcast %cst : f32 to vector<32x144xf32>
    %18 = arith.maximumf %16, %17 : vector<32x144xf32>
    %c0_11 = arith.constant 0 : index
    %c0_12 = arith.constant 0 : index
    %19 = vector.load %arg8[%c0_11, %c0_12] : memref<32x32xbf16, #tpu.memory_space<vmem>>, vector<32x32xbf16>
    %c0_13 = arith.constant 0 : index
    %c0_14 = arith.constant 0 : index
    %20 = vector.load %arg9[%c0_13, %c0_14] : memref<32x1xf32, #tpu.memory_space<vmem>>, vector<32x1xf32>
    %21 = arith.truncf %18 : vector<32x144xf32> to vector<32x144xbf16>
    %cst_15 = arith.constant dense<0.000000e+00> : vector<32x144xf32>
    %22 = tpu.matmul %19, %21, %cst_15 {dimension_numbers = #tpu.dot_dimension_numbers<[1], [0], [0], [1], [0, 0, 1, 1], [], []>} : vector<32x32xbf16>, vector<32x144xbf16>, vector<32x144xf32> -> vector<32x144xf32>
    %23 = vector.broadcast %20 : vector<32x1xf32> to vector<32x144xf32>
    %24 = arith.addf %22, %23 : vector<32x144xf32>
    %25 = vector.extract_strided_slice %15 {offsets = [32, 0], sizes = [32, 144], strides = [1, 1]} : vector<64x144xf32> to vector<32x144xf32>
    %26 = arith.addf %24, %25 : vector<32x144xf32>
    %cst_16 = arith.constant 0.000000e+00 : f32
    %27 = vector.broadcast %cst_16 : f32 to vector<32x144xf32>
    %28 = arith.maximumf %26, %27 : vector<32x144xf32>
    %29 = arith.truncf %28 : vector<32x144xf32> to vector<32x144xbf16>
    %c0_17 = arith.constant 0 : index
    %c0_18 = arith.constant 0 : index
    %30 = vector.load %arg10[%c0_17, %c0_18] : memref<144x1024xbf16, #tpu.memory_space<vmem>>, vector<144x1024xbf16>
    %cst_19 = arith.constant dense<0.000000e+00> : vector<32x1024xf32>
    %31 = tpu.matmul %29, %30, %cst_19 {dimension_numbers = #tpu.dot_dimension_numbers<[1], [0], [0], [1], [0, 0, 1, 1], [], []>} : vector<32x144xbf16>, vector<144x1024xbf16>, vector<32x1024xf32> -> vector<32x1024xf32>
    %32 = vector.extract_strided_slice %31 {offsets = [0, 0], sizes = [32, 512], strides = [1, 1]} : vector<32x1024xf32> to vector<32x512xf32>
    %33 = vector.extract_strided_slice %31 {offsets = [0, 512], sizes = [32, 512], strides = [1, 1]} : vector<32x1024xf32> to vector<32x512xf32>
    %34 = vector.extract_strided_slice %32 {offsets = [0, 0], sizes = [16, 512], strides = [1, 1]} : vector<32x512xf32> to vector<16x512xf32>
    %35 = vector.extract_strided_slice %33 {offsets = [16, 0], sizes = [16, 512], strides = [1, 1]} : vector<32x512xf32> to vector<16x512xf32>
    %36 = arith.subf %34, %35 : vector<16x512xf32>
    %37 = vector.extract_strided_slice %33 {offsets = [0, 0], sizes = [16, 512], strides = [1, 1]} : vector<32x512xf32> to vector<16x512xf32>
    %38 = vector.extract_strided_slice %32 {offsets = [16, 0], sizes = [16, 512], strides = [1, 1]} : vector<32x512xf32> to vector<16x512xf32>
    %39 = arith.addf %37, %38 : vector<16x512xf32>
    %40 = tpu.concatenate %36, %39 in 0 : vector<16x512xf32>, vector<16x512xf32> -> vector<32x512xf32>
    %c0_20 = arith.constant 0 : index
    %c0_21 = arith.constant 0 : index
    %c0_22 = arith.constant 0 : index
    %41 = vector.load %arg14[%c0_20, %c0_21, %c0_22] : memref<6x32x32xbf16, #tpu.memory_space<vmem>>, vector<1x32x32xbf16>
    %42 = vector.shape_cast %41 : vector<1x32x32xbf16> to vector<32x32xbf16>
    %c0_23 = arith.constant 0 : index
    %c0_24 = arith.constant 0 : index
    %c0_25 = arith.constant 0 : index
    %43 = vector.load %arg15[%c0_23, %c0_24, %c0_25] : memref<6x32x1xf32, #tpu.memory_space<vmem>>, vector<1x32x1xf32>
    %44 = vector.shape_cast %43 : vector<1x32x1xf32> to vector<32x1xf32>
    %45 = arith.truncf %40 : vector<32x512xf32> to vector<32x512xbf16>
    %cst_26 = arith.constant dense<0.000000e+00> : vector<32x512xf32>
    %46 = tpu.matmul %42, %45, %cst_26 {dimension_numbers = #tpu.dot_dimension_numbers<[1], [0], [0], [1], [0, 0, 1, 1], [], []>} : vector<32x32xbf16>, vector<32x512xbf16>, vector<32x512xf32> -> vector<32x512xf32>
    %47 = vector.broadcast %44 : vector<32x1xf32> to vector<32x512xf32>
    %48 = arith.addf %46, %47 : vector<32x512xf32>
    %cst_27 = arith.constant 0.000000e+00 : f32
    %49 = vector.broadcast %cst_27 : f32 to vector<32x512xf32>
    %50 = arith.maximumf %48, %49 : vector<32x512xf32>
    %c1 = arith.constant 1 : index
    %c0_28 = arith.constant 0 : index
    %c0_29 = arith.constant 0 : index
    %51 = vector.load %arg14[%c1, %c0_28, %c0_29] : memref<6x32x32xbf16, #tpu.memory_space<vmem>>, vector<1x32x32xbf16>
    %52 = vector.shape_cast %51 : vector<1x32x32xbf16> to vector<32x32xbf16>
    %c1_30 = arith.constant 1 : index
    %c0_31 = arith.constant 0 : index
    %c0_32 = arith.constant 0 : index
    %53 = vector.load %arg15[%c1_30, %c0_31, %c0_32] : memref<6x32x1xf32, #tpu.memory_space<vmem>>, vector<1x32x1xf32>
    %54 = vector.shape_cast %53 : vector<1x32x1xf32> to vector<32x1xf32>
    %55 = arith.truncf %50 : vector<32x512xf32> to vector<32x512xbf16>
    %cst_33 = arith.constant dense<0.000000e+00> : vector<32x512xf32>
    %56 = tpu.matmul %52, %55, %cst_33 {dimension_numbers = #tpu.dot_dimension_numbers<[1], [0], [0], [1], [0, 0, 1, 1], [], []>} : vector<32x32xbf16>, vector<32x512xbf16>, vector<32x512xf32> -> vector<32x512xf32>
    %57 = vector.broadcast %54 : vector<32x1xf32> to vector<32x512xf32>
    %58 = arith.addf %56, %57 : vector<32x512xf32>
    %59 = vector.extract_strided_slice %58 {offsets = [0, 0], sizes = [16, 512], strides = [1, 1]} : vector<32x512xf32> to vector<16x512xf32>
    %60 = vector.extract_strided_slice %58 {offsets = [16, 0], sizes = [16, 512], strides = [1, 1]} : vector<32x512xf32> to vector<16x512xf32>
    %c0_34 = arith.constant 0 : index
    %c0_35 = arith.constant 0 : index
    %61 = vector.load %arg11[%c0_34, %c0_35] : memref<1x512xf32, #tpu.memory_space<vmem>>, vector<1x512xf32>
    %c0_36 = arith.constant 0 : index
    %c0_37 = arith.constant 0 : index
    %62 = vector.load %arg12[%c0_36, %c0_37] : memref<1x512xf32, #tpu.memory_space<vmem>>, vector<1x512xf32>
    %63 = vector.broadcast %61 : vector<1x512xf32> to vector<16x512xf32>
    %64 = arith.mulf %59, %63 : vector<16x512xf32>
    %65 = vector.broadcast %62 : vector<1x512xf32> to vector<16x512xf32>
    %66 = arith.mulf %60, %65 : vector<16x512xf32>
    %67 = arith.subf %64, %66 : vector<16x512xf32>
    %68 = vector.broadcast %62 : vector<1x512xf32> to vector<16x512xf32>
    %69 = arith.mulf %59, %68 : vector<16x512xf32>
    %70 = vector.broadcast %61 : vector<1x512xf32> to vector<16x512xf32>
    %71 = arith.mulf %60, %70 : vector<16x512xf32>
    %72 = arith.addf %69, %71 : vector<16x512xf32>
    %73 = tpu.concatenate %67, %72 in 0 : vector<16x512xf32>, vector<16x512xf32> -> vector<32x512xf32>
    %cst_38 = arith.constant 0.000000e+00 : f32
    %74 = vector.broadcast %cst_38 : f32 to vector<32x512xf32>
    %75 = arith.maximumf %73, %74 : vector<32x512xf32>
    %76 = vector.extract_strided_slice %75 {offsets = [0, 0], sizes = [32, 144], strides = [1, 1]} : vector<32x512xf32> to vector<32x144xf32>
    %77 = vector.extract_strided_slice %75 {offsets = [0, 256], sizes = [32, 144], strides = [1, 1]} : vector<32x512xf32> to vector<32x144xf32>
    %78 = arith.addf %76, %77 : vector<32x144xf32>
    %c2 = arith.constant 2 : index
    %c0_39 = arith.constant 0 : index
    %c0_40 = arith.constant 0 : index
    %79 = vector.load %arg14[%c2, %c0_39, %c0_40] : memref<6x32x32xbf16, #tpu.memory_space<vmem>>, vector<1x32x32xbf16>
    %80 = vector.shape_cast %79 : vector<1x32x32xbf16> to vector<32x32xbf16>
    %c2_41 = arith.constant 2 : index
    %c0_42 = arith.constant 0 : index
    %c0_43 = arith.constant 0 : index
    %81 = vector.load %arg15[%c2_41, %c0_42, %c0_43] : memref<6x32x1xf32, #tpu.memory_space<vmem>>, vector<1x32x1xf32>
    %82 = vector.shape_cast %81 : vector<1x32x1xf32> to vector<32x1xf32>
    %83 = arith.truncf %78 : vector<32x144xf32> to vector<32x144xbf16>
    %cst_44 = arith.constant dense<0.000000e+00> : vector<32x144xf32>
    %84 = tpu.matmul %80, %83, %cst_44 {dimension_numbers = #tpu.dot_dimension_numbers<[1], [0], [0], [1], [0, 0, 1, 1], [], []>} : vector<32x32xbf16>, vector<32x144xbf16>, vector<32x144xf32> -> vector<32x144xf32>
    %85 = vector.broadcast %82 : vector<32x1xf32> to vector<32x144xf32>
    %86 = arith.addf %84, %85 : vector<32x144xf32>
    %cst_45 = arith.constant 0.000000e+00 : f32
    %87 = vector.broadcast %cst_45 : f32 to vector<32x144xf32>
    %88 = arith.maximumf %86, %87 : vector<32x144xf32>
    %c3 = arith.constant 3 : index
    %c0_46 = arith.constant 0 : index
    %c0_47 = arith.constant 0 : index
    %89 = vector.load %arg14[%c3, %c0_46, %c0_47] : memref<6x32x32xbf16, #tpu.memory_space<vmem>>, vector<1x32x32xbf16>
    %90 = vector.shape_cast %89 : vector<1x32x32xbf16> to vector<32x32xbf16>
    %c3_48 = arith.constant 3 : index
    %c0_49 = arith.constant 0 : index
    %c0_50 = arith.constant 0 : index
    %91 = vector.load %arg15[%c3_48, %c0_49, %c0_50] : memref<6x32x1xf32, #tpu.memory_space<vmem>>, vector<1x32x1xf32>
    %92 = vector.shape_cast %91 : vector<1x32x1xf32> to vector<32x1xf32>
    %93 = arith.truncf %88 : vector<32x144xf32> to vector<32x144xbf16>
    %cst_51 = arith.constant dense<0.000000e+00> : vector<32x144xf32>
    %94 = tpu.matmul %90, %93, %cst_51 {dimension_numbers = #tpu.dot_dimension_numbers<[1], [0], [0], [1], [0, 0, 1, 1], [], []>} : vector<32x32xbf16>, vector<32x144xbf16>, vector<32x144xf32> -> vector<32x144xf32>
    %95 = vector.broadcast %92 : vector<32x1xf32> to vector<32x144xf32>
    %96 = arith.addf %94, %95 : vector<32x144xf32>
    %c0_52 = arith.constant 0 : index
    %c0_53 = arith.constant 0 : index
    %97 = vector.load %arg13[%c0_52, %c0_53] : memref<1x144xf32, #tpu.memory_space<vmem>>, vector<1x144xf32>
    %98 = vector.broadcast %97 : vector<1x144xf32> to vector<32x144xf32>
    %99 = arith.mulf %96, %98 : vector<32x144xf32>
    %cst_54 = arith.constant 0.000000e+00 : f32
    %100 = vector.broadcast %cst_54 : f32 to vector<32x144xf32>
    %101 = arith.maximumf %99, %100 : vector<32x144xf32>
    %c4 = arith.constant 4 : index
    %c0_55 = arith.constant 0 : index
    %c0_56 = arith.constant 0 : index
    %102 = vector.load %arg14[%c4, %c0_55, %c0_56] : memref<6x32x32xbf16, #tpu.memory_space<vmem>>, vector<1x32x32xbf16>
    %103 = vector.shape_cast %102 : vector<1x32x32xbf16> to vector<32x32xbf16>
    %c4_57 = arith.constant 4 : index
    %c0_58 = arith.constant 0 : index
    %c0_59 = arith.constant 0 : index
    %104 = vector.load %arg15[%c4_57, %c0_58, %c0_59] : memref<6x32x1xf32, #tpu.memory_space<vmem>>, vector<1x32x1xf32>
    %105 = vector.shape_cast %104 : vector<1x32x1xf32> to vector<32x1xf32>
    %106 = arith.truncf %101 : vector<32x144xf32> to vector<32x144xbf16>
    %cst_60 = arith.constant dense<0.000000e+00> : vector<32x144xf32>
    %107 = tpu.matmul %103, %106, %cst_60 {dimension_numbers = #tpu.dot_dimension_numbers<[1], [0], [0], [1], [0, 0, 1, 1], [], []>} : vector<32x32xbf16>, vector<32x144xbf16>, vector<32x144xf32> -> vector<32x144xf32>
    %108 = vector.broadcast %105 : vector<32x1xf32> to vector<32x144xf32>
    %109 = arith.addf %107, %108 : vector<32x144xf32>
    %cst_61 = arith.constant 0.000000e+00 : f32
    %110 = vector.broadcast %cst_61 : f32 to vector<32x144xf32>
    %111 = arith.maximumf %109, %110 : vector<32x144xf32>
    %c5 = arith.constant 5 : index
    %c0_62 = arith.constant 0 : index
    %c0_63 = arith.constant 0 : index
    %112 = vector.load %arg14[%c5, %c0_62, %c0_63] : memref<6x32x32xbf16, #tpu.memory_space<vmem>>, vector<1x32x32xbf16>
    %113 = vector.shape_cast %112 : vector<1x32x32xbf16> to vector<32x32xbf16>
    %c5_64 = arith.constant 5 : index
    %c0_65 = arith.constant 0 : index
    %c0_66 = arith.constant 0 : index
    %114 = vector.load %arg15[%c5_64, %c0_65, %c0_66] : memref<6x32x1xf32, #tpu.memory_space<vmem>>, vector<1x32x1xf32>
    %115 = vector.shape_cast %114 : vector<1x32x1xf32> to vector<32x1xf32>
    %116 = arith.truncf %111 : vector<32x144xf32> to vector<32x144xbf16>
    %cst_67 = arith.constant dense<0.000000e+00> : vector<32x144xf32>
    %117 = tpu.matmul %113, %116, %cst_67 {dimension_numbers = #tpu.dot_dimension_numbers<[1], [0], [0], [1], [0, 0, 1, 1], [], []>} : vector<32x32xbf16>, vector<32x144xbf16>, vector<32x144xf32> -> vector<32x144xf32>
    %118 = vector.broadcast %115 : vector<32x1xf32> to vector<32x144xf32>
    %119 = arith.addf %117, %118 : vector<32x144xf32>
    %cst_68 = arith.constant 0.000000e+00 : f32
    %120 = vector.broadcast %cst_68 : f32 to vector<32x144xf32>
    %121 = arith.maximumf %119, %120 : vector<32x144xf32>
    %122 = arith.truncf %121 : vector<32x144xf32> to vector<32x144xbf16>
    %c0_69 = arith.constant 0 : index
    %c0_70 = arith.constant 0 : index
    %123 = vector.load %arg16[%c0_69, %c0_70] : memref<1x32xbf16, #tpu.memory_space<vmem>>, vector<1x32xbf16>
    %cst_71 = arith.constant dense<0.000000e+00> : vector<1x144xf32>
    %124 = tpu.matmul %123, %122, %cst_71 {dimension_numbers = #tpu.dot_dimension_numbers<[1], [0], [0], [1], [0, 0, 1, 1], [], []>} : vector<1x32xbf16>, vector<32x144xbf16>, vector<1x144xf32> -> vector<1x144xf32>
    %c0_72 = arith.constant 0 : index
    %c0_73 = arith.constant 0 : index
    %125 = vector.load %arg18[%c0_72, %c0_73] : memref<1x1xf32, #tpu.memory_space<vmem>>, vector<1x1xf32>
    %126 = vector.broadcast %125 : vector<1x1xf32> to vector<1x144xf32>
    %127 = arith.addf %124, %126 : vector<1x144xf32>
    %128 = arith.truncf %127 : vector<1x144xf32> to vector<1x144xbf16>
    %c0_74 = arith.constant 0 : index
    %c0_75 = arith.constant 0 : index
    %129 = vector.load %arg17[%c0_74, %c0_75] : memref<1x32xbf16, #tpu.memory_space<vmem>>, vector<1x32xbf16>
    %cst_76 = arith.constant dense<0.000000e+00> : vector<1x144xf32>
    %130 = tpu.matmul %129, %122, %cst_76 {dimension_numbers = #tpu.dot_dimension_numbers<[1], [0], [0], [1], [0, 0, 1, 1], [], []>} : vector<1x32xbf16>, vector<32x144xbf16>, vector<1x144xf32> -> vector<1x144xf32>
    %c0_77 = arith.constant 0 : index
    %c0_78 = arith.constant 0 : index
    %131 = vector.load %arg19[%c0_77, %c0_78] : memref<1x1xf32, #tpu.memory_space<vmem>>, vector<1x1xf32>
    %132 = vector.broadcast %131 : vector<1x1xf32> to vector<1x144xf32>
    %133 = arith.addf %130, %132 : vector<1x144xf32>
    %134 = arith.truncf %133 : vector<1x144xf32> to vector<1x144xbf16>
    %c0_79 = arith.constant 0 : index
    %c0_80 = arith.constant 0 : index
    %c0_81 = arith.constant 0 : index
    %135 = vector.load %arg3[%c0_79, %c0_80, %c0_81] : memref<1x1x289xf32, #tpu.memory_space<vmem>>, vector<1x1x289xf32>
    %136 = vector.shape_cast %135 : vector<1x1x289xf32> to vector<1x289xf32>
    %cst_82 = arith.constant dense<0.000000e+00> : vector<1xf32>
    %137 = vector.multi_reduction <add>, %136, %cst_82 [1] : vector<1x289xf32> to vector<1xf32>
    %138 = vector.shape_cast %137 : vector<1xf32> to vector<1x1xf32>
    %c0_83 = arith.constant 0 : index
    %c0_84 = arith.constant 0 : index
    %139 = vector.load %arg20[%c0_83, %c0_84] : memref<144x768xbf16, #tpu.memory_space<vmem>>, vector<144x768xbf16>
    %cst_85 = arith.constant dense<0.000000e+00> : vector<1x768xf32>
    %140 = tpu.matmul %128, %139, %cst_85 {dimension_numbers = #tpu.dot_dimension_numbers<[1], [0], [0], [1], [0, 0, 1, 1], [], []>} : vector<1x144xbf16>, vector<144x768xbf16>, vector<1x768xf32> -> vector<1x768xf32>
    %c0_86 = arith.constant 0 : index
    %c0_87 = arith.constant 0 : index
    %141 = vector.load %arg21[%c0_86, %c0_87] : memref<144x768xbf16, #tpu.memory_space<vmem>>, vector<144x768xbf16>
    %cst_88 = arith.constant dense<0.000000e+00> : vector<1x768xf32>
    %142 = tpu.matmul %134, %141, %cst_88 {dimension_numbers = #tpu.dot_dimension_numbers<[1], [0], [0], [1], [0, 0, 1, 1], [], []>} : vector<1x144xbf16>, vector<144x768xbf16>, vector<1x768xf32> -> vector<1x768xf32>
    %143 = arith.addf %140, %142 : vector<1x768xf32>
    %c0_89 = arith.constant 0 : index
    %c0_90 = arith.constant 0 : index
    %144 = vector.load %arg22[%c0_89, %c0_90] : memref<1x768xf32, #tpu.memory_space<vmem>>, vector<1x768xf32>
    %145 = vector.broadcast %138 : vector<1x1xf32> to vector<1x768xf32>
    %146 = arith.mulf %145, %144 : vector<1x768xf32>
    %147 = arith.addf %143, %146 : vector<1x768xf32>
    %148 = vector.extract_strided_slice %147 {offsets = [0, 0], sizes = [1, 384], strides = [1, 1]} : vector<1x768xf32> to vector<1x384xf32>
    %149 = vector.extract_strided_slice %147 {offsets = [0, 384], sizes = [1, 384], strides = [1, 1]} : vector<1x768xf32> to vector<1x384xf32>
    %150 = arith.mulf %148, %148 : vector<1x384xf32>
    %151 = arith.mulf %149, %149 : vector<1x384xf32>
    %152 = arith.addf %150, %151 : vector<1x384xf32>
    %153 = math.sqrt %152 : vector<1x384xf32>
    %c0_91 = arith.constant 0 : index
    %c0_92 = arith.constant 0 : index
    %c0_93 = arith.constant 0 : index
    %154 = vector.load %arg4[%c0_91, %c0_92, %c0_93] : memref<1x1x384xf32, #tpu.memory_space<vmem>>, vector<1x1x384xf32>
    %155 = vector.shape_cast %154 : vector<1x1x384xf32> to vector<1x384xf32>
    %156 = arith.subf %153, %155 : vector<1x384xf32>
    %157 = arith.truncf %156 : vector<1x384xf32> to vector<1x384xbf16>
    %c0_94 = arith.constant 0 : index
    %c0_95 = arith.constant 0 : index
    %158 = vector.load %arg23[%c0_94, %c0_95] : memref<384x384xbf16, #tpu.memory_space<vmem>>, vector<384x384xbf16>
    %cst_96 = arith.constant dense<0.000000e+00> : vector<1x384xf32>
    %159 = tpu.matmul %157, %158, %cst_96 {dimension_numbers = #tpu.dot_dimension_numbers<[1], [0], [0], [1], [0, 0, 1, 1], [], []>} : vector<1x384xbf16>, vector<384x384xbf16>, vector<1x384xf32> -> vector<1x384xf32>
    %160 = arith.addf %155, %159 : vector<1x384xf32>
    %161 = tpu.concatenate %153, %160 in 0 : vector<1x384xf32>, vector<1x384xf32> -> vector<2x384xf32>
    %c0_97 = arith.constant 0 : index
    %c0_98 = arith.constant 0 : index
    %c0_99 = arith.constant 0 : index
    %162 = vector.load %arg24[%c0_97, %c0_98, %c0_99] : memref<1x2x384xf32, #tpu.memory_space<vmem>>, vector<1x2x384xf32>
    %163 = vector.shape_cast %162 : vector<1x2x384xf32> to vector<2x384xf32>
    %164 = vector.shape_cast %161 : vector<2x384xf32> to vector<1x2x384xf32>
    tpu.vector_store %arg24[%c0_97, %c0_98, %c0_99], %164 {strides = array<i32>} : memref<1x2x384xf32, #tpu.memory_space<vmem>>, vector<1x2x384xf32>,
    return
  }
  func.func @transform_0(%arg0: i32) -> (i32, i32, i32) {
    %c0_i32 = arith.constant 0 : i32
    %c0_i32_0 = arith.constant 0 : i32
    %c0_i32_1 = arith.constant 0 : i32
    return %arg0, %c0_i32, %c0_i32_0 : i32, i32, i32
  }
  func.func @transform_1(%arg0: i32) -> (i32, i32, i32) {
    %c0_i32 = arith.constant 0 : i32
    %c0_i32_0 = arith.constant 0 : i32
    %c0_i32_1 = arith.constant 0 : i32
    return %arg0, %c0_i32, %c0_i32_0 : i32, i32, i32
  }
  func.func @transform_2(%arg0: i32) -> (i32, i32, i32) {
    %c0_i32 = arith.constant 0 : i32
    %c0_i32_0 = arith.constant 0 : i32
    %c0_i32_1 = arith.constant 0 : i32
    return %arg0, %c0_i32, %c0_i32_0 : i32, i32, i32
  }
  func.func @transform_3(%arg0: i32) -> (i32, i32, i32) {
    %c0_i32 = arith.constant 0 : i32
    %c0_i32_0 = arith.constant 0 : i32
    %c0_i32_1 = arith.constant 0 : i32
    return %arg0, %c0_i32, %c0_i32_0 : i32, i32, i32
  }
  func.func @transform_4(%arg0: i32) -> (i32, i32) {
    %c0_i32 = arith.constant 0 : i32
    %c0_i32_0 = arith.constant 0 : i32
    %c0_i32_1 = arith.constant 0 : i32
    return %c0_i32, %c0_i32_0 : i32, i32
  }
  func.func @transform_5(%arg0: i32) -> (i32, i32) {
    %c0_i32 = arith.constant 0 : i32
    %c0_i32_0 = arith.constant 0 : i32
    %c0_i32_1 = arith.constant 0 : i32
    return %c0_i32, %c0_i32_0 : i32, i32
  }
  func.func @transform_6(%arg0: i32) -> (i32, i32) {
    %c0_i32 = arith.constant 0 : i32
    %c0_i32_0 = arith.constant 0 : i32
    %c0_i32_1 = arith.constant 0 : i32
    return %c0_i32, %c0_i32_0 : i32, i32
  }
  func.func @transform_7(%arg0: i32) -> (i32, i32) {
    %c0_i32 = arith.constant 0 : i32
    %c0_i32_0 = arith.constant 0 : i32
    %c0_i32_1 = arith.constant 0 : i32
    return %c0_i32, %c0_i32_0 : i32, i32
  }
  func.func @transform_8(%arg0: i32) -> (i32, i32) {
    %c0_i32 = arith.constant 0 : i32
    %c0_i32_0 = arith.constant 0 : i32
    %c0_i32_1 = arith.constant 0 : i32
    return %c0_i32, %c0_i32_0 : i32, i32
  }
  func.func @transform_9(%arg0: i32) -> (i32, i32) {
    %c0_i32 = arith.constant 0 : i32
    %c0_i32_0 = arith.constant 0 : i32
    %c0_i32_1 = arith.constant 0 : i32
    return %c0_i32, %c0_i32_0 : i32, i32
  }
  func.func @transform_10(%arg0: i32) -> (i32, i32) {
    %c0_i32 = arith.constant 0 : i32
    %c0_i32_0 = arith.constant 0 : i32
    %c0_i32_1 = arith.constant 0 : i32
    return %c0_i32, %c0_i32_0 : i32, i32
  }
  func.func @transform_11(%arg0: i32) -> (i32, i32) {
    %c0_i32 = arith.constant 0 : i32
    %c0_i32_0 = arith.constant 0 : i32
    %c0_i32_1 = arith.constant 0 : i32
    return %c0_i32, %c0_i32_0 : i32, i32
  }
  func.func @transform_12(%arg0: i32) -> (i32, i32) {
    %c0_i32 = arith.constant 0 : i32
    %c0_i32_0 = arith.constant 0 : i32
    %c0_i32_1 = arith.constant 0 : i32
    return %c0_i32, %c0_i32_0 : i32, i32
  }
  func.func @transform_13(%arg0: i32) -> (i32, i32, i32) {
    %c0_i32 = arith.constant 0 : i32
    %c0_i32_0 = arith.constant 0 : i32
    %c0_i32_1 = arith.constant 0 : i32
    %c0_i32_2 = arith.constant 0 : i32
    return %c0_i32, %c0_i32_0, %c0_i32_1 : i32, i32, i32
  }
  func.func @transform_14(%arg0: i32) -> (i32, i32, i32) {
    %c0_i32 = arith.constant 0 : i32
    %c0_i32_0 = arith.constant 0 : i32
    %c0_i32_1 = arith.constant 0 : i32
    %c0_i32_2 = arith.constant 0 : i32
    return %c0_i32, %c0_i32_0, %c0_i32_1 : i32, i32, i32
  }
  func.func @transform_15(%arg0: i32) -> (i32, i32) {
    %c0_i32 = arith.constant 0 : i32
    %c0_i32_0 = arith.constant 0 : i32
    %c0_i32_1 = arith.constant 0 : i32
    return %c0_i32, %c0_i32_0 : i32, i32
  }
  func.func @transform_16(%arg0: i32) -> (i32, i32) {
    %c0_i32 = arith.constant 0 : i32
    %c0_i32_0 = arith.constant 0 : i32
    %c0_i32_1 = arith.constant 0 : i32
    return %c0_i32, %c0_i32_0 : i32, i32
  }
  func.func @transform_17(%arg0: i32) -> (i32, i32) {
    %c0_i32 = arith.constant 0 : i32
    %c0_i32_0 = arith.constant 0 : i32
    %c0_i32_1 = arith.constant 0 : i32
    return %c0_i32, %c0_i32_0 : i32, i32
  }
  func.func @transform_18(%arg0: i32) -> (i32, i32) {
    %c0_i32 = arith.constant 0 : i32
    %c0_i32_0 = arith.constant 0 : i32
    %c0_i32_1 = arith.constant 0 : i32
    return %c0_i32, %c0_i32_0 : i32, i32
  }
  func.func @transform_19(%arg0: i32) -> (i32, i32) {
    %c0_i32 = arith.constant 0 : i32
    %c0_i32_0 = arith.constant 0 : i32
    %c0_i32_1 = arith.constant 0 : i32
    return %c0_i32, %c0_i32_0 : i32, i32
  }
  func.func @transform_20(%arg0: i32) -> (i32, i32) {
    %c0_i32 = arith.constant 0 : i32
    %c0_i32_0 = arith.constant 0 : i32
    %c0_i32_1 = arith.constant 0 : i32
    return %c0_i32, %c0_i32_0 : i32, i32
  }
  func.func @transform_21(%arg0: i32) -> (i32, i32) {
    %c0_i32 = arith.constant 0 : i32
    %c0_i32_0 = arith.constant 0 : i32
    %c0_i32_1 = arith.constant 0 : i32
    return %c0_i32, %c0_i32_0 : i32, i32
  }
  func.func @transform_22(%arg0: i32) -> (i32, i32) {
    %c0_i32 = arith.constant 0 : i32
    %c0_i32_0 = arith.constant 0 : i32
    %c0_i32_1 = arith.constant 0 : i32
    return %c0_i32, %c0_i32_0 : i32, i32
  }
  func.func @transform_23(%arg0: i32) -> (i32, i32, i32) {
    %c0_i32 = arith.constant 0 : i32
    %c0_i32_0 = arith.constant 0 : i32
    %c0_i32_1 = arith.constant 0 : i32
    return %arg0, %c0_i32, %c0_i32_0 : i32, i32, i32
  }
}

</mosaic_0001>

<bundles_post_ra>
// kernel: squeeze.1
= control target key start
LH: loop header
LB: loop body
LE: loop exit
PB: predicated region body
PF: predicated region fallthrough
CT: control target
= control target key end

     0   :  { %vm170_vm0 = vcmask 973824   ;;  %s1100_s12 = smov 9   ;;  %s1101_s13 = smov 120   ;;  %vm196_vm1 = vcmask 1039360   ;;  %s1263_s0 = inlined_call_operand.vmem [shape: f32[8,289], index: 0, kind: input, shape index: {}]   ;;  %s1264_s1 = inlined_call_operand.hbm [shape: f32[8,1,17,17], index: 1, kind: output, shape index: {}]  }
   0x1   :  { %v167_v0 = vld.sshfl [vmem:[%s1263_s0] sm:$0xff pattern:$0x47650321]   ;;  %v1054_v1 = vld.sshfl [vmem:[%s1263_s0 + $0x8] sm:$0xff pattern:$0x47650321]  }
   0x2   :  { %v171_v2 = vsel %vm170_vm0, %v1054_v1, %v167_v0  ;;  %v1046_v3 = vld [vmem:[%s1263_s0 + $0x8] sm:$0xff]   ;;  %v1056_v4 = vld.sshfl [vmem:[%s1263_s0 + $0x10] sm:$0xff pattern:$0x47650321]  }
   0x3   :  { %172 = vrot.lane.b32.xlu0 %v171_v2, %s1100_s12  ;;  %9 = vrot.lane.b32.xlu1 %v1046_v3, %s1101_s13  ;;  %v117_v5 = vld.sshfl [vmem:[%s1263_s0] sm:$0xff pattern:$0x65472103]  }
   0x4   :  { %2 = vsyncpa [#allocation1], 0  ;;  %s1102_s18 = smov 111   ;;  %v197_v6 = vsel %vm196_vm1, %v1056_v4, %v1054_v1  ;;  %v1047_v7 = vld [vmem:[%s1263_s0 + $0x10] sm:$0xff]   ;;  %s1103_s21 = smov 1   ;;  %v1157_v11 = vld [vmem:[%s1263_s0] sm:$0xff]  }
   0x5   :  { %26 = vrot.lane.b32.xlu2 %v117_v5, %s1102_s18  ;;  %s1104_s22 = smov 112   ;;  %v1048_v8 = vld.sshfl [vmem:[%s1263_s0 + $0x8] sm:$0xff pattern:$0x65472103]   ;;  %s1105_s25 = smov 103   ;;  %vm4_vm2 = vcmask 138240  }
   0x6   :  { %v50_v9 = vld.sshfl [vmem:[%s1263_s0] sm:$0xff pattern:$0x54761032]   ;;  %v1049_v10 = vld.sshfl [vmem:[%s1263_s0 + $0x8] sm:$0xff pattern:$0x54761032]  }
   0x7   :  { %s1106_s30 = smov 94   ;;  %s1107_s2 = smov 86   ;;  %vm174_vm3 = vcmask 72704   ;;  %5 = vst.msk [vmem:[#allocation2] ss:$136 sm:$0xf] %vm4_vm2, %v1157_v11  }
   0x8   :  { %s1108_s3 = smov 77   ;;  %s1109_s0 = smov 69   ;;  %vm183_vm4 = vcmask 138312   ;;  %vm200_vm5 = vcmask 7168   ;;  %vm209_vm6 = vcmask 138248  }
   0x9   :  { %s1110_s6 = smov 60   ;;  %s1111_s7 = smov 52   ;;  %6 = vst.msk [vmem:[#allocation2] ss:$136 sm:$0xf0] %vm4_vm2, %v1157_v11  }
   0xa   :  { %s1112_s8 = smov 43   ;;  %s1113_s9 = smov 35  }
   0xb   :  { %198 = vrot.lane.b32.xlu0 %v197_v6, %s1103_s21  ;;  %18 = vrot.lane.b32.xlu1 %v1047_v7, %s1104_s22  ;;  %s1114_s10 = smov 26   ;;  %s1115_s11 = smov 18  }
   0xc   :  { %s1116_s12 = smov [#allocation0]   ;;  %s1039_s1 = sshll.u32 %s1264_s1, 4  ;;  %s1040_s1 = int_to_ptr.hbm [resolvable:$true] %s1039_s1 }
   0xd   :  { %39 = vrot.lane.b32.xlu2 %v1048_v8, %s1105_s25  ;;  %s1037_s13 = sshll.u32 %s1116_s12, 4  ;;  %s1038_s13 = int_to_ptr.vmem [resolvable:$true] %s1037_s13 }
  0x13   :  { %51 = vrot.lane.b32.xlu0 %v50_v9, %s1106_s30  ;;  %64 = vrot.lane.b32.xlu1 %v1049_v10, %s1107_s2 }
  0x15   :  { %76 = vrot.lane.b32.xlu2 %v167_v0, %s1108_s3 }
  0x1b   :  { %89 = vrot.lane.b32.xlu0 %v1054_v1, %s1109_s0  ;;  %101 = vrot.lane.b32.xlu1 %v1157_v11, %s1110_s6  ;;  %v627_v11 = vld [vmem:[#allocation2 + $0x220] sm:$0x1] }
  0x1c   :  { %631 = vst [vmem:[#allocation0 + $0x44] sm:$0x1] %v627_v11 }
  0x1d   :  { %110 = vrot.lane.b32.xlu2 %v1046_v3, %s1111_s7 }
  0x23   :  { %118 = vrot.lane.b32.xlu0 %v117_v5, %s1112_s8  ;;  %131 = vrot.lane.b32.xlu1 %v1048_v8, %s1113_s9 }
  0x25   :  { %143 = vrot.lane.b32.xlu2 %v50_v9, %s1114_s10 }
  0x2b   :  { %156 = vrot.lane.b32.xlu0 %v1049_v10, %s1115_s11 }
  0x5f   :  { %v27_v12 = vpop.permute.xlu2 %26  }
  0x60   :  { %30 = vst.msk [vmem:[#allocation2 + $0x1a0] ss:$-408 sm:$0x3] %vm4_vm2, %v27_v12  }
  0x61   :  { %32 = vst.msk [vmem:[#allocation2 - $0x80] ss:$136 sm:$0xc] %vm4_vm2, %v27_v12  }
  0x62   :  { %34 = vst.msk [vmem:[#allocation2 + $0xa20] ss:$-408 sm:$0x30] %vm4_vm2, %v27_v12  }
  0x63   :  { %36 = vst.msk [vmem:[#allocation2 - $0x80] ss:$136 sm:$0xc0] %vm4_vm2, %v27_v12  }
  0x67   :  { %v225_v24 = vld [vmem:[#allocation2 + $0x8] sm:$0x1]  ;;  %v1172_v28 = vpop.permute.xlu2 %39   ;;  %v531_v37 = vld [vmem:[#allocation2 + $0x1a0] sm:$0x1] }
  0x68   :  { %v327_v25 = vld [vmem:[#allocation2 + $0x90] sm:$0x1]  ;;  %v429_v26 = vld [vmem:[#allocation2 + $0x118] sm:$0x1]  ;;  %229 = vst [vmem:[#allocation0 + $0x1] sm:$0x1] %v225_v24 }
  0x69   :  { %331 = vst [vmem:[#allocation0 + $0x12] sm:$0x1] %v327_v25  ;;  %v633_v38 = vld [vmem:[#allocation2 + $0x228] sm:$0x1]  ;;  %v939_v41 = vld [vmem:[#allocation2 + $0x3c0] sm:$0x1] }
  0x6a   :  { %433 = vst [vmem:[#allocation0 + $0x23] sm:$0x1] %v429_v26  ;;  %v735_v39 = vld [vmem:[#allocation2 + $0x2b0] sm:$0x1]  ;;  %v837_v40 = vld [vmem:[#allocation2 + $0x338] sm:$0x1] }
  0x6b   :  { %535 = vst [vmem:[#allocation0 + $0x34] sm:$0x1] %v531_v37 }
  0x6c   :  { %637 = vst [vmem:[#allocation0 + $0x45] sm:$0x1] %v633_v38 }
  0x6d   :  { %739 = vst [vmem:[#allocation0 + $0x56] sm:$0x1] %v735_v39 }
  0x6e   :  { %841 = vst [vmem:[#allocation0 + $0x67] sm:$0x1] %v837_v40 }
  0x6f   :  { %943 = vst [vmem:[#allocation0 + $0x78] sm:$0x1] %v939_v41  ;;  %v1186_v59 = vpop.permute.xlu2 %76  }
  0x70   :  { %43 = vst.msk [vmem:[#allocation2 + $0x1e0] ss:$-408 sm:$0x3] %vm4_vm2, %v1172_v28  }
  0x71   :  { %45 = vst.msk [vmem:[#allocation2 - $0x40] ss:$136 sm:$0xc] %vm4_vm2, %v1172_v28  }
  0x72   :  { %47 = vst.msk [vmem:[#allocation2 + $0xa60] ss:$-408 sm:$0x30] %vm4_vm2, %v1172_v28  }
  0x73   :  { %49 = vst.msk [vmem:[#allocation2 - $0x40] ss:$136 sm:$0xc0] %vm4_vm2, %v1172_v28  }
  0x74   :  { %80 = vst.msk [vmem:[#allocation2 + $0xa0] ss:$136 sm:$0x7] %vm4_vm2, %v1186_v59  }
  0x75   :  { %v173_v13 = vpop.permute.xlu0 %172   ;;  %v1166_v14 = vpop.permute.xlu1 %9   ;;  %82 = vst.msk [vmem:[#allocation2 - $0x7e0] ss:$680 sm:$0x18] %vm4_vm2, %v1186_v59  }
  0x76   :  { %176 = vst.msk [vmem:[#allocation2 + $0xc0] ss:$136 sm:$0x7] %vm174_vm3, %v173_v13  }
  0x77   :  { %178 = vst.msk [vmem:[#allocation2 - $0x7c0] ss:$680 sm:$0x18] %vm174_vm3, %v173_v13   ;;  %v273_v61 = vld [vmem:[#allocation2 + $0x48] sm:$0x1] }
  0x78   :  { %180 = vst.msk [vmem:[#allocation2 + $0xc0] ss:$136 sm:$0x60] %vm174_vm3, %v173_v13   ;;  %v579_v62 = vld [vmem:[#allocation2 + $0x1e0] sm:$0x1] }
  0x79   :  { %182 = vst.msk [vmem:[#allocation2 + $0x251] sm:$0x80] %vm174_vm3, %v173_v13   ;;  %v375_v0 = vld [vmem:[#allocation2 + $0xd0] sm:$0x1]  ;;  %v477_v1 = vld [vmem:[#allocation2 + $0x158] sm:$0x1] }
  0x7a   :  { %185 = vst.msk [vmem:[#allocation2 + $0xc0] ss:$136 sm:$0x7] %vm183_vm4, %v173_v13   ;;  %v681_v2 = vld [vmem:[#allocation2 + $0x268] sm:$0x1] }
  0x7b   :  { %187 = vst.msk [vmem:[#allocation2 - $0x7c0] ss:$680 sm:$0x18] %vm183_vm4, %v173_v13   ;;  %v783_v3 = vld [vmem:[#allocation2 + $0x2f0] sm:$0x1] }
  0x7c   :  { %189 = vst.msk [vmem:[#allocation2 + $0xc0] ss:$136 sm:$0x60] %vm183_vm4, %v173_v13   ;;  %v885_v4 = vld [vmem:[#allocation2 + $0x378] sm:$0x1] }
  0x7d   :  { %191 = vst.msk [vmem:[#allocation2 + $0x251] sm:$0x80] %vm183_vm4, %v173_v13   ;;  %v199_v15 = vpop.permute.xlu0 %198   ;;  %v19_v42 = vpop.permute.xlu1 %18   ;;  %v987_v5 = vld [vmem:[#allocation2 + $0x400] sm:$0x1]  ;;  %v237_v25 = vld [vmem:[#allocation2 + $0x18] sm:$0x1] }
  0x7e   :  { %202 = vst.msk [vmem:[#allocation2 + $0x100] ss:$136 sm:$0x7] %vm200_vm5, %v199_v15   ;;  %v339_v26 = vld [vmem:[#allocation2 + $0xa0] sm:$0x1] }
  0x7f   :  { %204 = vst.msk [vmem:[#allocation2 - $0x780] ss:$680 sm:$0x18] %vm200_vm5, %v199_v15   ;;  %v543_v28 = vld [vmem:[#allocation2 + $0x1b0] sm:$0x1] }
  0x80   :  { %206 = vst.msk [vmem:[#allocation2 + $0x100] ss:$136 sm:$0x60] %vm200_vm5, %v199_v15  }
  0x81   :  { %v363_v16 = vld [vmem:[#allocation2 + $0xc0] sm:$0x1]  ;;  %v465_v17 = vld [vmem:[#allocation2 + $0x148] sm:$0x1]  ;;  %v567_v19 = vld [vmem:[#allocation2 + $0x1d0] sm:$0x1] }
  0x82   :  { %v261_v18 = vld [vmem:[#allocation2 + $0x38] sm:$0x1]  ;;  %367 = vst [vmem:[#allocation0 + $0x18] sm:$0x1] %v363_v16  ;;  %v771_v21 = vld [vmem:[#allocation2 + $0x2e0] sm:$0x1] }
  0x83   :  { %265 = vst [vmem:[#allocation0 + $0x7] sm:$0x1] %v261_v18  ;;  %v873_v22 = vld [vmem:[#allocation2 + $0x368] sm:$0x1]  ;;  %v975_v23 = vld [vmem:[#allocation2 + $0x3f0] sm:$0x1] }
  0x84   :  { %469 = vst [vmem:[#allocation0 + $0x29] sm:$0x1] %v465_v17  ;;  %v669_v20 = vld [vmem:[#allocation2 + $0x258] sm:$0x1] }
  0x85   :  { %571 = vst [vmem:[#allocation0 + $0x3a] sm:$0x1] %v567_v19  ;;  %v52_v27 = vpop.permute.xlu0 %51   ;;  %v1194_v63 = vpop.permute.xlu1 %64  }
  0x86   :  { %673 = vst [vmem:[#allocation0 + $0x4b] sm:$0x1] %v669_v20 }
  0x87   :  { %775 = vst [vmem:[#allocation0 + $0x5c] sm:$0x1] %v771_v21  ;;  %v1212_v21 = vpop.permute.xlu2 %110  }
  0x88   :  { %877 = vst [vmem:[#allocation0 + $0x6d] sm:$0x1] %v873_v22 }
  0x89   :  { %979 = vst [vmem:[#allocation0 + $0x7e] sm:$0x1] %v975_v23 }
  0x8a   :  { %208 = vst.msk [vmem:[#allocation2 + $0x291] sm:$0x80] %vm200_vm5, %v199_v15  }
  0x8b   :  { %211 = vst.msk [vmem:[#allocation2 + $0x100] ss:$136 sm:$0x7] %vm209_vm6, %v199_v15  }
  0x8c   :  { %213 = vst.msk [vmem:[#allocation2 - $0x780] ss:$680 sm:$0x18] %vm209_vm6, %v199_v15  }
  0x8d   :  { %215 = vst.msk [vmem:[#allocation2 + $0x100] ss:$136 sm:$0x60] %vm209_vm6, %v199_v15   ;;  %v1184_v51 = vpop.permute.xlu0 %89  }
  0x8e   :  { %217 = vst.msk [vmem:[#allocation2 + $0x291] sm:$0x80] %vm209_vm6, %v199_v15  }
  0x8f   :  { %13 = vst.msk [vmem:[#allocation2 + $0x40] ss:$136 sm:$0xf] %vm4_vm2, %v1166_v14  }
  0x90   :  { %15 = vst.msk [vmem:[#allocation2 + $0x40] ss:$136 sm:$0xf0] %vm4_vm2, %v1166_v14  }
  0x91   :  { %55 = vst.msk [vmem:[#allocation2 + $0x120] ss:$136 sm:$0x3] %vm4_vm2, %v52_v27  }
  0x92   :  { %v411_v29 = vld [vmem:[#allocation2 + $0x100] sm:$0x1]  ;;  %v513_v30 = vld [vmem:[#allocation2 + $0x188] sm:$0x1]  ;;  %v615_v32 = vld [vmem:[#allocation2 + $0x210] sm:$0x1] }
  0x93   :  { %v309_v31 = vld [vmem:[#allocation2 + $0x78] sm:$0x1]  ;;  %415 = vst [vmem:[#allocation0 + $0x20] sm:$0x1] %v411_v29  ;;  %v819_v34 = vld [vmem:[#allocation2 + $0x320] sm:$0x1] }
  0x94   :  { %313 = vst [vmem:[#allocation0 + $0xf] sm:$0x1] %v309_v31  ;;  %v921_v35 = vld [vmem:[#allocation2 + $0x3a8] sm:$0x1]  ;;  %v1023_v36 = vld [vmem:[#allocation2 + $0x430] sm:$0x1] }
  0x95   :  { %517 = vst [vmem:[#allocation0 + $0x31] sm:$0x1] %v513_v30  ;;  %v717_v33 = vld [vmem:[#allocation2 + $0x298] sm:$0x1]  ;;  %v119_v16 = vpop.permute.xlu0 %118   ;;  %v747_v29 = vld [vmem:[#allocation2 + $0x2c0] sm:$0x1] }
  0x96   :  { %619 = vst [vmem:[#allocation0 + $0x42] sm:$0x1] %v615_v32  ;;  %v267_v43 = vld [vmem:[#allocation2 + $0x40] sm:$0x1]  ;;  %v369_v44 = vld [vmem:[#allocation2 + $0xc8] sm:$0x1] }
  0x97   :  { %721 = vst [vmem:[#allocation0 + $0x53] sm:$0x1] %v717_v33  ;;  %v471_v45 = vld [vmem:[#allocation2 + $0x150] sm:$0x1]  ;;  %v573_v46 = vld [vmem:[#allocation2 + $0x1d8] sm:$0x1]  ;;  %v102_v33 = vpop.permute.xlu1 %101  }
  0x98   :  { %823 = vst [vmem:[#allocation0 + $0x64] sm:$0x1] %v819_v34  ;;  %v675_v47 = vld [vmem:[#allocation2 + $0x260] sm:$0x1]  ;;  %v777_v48 = vld [vmem:[#allocation2 + $0x2e8] sm:$0x1] }
  0x99   :  { %925 = vst [vmem:[#allocation0 + $0x75] sm:$0x1] %v921_v35  ;;  %v879_v49 = vld [vmem:[#allocation2 + $0x370] sm:$0x1]  ;;  %v981_v50 = vld [vmem:[#allocation2 + $0x3f8] sm:$0x1] }
  0x9a   :  { %1027 = vst [vmem:[#allocation0 + $0x86] sm:$0x1] %v1023_v36  ;;  %v435_v54 = vld [vmem:[#allocation2 + $0x120] sm:$0x1]  ;;  %v537_v55 = vld [vmem:[#allocation2 + $0x1a8] sm:$0x1] }
  0x9b   :  { %57 = vst.msk [vmem:[#allocation2 - $0x100] ss:$136 sm:$0xc] %vm4_vm2, %v52_v27  }
  0x9c   :  { %59 = vst.msk [vmem:[#allocation2 + $0x120] ss:$136 sm:$0x30] %vm4_vm2, %v52_v27  }
  0x9d   :  { %61 = vst.msk [vmem:[#allocation2 - $0x100] ss:$136 sm:$0xc0] %vm4_vm2, %v52_v27   ;;  %v441_v27 = vld [vmem:[#allocation2 + $0x128] sm:$0x1] }
  0x9e   :  { %271 = vst [vmem:[#allocation0 + $0x8] sm:$0x1] %v267_v43 }
  0x9f   :  { %373 = vst [vmem:[#allocation0 + $0x19] sm:$0x1] %v369_v44 }
  0xa0   :  { %475 = vst [vmem:[#allocation0 + $0x2a] sm:$0x1] %v471_v45  ;;  %v157_v45 = vpop.permute.xlu0 %156  }
  0xa1   :  { %577 = vst [vmem:[#allocation0 + $0x3b] sm:$0x1] %v573_v46 }
  0xa2   :  { %679 = vst [vmem:[#allocation0 + $0x4c] sm:$0x1] %v675_v47  ;;  %v231_v52 = vld [vmem:[#allocation2 + $0x10] sm:$0x1]  ;;  %v333_v53 = vld [vmem:[#allocation2 + $0x98] sm:$0x1] }
  0xa3   :  { %781 = vst [vmem:[#allocation0 + $0x5d] sm:$0x1] %v777_v48  ;;  %v843_v58 = vld [vmem:[#allocation2 + $0x340] sm:$0x1]  ;;  %v945_v60 = vld [vmem:[#allocation2 + $0x3c8] sm:$0x1]  ;;  %v1228_v48 = vpop.permute.xlu2 %143  }
  0xa4   :  { %883 = vst [vmem:[#allocation0 + $0x6e] sm:$0x1] %v879_v49  ;;  %v639_v56 = vld [vmem:[#allocation2 + $0x230] sm:$0x1]  ;;  %v741_v57 = vld [vmem:[#allocation2 + $0x2b8] sm:$0x1] }
  0xa5   :  { %985 = vst [vmem:[#allocation0 + $0x7f] sm:$0x1] %v981_v50 }
  0xa6   :  { %235 = vst [vmem:[#allocation0 + $0x2] sm:$0x1] %v231_v52 }
  0xa7   :  { %337 = vst [vmem:[#allocation0 + $0x13] sm:$0x1] %v333_v53 }
  0xa8   :  { %439 = vst [vmem:[#allocation0 + $0x24] sm:$0x1] %v435_v54 }
  0xa9   :  { %541 = vst [vmem:[#allocation0 + $0x35] sm:$0x1] %v537_v55 }
  0xaa   :  { %643 = vst [vmem:[#allocation0 + $0x46] sm:$0x1] %v639_v56  ;;  %v1239_v56 = vpop.permute.xlu1 %131  }
  0xab   :  { %745 = vst [vmem:[#allocation0 + $0x57] sm:$0x1] %v741_v57 }
  0xac   :  { %847 = vst [vmem:[#allocation0 + $0x68] sm:$0x1] %v843_v58 }
  0xad   :  { %949 = vst [vmem:[#allocation0 + $0x79] sm:$0x1] %v945_v60 }
  0xae   :  { %277 = vst [vmem:[#allocation0 + $0x9] sm:$0x1] %v273_v61 }
  0xaf   :  { %583 = vst [vmem:[#allocation0 + $0x3c] sm:$0x1] %v579_v62 }
  0xb0   :  { %22 = vst.msk [vmem:[#allocation2 + $0x80] ss:$136 sm:$0xf] %vm4_vm2, %v19_v42  }
  0xb1   :  { %24 = vst.msk [vmem:[#allocation2 + $0x80] ss:$136 sm:$0xf0] %vm4_vm2, %v19_v42  }
  0xb2   :  { %99 = vst.msk [vmem:[#allocation2 + $0x271] sm:$0x80] %vm4_vm2, %v1184_v51  }
  0xb3   :  { %379 = vst [vmem:[#allocation0 + $0x1a] sm:$0x1] %v375_v0 }
  0xb4   :  { %481 = vst [vmem:[#allocation0 + $0x2b] sm:$0x1] %v477_v1 }
  0xb5   :  { %685 = vst [vmem:[#allocation0 + $0x4d] sm:$0x1] %v681_v2 }
  0xb6   :  { %787 = vst [vmem:[#allocation0 + $0x5e] sm:$0x1] %v783_v3 }
  0xb7   :  { %889 = vst [vmem:[#allocation0 + $0x6f] sm:$0x1] %v885_v4  ;;  %v315_v6 = vld [vmem:[#allocation2 + $0x80] sm:$0x1]  ;;  %v417_v7 = vld [vmem:[#allocation2 + $0x108] sm:$0x1] }
  0xb8   :  { %991 = vst [vmem:[#allocation0 + $0x80] sm:$0x1] %v987_v5  ;;  %v519_v8 = vld [vmem:[#allocation2 + $0x190] sm:$0x1]  ;;  %v621_v9 = vld [vmem:[#allocation2 + $0x218] sm:$0x1] }
  0xb9   :  { %319 = vst [vmem:[#allocation0 + $0x10] sm:$0x1] %v315_v6  ;;  %v723_v10 = vld [vmem:[#allocation2 + $0x2a0] sm:$0x1]  ;;  %v825_v12 = vld [vmem:[#allocation2 + $0x328] sm:$0x1] }
  0xba   :  { %421 = vst [vmem:[#allocation0 + $0x21] sm:$0x1] %v417_v7  ;;  %v927_v13 = vld [vmem:[#allocation2 + $0x3b0] sm:$0x1]  ;;  %v1029_v14 = vld [vmem:[#allocation2 + $0x438] sm:$0x1] }
  0xbb   :  { %523 = vst [vmem:[#allocation0 + $0x32] sm:$0x1] %v519_v8  ;;  %v693_v15 = vld [vmem:[#allocation2 + $0x278] sm:$0x1] }
  0xbc   :  { %625 = vst [vmem:[#allocation0 + $0x43] sm:$0x1] %v621_v9 }
  0xbd   :  { %727 = vst [vmem:[#allocation0 + $0x54] sm:$0x1] %v723_v10 }
  0xbe   :  { %829 = vst [vmem:[#allocation0 + $0x65] sm:$0x1] %v825_v12  ;;  %v220_v12 = vld [vmem:[#allocation2] sm:$0x1] }
  0xbf   :  { %931 = vst [vmem:[#allocation0 + $0x76] sm:$0x1] %v927_v13 }
  0xc0   :  { %1033 = vst [vmem:[#allocation0 + $0x87] sm:$0x1] %v1029_v14 }
  0xc1   :  { %93 = vst.msk [vmem:[#allocation2 + $0xe0] ss:$136 sm:$0x7] %vm4_vm2, %v1184_v51  }
  0xc2   :  { %95 = vst.msk [vmem:[#allocation2 - $0x7a0] ss:$680 sm:$0x18] %vm4_vm2, %v1184_v51  }
  0xc3   :  { %97 = vst.msk [vmem:[#allocation2 + $0xe0] ss:$136 sm:$0x60] %vm4_vm2, %v1184_v51  }
  0xc4   :  { %697 = vst [vmem:[#allocation0 + $0x4f] sm:$0x1] %v693_v15  ;;  %v321_v15 = vld [vmem:[#allocation2 + $0x88] sm:$0x1] }
  0xc5   :  { %84 = vst.msk [vmem:[#allocation2 + $0xa0] ss:$136 sm:$0x60] %vm4_vm2, %v1186_v59  }
  0xc6   :  { %86 = vst.msk [vmem:[#allocation2 + $0x231] sm:$0x80] %vm4_vm2, %v1186_v59  }
  0xc7   :  { %241 = vst [vmem:[#allocation0 + $0x3] sm:$0x1] %v237_v25 }
  0xc8   :  { %v387_v17 = vld [vmem:[#allocation2 + $0xe0] sm:$0x1]  ;;  %v489_v18 = vld [vmem:[#allocation2 + $0x168] sm:$0x1]  ;;  %v591_v20 = vld [vmem:[#allocation2 + $0x1f0] sm:$0x1] }
  0xc9   :  { %v285_v19 = vld [vmem:[#allocation2 + $0x58] sm:$0x1]  ;;  %391 = vst [vmem:[#allocation0 + $0x1c] sm:$0x1] %v387_v17  ;;  %v795_v22 = vld [vmem:[#allocation2 + $0x300] sm:$0x1] }
  0xca   :  { %289 = vst [vmem:[#allocation0 + $0xb] sm:$0x1] %v285_v19  ;;  %v897_v23 = vld [vmem:[#allocation2 + $0x388] sm:$0x1]  ;;  %v999_v24 = vld [vmem:[#allocation2 + $0x410] sm:$0x1] }
  0xcb   :  { %493 = vst [vmem:[#allocation0 + $0x2d] sm:$0x1] %v489_v18 }
  0xcc   :  { %595 = vst [vmem:[#allocation0 + $0x3e] sm:$0x1] %v591_v20  ;;  %v849_v30 = vld [vmem:[#allocation2 + $0x348] sm:$0x1]  ;;  %v951_v31 = vld [vmem:[#allocation2 + $0x3d0] sm:$0x1] }
  0xcd   :  { %799 = vst [vmem:[#allocation0 + $0x60] sm:$0x1] %v795_v22  ;;  %v645_v32 = vld [vmem:[#allocation2 + $0x238] sm:$0x1] }
  0xce   :  { %901 = vst [vmem:[#allocation0 + $0x71] sm:$0x1] %v897_v23 }
  0xcf   :  { %1003 = vst [vmem:[#allocation0 + $0x82] sm:$0x1] %v999_v24 }
  0xd0   :  { %343 = vst [vmem:[#allocation0 + $0x14] sm:$0x1] %v339_v26 }
  0xd1   :  { %445 = vst [vmem:[#allocation0 + $0x25] sm:$0x1] %v441_v27 }
  0xd2   :  { %547 = vst [vmem:[#allocation0 + $0x36] sm:$0x1] %v543_v28 }
  0xd3   :  { %751 = vst [vmem:[#allocation0 + $0x58] sm:$0x1] %v747_v29 }
  0xd4   :  { %853 = vst [vmem:[#allocation0 + $0x69] sm:$0x1] %v849_v30  ;;  %v423_v30 = vld [vmem:[#allocation2 + $0x110] sm:$0x1] }
  0xd5   :  { %955 = vst [vmem:[#allocation0 + $0x7a] sm:$0x1] %v951_v31 }
  0xd6   :  { %649 = vst [vmem:[#allocation0 + $0x47] sm:$0x1] %v645_v32 }
  0xd7   :  { %68 = vst.msk [vmem:[#allocation2 + $0x160] ss:$136 sm:$0x3] %vm4_vm2, %v1194_v63  }
  0xd8   :  { %70 = vst.msk [vmem:[#allocation2 - $0xc0] ss:$136 sm:$0xc] %vm4_vm2, %v1194_v63  }
  0xd9   :  { %72 = vst.msk [vmem:[#allocation2 + $0x160] ss:$136 sm:$0x30] %vm4_vm2, %v1194_v63  }
  0xda   :  { %74 = vst.msk [vmem:[#allocation2 - $0xc0] ss:$136 sm:$0xc0] %vm4_vm2, %v1194_v63  }
  0xdb   :  { %122 = vst.msk [vmem:[#allocation2 + $0x1c0] ss:$-408 sm:$0x3] %vm4_vm2, %v119_v16  }
  0xdc   :  { %124 = vst.msk [vmem:[#allocation2 - $0x60] ss:$136 sm:$0xc] %vm4_vm2, %v119_v16  }
  0xdd   :  { %126 = vst.msk [vmem:[#allocation2 + $0xa40] ss:$-408 sm:$0x30] %vm4_vm2, %v119_v16  }
  0xde   :  { %v483_v34 = vld [vmem:[#allocation2 + $0x160] sm:$0x1]  ;;  %v585_v35 = vld [vmem:[#allocation2 + $0x1e8] sm:$0x1]  ;;  %223 = vst [vmem:[#allocation0] sm:$0x1] %v220_v12 }
  0xdf   :  { %v279_v36 = vld [vmem:[#allocation2 + $0x50] sm:$0x1]  ;;  %v381_v37 = vld [vmem:[#allocation2 + $0xd8] sm:$0x1]  ;;  %487 = vst [vmem:[#allocation0 + $0x2c] sm:$0x1] %v483_v34 }
  0xe0   :  { %283 = vst [vmem:[#allocation0 + $0xa] sm:$0x1] %v279_v36  ;;  %v891_v40 = vld [vmem:[#allocation2 + $0x380] sm:$0x1]  ;;  %v993_v41 = vld [vmem:[#allocation2 + $0x408] sm:$0x1] }
  0xe1   :  { %385 = vst [vmem:[#allocation0 + $0x1b] sm:$0x1] %v381_v37  ;;  %v687_v38 = vld [vmem:[#allocation2 + $0x270] sm:$0x1]  ;;  %v789_v39 = vld [vmem:[#allocation2 + $0x2f8] sm:$0x1] }
  0xe2   :  { %589 = vst [vmem:[#allocation0 + $0x3d] sm:$0x1] %v585_v35  ;;  %v249_v42 = vld [vmem:[#allocation2 + $0x28] sm:$0x1]  ;;  %v555_v46 = vld [vmem:[#allocation2 + $0x1c0] sm:$0x1] }
  0xe3   :  { %691 = vst [vmem:[#allocation0 + $0x4e] sm:$0x1] %v687_v38  ;;  %v351_v43 = vld [vmem:[#allocation2 + $0xb0] sm:$0x1]  ;;  %v453_v44 = vld [vmem:[#allocation2 + $0x138] sm:$0x1] }
  0xe4   :  { %793 = vst [vmem:[#allocation0 + $0x5f] sm:$0x1] %v789_v39  ;;  %v657_v47 = vld [vmem:[#allocation2 + $0x248] sm:$0x1]  ;;  %v963_v49 = vld [vmem:[#allocation2 + $0x3e0] sm:$0x1] }
  0xe5   :  { %895 = vst [vmem:[#allocation0 + $0x70] sm:$0x1] %v891_v40  ;;  %v729_v34 = vld [vmem:[#allocation2 + $0x2a8] sm:$0x1]  ;;  %v831_v35 = vld [vmem:[#allocation2 + $0x330] sm:$0x1] }
  0xe6   :  { %997 = vst [vmem:[#allocation0 + $0x81] sm:$0x1] %v993_v41  ;;  %v933_v36 = vld [vmem:[#allocation2 + $0x3b8] sm:$0x1] }
  0xe7   :  { %128 = vst.msk [vmem:[#allocation2 - $0x60] ss:$136 sm:$0xc0] %vm4_vm2, %v119_v16  }
  0xe8   :  { %253 = vst [vmem:[#allocation0 + $0x5] sm:$0x1] %v249_v42 }
  0xe9   :  { %355 = vst [vmem:[#allocation0 + $0x16] sm:$0x1] %v351_v43 }
  0xea   :  { %457 = vst [vmem:[#allocation0 + $0x27] sm:$0x1] %v453_v44 }
  0xeb   :  { %559 = vst [vmem:[#allocation0 + $0x38] sm:$0x1] %v555_v46 }
  0xec   :  { %661 = vst [vmem:[#allocation0 + $0x49] sm:$0x1] %v657_v47 }
  0xed   :  { %967 = vst [vmem:[#allocation0 + $0x7c] sm:$0x1] %v963_v49 }
  0xee   :  { %v759_v50 = vld [vmem:[#allocation2 + $0x2d0] sm:$0x1]  ;;  %v861_v51 = vld [vmem:[#allocation2 + $0x358] sm:$0x1]  ;;  %325 = vst [vmem:[#allocation0 + $0x11] sm:$0x1] %v321_v15 }
  0xef   :  { %763 = vst [vmem:[#allocation0 + $0x5a] sm:$0x1] %v759_v50 }
  0xf0   :  { %865 = vst [vmem:[#allocation0 + $0x6b] sm:$0x1] %v861_v51 }
  0xf1   :  { %114 = vst.msk [vmem:[#allocation2 + $0x60] ss:$136 sm:$0xf] %vm4_vm2, %v1212_v21  }
  0xf2   :  { %116 = vst.msk [vmem:[#allocation2 + $0x60] ss:$136 sm:$0xf0] %vm4_vm2, %v1212_v21  }
  0xf3   :  { %105 = vst.msk [vmem:[#allocation2 + $0x20] ss:$136 sm:$0xf] %vm4_vm2, %v102_v33  }
  0xf4   :  { %107 = vst.msk [vmem:[#allocation2 + $0x20] ss:$136 sm:$0xf0] %vm4_vm2, %v102_v33   ;;  %v525_v33 = vld [vmem:[#allocation2 + $0x198] sm:$0x1] }
  0xf5   :  { %160 = vst.msk [vmem:[#allocation2 + $0x180] ss:$136 sm:$0x3] %vm4_vm2, %v157_v45  }
  0xf6   :  { %162 = vst.msk [vmem:[#allocation2 - $0xa0] ss:$136 sm:$0xc] %vm4_vm2, %v157_v45  }
  0xf7   :  { %164 = vst.msk [vmem:[#allocation2 + $0x180] ss:$136 sm:$0x30] %vm4_vm2, %v157_v45  }
  0xf8   :  { %v291_v52 = vld [vmem:[#allocation2 + $0x60] sm:$0x1]  ;;  %v393_v53 = vld [vmem:[#allocation2 + $0xe8] sm:$0x1]  ;;  %v495_v54 = vld [vmem:[#allocation2 + $0x170] sm:$0x1] }
  0xf9   :  { %295 = vst [vmem:[#allocation0 + $0xc] sm:$0x1] %v291_v52  ;;  %v597_v55 = vld [vmem:[#allocation2 + $0x1f8] sm:$0x1]  ;;  %v699_v57 = vld [vmem:[#allocation2 + $0x280] sm:$0x1] }
  0xfa   :  { %397 = vst [vmem:[#allocation0 + $0x1d] sm:$0x1] %v393_v53  ;;  %v801_v58 = vld [vmem:[#allocation2 + $0x308] sm:$0x1]  ;;  %v903_v59 = vld [vmem:[#allocation2 + $0x390] sm:$0x1] }
  0xfb   :  { %499 = vst [vmem:[#allocation0 + $0x2e] sm:$0x1] %v495_v54  ;;  %v1005_v60 = vld [vmem:[#allocation2 + $0x418] sm:$0x1]  ;;  %v243_v61 = vld [vmem:[#allocation2 + $0x20] sm:$0x1] }
  0xfc   :  { %601 = vst [vmem:[#allocation0 + $0x3f] sm:$0x1] %v597_v55  ;;  %v345_v62 = vld [vmem:[#allocation2 + $0xa8] sm:$0x1]  ;;  %v447_v63 = vld [vmem:[#allocation2 + $0x130] sm:$0x1] }
  0xfd   :  { %703 = vst [vmem:[#allocation0 + $0x50] sm:$0x1] %v699_v57  ;;  %v549_v0 = vld [vmem:[#allocation2 + $0x1b8] sm:$0x1]  ;;  %v651_v1 = vld [vmem:[#allocation2 + $0x240] sm:$0x1] }
  0xfe   :  { %805 = vst [vmem:[#allocation0 + $0x61] sm:$0x1] %v801_v58  ;;  %v753_v2 = vld [vmem:[#allocation2 + $0x2c8] sm:$0x1]  ;;  %v855_v3 = vld [vmem:[#allocation2 + $0x350] sm:$0x1] }
  0xff   :  { %907 = vst [vmem:[#allocation0 + $0x72] sm:$0x1] %v903_v59  ;;  %v957_v4 = vld [vmem:[#allocation2 + $0x3d8] sm:$0x1]  ;;  %v303_v5 = vld [vmem:[#allocation2 + $0x70] sm:$0x1] }
 0x100   :  { %1009 = vst [vmem:[#allocation0 + $0x83] sm:$0x1] %v1005_v60  ;;  %v405_v6 = vld [vmem:[#allocation2 + $0xf8] sm:$0x1]  ;;  %v507_v7 = vld [vmem:[#allocation2 + $0x180] sm:$0x1] }
 0x101   :  { %247 = vst [vmem:[#allocation0 + $0x4] sm:$0x1] %v243_v61  ;;  %v609_v8 = vld [vmem:[#allocation2 + $0x208] sm:$0x1]  ;;  %v915_v9 = vld [vmem:[#allocation2 + $0x3a0] sm:$0x1] }
 0x102   :  { %349 = vst [vmem:[#allocation0 + $0x15] sm:$0x1] %v345_v62  ;;  %v1017_v10 = vld [vmem:[#allocation2 + $0x428] sm:$0x1] }
 0x103   :  { %451 = vst [vmem:[#allocation0 + $0x26] sm:$0x1] %v447_v63 }
 0x104   :  { %553 = vst [vmem:[#allocation0 + $0x37] sm:$0x1] %v549_v0 }
 0x105   :  { %655 = vst [vmem:[#allocation0 + $0x48] sm:$0x1] %v651_v1 }
 0x106   :  { %757 = vst [vmem:[#allocation0 + $0x59] sm:$0x1] %v753_v2 }
 0x107   :  { %859 = vst [vmem:[#allocation0 + $0x6a] sm:$0x1] %v855_v3 }
 0x108   :  { %961 = vst [vmem:[#allocation0 + $0x7b] sm:$0x1] %v957_v4 }
 0x109   :  { %166 = vst.msk [vmem:[#allocation2 - $0xa0] ss:$136 sm:$0xc0] %vm4_vm2, %v157_v45  }
 0x10a   :  { %307 = vst [vmem:[#allocation0 + $0xe] sm:$0x1] %v303_v5 }
 0x10b   :  { %409 = vst [vmem:[#allocation0 + $0x1f] sm:$0x1] %v405_v6 }
 0x10c   :  { %511 = vst [vmem:[#allocation0 + $0x30] sm:$0x1] %v507_v7 }
 0x10d   :  { %613 = vst [vmem:[#allocation0 + $0x41] sm:$0x1] %v609_v8 }
 0x10e   :  { %919 = vst [vmem:[#allocation0 + $0x74] sm:$0x1] %v915_v9 }
 0x10f   :  { %1021 = vst [vmem:[#allocation0 + $0x85] sm:$0x1] %v1017_v10 }
 0x110   :  { %v711_v13 = vld [vmem:[#allocation2 + $0x290] sm:$0x1]  ;;  %v813_v14 = vld [vmem:[#allocation2 + $0x318] sm:$0x1]  ;;  %427 = vst [vmem:[#allocation0 + $0x22] sm:$0x1] %v423_v30 }
 0x111   :  { %715 = vst [vmem:[#allocation0 + $0x52] sm:$0x1] %v711_v13 }
 0x112   :  { %817 = vst [vmem:[#allocation0 + $0x63] sm:$0x1] %v813_v14 }
 0x113   :  { %147 = vst.msk [vmem:[#allocation2 + $0x140] ss:$136 sm:$0x3] %vm4_vm2, %v1228_v48  }
 0x114   :  { %149 = vst.msk [vmem:[#allocation2 - $0xe0] ss:$136 sm:$0xc] %vm4_vm2, %v1228_v48  }
 0x115   :  { %151 = vst.msk [vmem:[#allocation2 + $0x140] ss:$136 sm:$0x30] %vm4_vm2, %v1228_v48  }
 0x116   :  { %153 = vst.msk [vmem:[#allocation2 - $0xe0] ss:$136 sm:$0xc0] %vm4_vm2, %v1228_v48  }
 0x117   :  { %135 = vst.msk [vmem:[#allocation2 + $0x200] ss:$-408 sm:$0x3] %vm4_vm2, %v1239_v56  }
 0x118   :  { %137 = vst.msk [vmem:[#allocation2 - $0x20] ss:$136 sm:$0xc] %vm4_vm2, %v1239_v56  }
 0x119   :  { %139 = vst.msk [vmem:[#allocation2 + $0xa80] ss:$-408 sm:$0x30] %vm4_vm2, %v1239_v56  }
 0x11a   :  { %v459_v16 = vld [vmem:[#allocation2 + $0x140] sm:$0x1]  ;;  %v561_v17 = vld [vmem:[#allocation2 + $0x1c8] sm:$0x1]  ;;  %529 = vst [vmem:[#allocation0 + $0x33] sm:$0x1] %v525_v33 }
 0x11b   :  { %v255_v18 = vld [vmem:[#allocation2 + $0x30] sm:$0x1]  ;;  %v357_v19 = vld [vmem:[#allocation2 + $0xb8] sm:$0x1]  ;;  %463 = vst [vmem:[#allocation0 + $0x28] sm:$0x1] %v459_v16 }
 0x11c   :  { %259 = vst [vmem:[#allocation0 + $0x6] sm:$0x1] %v255_v18  ;;  %v867_v22 = vld [vmem:[#allocation2 + $0x360] sm:$0x1]  ;;  %v969_v23 = vld [vmem:[#allocation2 + $0x3e8] sm:$0x1] }
 0x11d   :  { %361 = vst [vmem:[#allocation0 + $0x17] sm:$0x1] %v357_v19  ;;  %v663_v20 = vld [vmem:[#allocation2 + $0x250] sm:$0x1]  ;;  %v765_v21 = vld [vmem:[#allocation2 + $0x2d8] sm:$0x1] }
 0x11e   :  { %565 = vst [vmem:[#allocation0 + $0x39] sm:$0x1] %v561_v17  ;;  %v297_v24 = vld [vmem:[#allocation2 + $0x68] sm:$0x1]  ;;  %v603_v27 = vld [vmem:[#allocation2 + $0x200] sm:$0x1] }
 0x11f   :  { %667 = vst [vmem:[#allocation0 + $0x4a] sm:$0x1] %v663_v20  ;;  %v399_v25 = vld [vmem:[#allocation2 + $0xf0] sm:$0x1]  ;;  %v501_v26 = vld [vmem:[#allocation2 + $0x178] sm:$0x1] }
 0x120   :  { %769 = vst [vmem:[#allocation0 + $0x5b] sm:$0x1] %v765_v21  ;;  %v705_v28 = vld [vmem:[#allocation2 + $0x288] sm:$0x1]  ;;  %v1011_v29 = vld [vmem:[#allocation2 + $0x420] sm:$0x1] }
 0x121   :  { %871 = vst [vmem:[#allocation0 + $0x6c] sm:$0x1] %v867_v22 }
 0x122   :  { %973 = vst [vmem:[#allocation0 + $0x7d] sm:$0x1] %v969_v23 }
 0x123   :  { %141 = vst.msk [vmem:[#allocation2 - $0x20] ss:$136 sm:$0xc0] %vm4_vm2, %v1239_v56  }
 0x124   :  { %301 = vst [vmem:[#allocation0 + $0xd] sm:$0x1] %v297_v24 }
 0x125   :  { %403 = vst [vmem:[#allocation0 + $0x1e] sm:$0x1] %v399_v25 }
 0x126   :  { %505 = vst [vmem:[#allocation0 + $0x2f] sm:$0x1] %v501_v26 }
 0x127   :  { %607 = vst [vmem:[#allocation0 + $0x40] sm:$0x1] %v603_v27 }
 0x128   :  { %709 = vst [vmem:[#allocation0 + $0x51] sm:$0x1] %v705_v28 }
 0x129   :  { %1015 = vst [vmem:[#allocation0 + $0x84] sm:$0x1] %v1011_v29 }
 0x12a   :  { %v807_v31 = vld [vmem:[#allocation2 + $0x310] sm:$0x1]  ;;  %v909_v32 = vld [vmem:[#allocation2 + $0x398] sm:$0x1]  ;;  %733 = vst [vmem:[#allocation0 + $0x55] sm:$0x1] %v729_v34 }
 0x12b   :  { %811 = vst [vmem:[#allocation0 + $0x62] sm:$0x1] %v807_v31 }
 0x12c   :  { %913 = vst [vmem:[#allocation0 + $0x73] sm:$0x1] %v909_v32 }
 0x12d   :  { %835 = vst [vmem:[#allocation0 + $0x66] sm:$0x1] %v831_v35 }
 0x12e   :  { %937 = vst [vmem:[#allocation0 + $0x77] sm:$0x1] %v933_v36 }
 0x12f   :  { %1042 = dma.vmem_to_hbm [thread:$0]  %s1038_s13, 2176, %s1040_s1, [#allocation1]  }
 0x130   :  { %1098 = dma.done.wait [#allocation1], 2176  }
 0x131   :  { %1099 = vsyncadd [#allocation1], 4294965120 }
 0x132   :  { %1045 = vsyncpa [#allocation1], 1 }

// kernel: squeeze.0
= control target key start
LH: loop header
LB: loop body
LE: loop exit
PB: predicated region body
PF: predicated region fallthrough
CT: control target
= control target key end

     0   :  { %vm169_vm0 = vcmask 973824   ;;  %s1195_s12 = smov 9   ;;  %s1196_s13 = smov 120   ;;  %vm195_vm1 = vcmask 1039360   ;;  %vm3_vm2 = vcmask 138240   ;;  %vm173_vm3 = vcmask 72704   ;;  %s1762_s0 = inlined_call_operand.vmem [shape: f32[8,289], index: 0, kind: input, shape index: {}]   ;;  %s1763_s1 = inlined_call_operand.vmem [shape: f32[8,1,17,17], index: 1, kind: output, shape index: {}]  }
   0x1   :  { %v166_v0 = vld.sshfl [vmem:[%s1762_s0] sm:$0xff pattern:$0x47650321]   ;;  %v1041_v1 = vld.sshfl [vmem:[%s1762_s0 + $0x8] sm:$0xff pattern:$0x47650321]  }
   0x2   :  { %v170_v2 = vsel %vm169_vm0, %v1041_v1, %v166_v0  ;;  %v1033_v3 = vld [vmem:[%s1762_s0 + $0x8] sm:$0xff]   ;;  %v116_v4 = vld.sshfl [vmem:[%s1762_s0] sm:$0xff pattern:$0x65472103]   ;;  %s1197_s18 = smov 111   ;;  %v1034_v7 = vld [vmem:[%s1762_s0 + $0x10] sm:$0xff]  }
   0x3   :  { %171 = vrot.lane.b32.xlu0 %v170_v2, %s1195_s12  ;;  %8 = vrot.lane.b32.xlu1 %v1033_v3, %s1196_s13  ;;  %v1043_v5 = vld.sshfl [vmem:[%s1762_s0 + $0x10] sm:$0xff pattern:$0x47650321]   ;;  %s1198_s21 = smov 1   ;;  %s1199_s22 = smov 112   ;;  %v1251_v11 = vld [vmem:[%s1762_s0] sm:$0xff]  }
   0x4   :  { %25 = vrot.lane.b32.xlu2 %v116_v4, %s1197_s18  ;;  %v196_v6 = vsel %vm195_vm1, %v1043_v5, %v1041_v1  ;;  %v1035_v8 = vld.sshfl [vmem:[%s1762_s0 + $0x8] sm:$0xff pattern:$0x65472103]   ;;  %s1200_s25 = smov 103   ;;  %s1201_s30 = smov 94   ;;  %vm182_vm4 = vcmask 138312  }
   0x5   :  { %v49_v9 = vld.sshfl [vmem:[%s1762_s0] sm:$0xff pattern:$0x54761032]   ;;  %v1036_v10 = vld.sshfl [vmem:[%s1762_s0 + $0x8] sm:$0xff pattern:$0x54761032]  }
   0x6   :  { %s1202_s2 = smov 86   ;;  %s1203_s3 = smov 77   ;;  %4 = vst.msk [vmem:[#allocation0] ss:$136 sm:$0xf] %vm3_vm2, %v1251_v11   ;;  %vm199_vm5 = vcmask 7168  }
   0x7   :  { %s1204_s0 = smov 69   ;;  %s1205_s6 = smov 60   ;;  %vm208_vm6 = vcmask 138248   ;;  %5 = vst.msk [vmem:[#allocation0] ss:$136 sm:$0xf0] %vm3_vm2, %v1251_v11  }
   0x8   :  { %s1206_s7 = smov 52   ;;  %s1207_s8 = smov 43  }
   0x9   :  { %s1208_s9 = smov 35   ;;  %s1209_s10 = smov 26  }
   0xa   :  { %s1210_s11 = smov 18  }
   0xb   :  { %197 = vrot.lane.b32.xlu0 %v196_v6, %s1198_s21  ;;  %17 = vrot.lane.b32.xlu1 %v1034_v7, %s1199_s22 }
   0xc   :  { %38 = vrot.lane.b32.xlu2 %v1035_v8, %s1200_s25 }
  0x13   :  { %50 = vrot.lane.b32.xlu0 %v49_v9, %s1201_s30  ;;  %63 = vrot.lane.b32.xlu1 %v1036_v10, %s1202_s2 }
  0x14   :  { %75 = vrot.lane.b32.xlu2 %v166_v0, %s1203_s3 }
  0x1b   :  { %88 = vrot.lane.b32.xlu0 %v1041_v1, %s1204_s0  ;;  %100 = vrot.lane.b32.xlu1 %v1251_v11, %s1205_s6  ;;  %v626_v11 = vld [vmem:[#allocation0 + $0x220] sm:$0x1] }
  0x1c   :  { %109 = vrot.lane.b32.xlu2 %v1033_v3, %s1206_s7  ;;  %1111 = vst [vmem:[%s1763_s1 + $0x44] sm:$0x1] %v626_v11 }
  0x23   :  { %117 = vrot.lane.b32.xlu0 %v116_v4, %s1207_s8  ;;  %130 = vrot.lane.b32.xlu1 %v1035_v8, %s1208_s9 }
  0x24   :  { %142 = vrot.lane.b32.xlu2 %v49_v9, %s1209_s10 }
  0x2b   :  { %155 = vrot.lane.b32.xlu0 %v1036_v10, %s1210_s11 }
  0x5e   :  { %v26_v12 = vpop.permute.xlu2 %25  }
  0x5f   :  { %29 = vst.msk [vmem:[#allocation0 + $0x1a0] ss:$-408 sm:$0x3] %vm3_vm2, %v26_v12  }
  0x60   :  { %31 = vst.msk [vmem:[#allocation0 - $0x80] ss:$136 sm:$0xc] %vm3_vm2, %v26_v12  }
  0x61   :  { %33 = vst.msk [vmem:[#allocation0 + $0xa20] ss:$-408 sm:$0x30] %vm3_vm2, %v26_v12  }
  0x62   :  { %35 = vst.msk [vmem:[#allocation0 - $0x80] ss:$136 sm:$0xc0] %vm3_vm2, %v26_v12  }
  0x66   :  { %v224_v24 = vld [vmem:[#allocation0 + $0x8] sm:$0x1]  ;;  %v1290_v28 = vpop.permute.xlu2 %38   ;;  %v530_v37 = vld [vmem:[#allocation0 + $0x1a0] sm:$0x1] }
  0x67   :  { %v326_v25 = vld [vmem:[#allocation0 + $0x90] sm:$0x1]  ;;  %v428_v26 = vld [vmem:[#allocation0 + $0x118] sm:$0x1]  ;;  %1044 = vst [vmem:[%s1763_s1 + $0x1] sm:$0x1] %v224_v24 }
  0x68   :  { %1061 = vst [vmem:[%s1763_s1 + $0x12] sm:$0x1] %v326_v25  ;;  %v632_v38 = vld [vmem:[#allocation0 + $0x228] sm:$0x1]  ;;  %v938_v41 = vld [vmem:[#allocation0 + $0x3c0] sm:$0x1] }
  0x69   :  { %1078 = vst [vmem:[%s1763_s1 + $0x23] sm:$0x1] %v428_v26  ;;  %v734_v39 = vld [vmem:[#allocation0 + $0x2b0] sm:$0x1]  ;;  %v836_v40 = vld [vmem:[#allocation0 + $0x338] sm:$0x1] }
  0x6a   :  { %1095 = vst [vmem:[%s1763_s1 + $0x34] sm:$0x1] %v530_v37 }
  0x6b   :  { %1112 = vst [vmem:[%s1763_s1 + $0x45] sm:$0x1] %v632_v38 }
  0x6c   :  { %1129 = vst [vmem:[%s1763_s1 + $0x56] sm:$0x1] %v734_v39 }
  0x6d   :  { %1146 = vst [vmem:[%s1763_s1 + $0x67] sm:$0x1] %v836_v40 }
  0x6e   :  { %1163 = vst [vmem:[%s1763_s1 + $0x78] sm:$0x1] %v938_v41  ;;  %v1388_v59 = vpop.permute.xlu2 %75  }
  0x6f   :  { %42 = vst.msk [vmem:[#allocation0 + $0x1e0] ss:$-408 sm:$0x3] %vm3_vm2, %v1290_v28  }
  0x70   :  { %44 = vst.msk [vmem:[#allocation0 - $0x40] ss:$136 sm:$0xc] %vm3_vm2, %v1290_v28  }
  0x71   :  { %46 = vst.msk [vmem:[#allocation0 + $0xa60] ss:$-408 sm:$0x30] %vm3_vm2, %v1290_v28  }
  0x72   :  { %48 = vst.msk [vmem:[#allocation0 - $0x40] ss:$136 sm:$0xc0] %vm3_vm2, %v1290_v28  }
  0x73   :  { %79 = vst.msk [vmem:[#allocation0 + $0xa0] ss:$136 sm:$0x7] %vm3_vm2, %v1388_v59  }
  0x74   :  { %81 = vst.msk [vmem:[#allocation0 - $0x7e0] ss:$680 sm:$0x18] %vm3_vm2, %v1388_v59  }
  0x75   :  { %v172_v13 = vpop.permute.xlu0 %171   ;;  %v1260_v14 = vpop.permute.xlu1 %8   ;;  %83 = vst.msk [vmem:[#allocation0 + $0xa0] ss:$136 sm:$0x60] %vm3_vm2, %v1388_v59  }
  0x76   :  { %175 = vst.msk [vmem:[#allocation0 + $0xc0] ss:$136 sm:$0x7] %vm173_vm3, %v172_v13   ;;  %v272_v61 = vld [vmem:[#allocation0 + $0x48] sm:$0x1] }
  0x77   :  { %177 = vst.msk [vmem:[#allocation0 - $0x7c0] ss:$680 sm:$0x18] %vm173_vm3, %v172_v13   ;;  %v578_v62 = vld [vmem:[#allocation0 + $0x1e0] sm:$0x1] }
  0x78   :  { %179 = vst.msk [vmem:[#allocation0 + $0xc0] ss:$136 sm:$0x60] %vm173_vm3, %v172_v13   ;;  %v374_v0 = vld [vmem:[#allocation0 + $0xd0] sm:$0x1] }
  0x79   :  { %181 = vst.msk [vmem:[#allocation0 + $0x251] sm:$0x80] %vm173_vm3, %v172_v13   ;;  %v476_v1 = vld [vmem:[#allocation0 + $0x158] sm:$0x1]  ;;  %v680_v2 = vld [vmem:[#allocation0 + $0x268] sm:$0x1] }
  0x7a   :  { %184 = vst.msk [vmem:[#allocation0 + $0xc0] ss:$136 sm:$0x7] %vm182_vm4, %v172_v13   ;;  %v782_v3 = vld [vmem:[#allocation0 + $0x2f0] sm:$0x1] }
  0x7b   :  { %186 = vst.msk [vmem:[#allocation0 - $0x7c0] ss:$680 sm:$0x18] %vm182_vm4, %v172_v13   ;;  %v884_v4 = vld [vmem:[#allocation0 + $0x378] sm:$0x1] }
  0x7c   :  { %188 = vst.msk [vmem:[#allocation0 + $0xc0] ss:$136 sm:$0x60] %vm182_vm4, %v172_v13   ;;  %v986_v5 = vld [vmem:[#allocation0 + $0x400] sm:$0x1] }
  0x7d   :  { %190 = vst.msk [vmem:[#allocation0 + $0x251] sm:$0x80] %vm182_vm4, %v172_v13   ;;  %v198_v15 = vpop.permute.xlu0 %197   ;;  %v18_v42 = vpop.permute.xlu1 %17   ;;  %v236_v25 = vld [vmem:[#allocation0 + $0x18] sm:$0x1]  ;;  %v338_v26 = vld [vmem:[#allocation0 + $0xa0] sm:$0x1] }
  0x7e   :  { %201 = vst.msk [vmem:[#allocation0 + $0x100] ss:$136 sm:$0x7] %vm199_vm5, %v198_v15   ;;  %v542_v28 = vld [vmem:[#allocation0 + $0x1b0] sm:$0x1] }
  0x7f   :  { %203 = vst.msk [vmem:[#allocation0 - $0x780] ss:$680 sm:$0x18] %vm199_vm5, %v198_v15  }
  0x80   :  { %205 = vst.msk [vmem:[#allocation0 + $0x100] ss:$136 sm:$0x60] %vm199_vm5, %v198_v15  }
  0x81   :  { %v362_v16 = vld [vmem:[#allocation0 + $0xc0] sm:$0x1]  ;;  %v464_v17 = vld [vmem:[#allocation0 + $0x148] sm:$0x1]  ;;  %v566_v19 = vld [vmem:[#allocation0 + $0x1d0] sm:$0x1] }
  0x82   :  { %v260_v18 = vld [vmem:[#allocation0 + $0x38] sm:$0x1]  ;;  %1067 = vst [vmem:[%s1763_s1 + $0x18] sm:$0x1] %v362_v16  ;;  %v770_v21 = vld [vmem:[#allocation0 + $0x2e0] sm:$0x1] }
  0x83   :  { %1050 = vst [vmem:[%s1763_s1 + $0x7] sm:$0x1] %v260_v18  ;;  %v872_v22 = vld [vmem:[#allocation0 + $0x368] sm:$0x1]  ;;  %v974_v23 = vld [vmem:[#allocation0 + $0x3f0] sm:$0x1] }
  0x84   :  { %1084 = vst [vmem:[%s1763_s1 + $0x29] sm:$0x1] %v464_v17  ;;  %v668_v20 = vld [vmem:[#allocation0 + $0x258] sm:$0x1] }
  0x85   :  { %1101 = vst [vmem:[%s1763_s1 + $0x3a] sm:$0x1] %v566_v19  ;;  %v51_v27 = vpop.permute.xlu0 %50   ;;  %v1414_v63 = vpop.permute.xlu1 %63  }
  0x86   :  { %1118 = vst [vmem:[%s1763_s1 + $0x4b] sm:$0x1] %v668_v20 }
  0x87   :  { %1135 = vst [vmem:[%s1763_s1 + $0x5c] sm:$0x1] %v770_v21  ;;  %v1480_v21 = vpop.permute.xlu2 %109  }
  0x88   :  { %1152 = vst [vmem:[%s1763_s1 + $0x6d] sm:$0x1] %v872_v22 }
  0x89   :  { %1169 = vst [vmem:[%s1763_s1 + $0x7e] sm:$0x1] %v974_v23 }
  0x8a   :  { %207 = vst.msk [vmem:[#allocation0 + $0x291] sm:$0x80] %vm199_vm5, %v198_v15  }
  0x8b   :  { %210 = vst.msk [vmem:[#allocation0 + $0x100] ss:$136 sm:$0x7] %vm208_vm6, %v198_v15  }
  0x8c   :  { %212 = vst.msk [vmem:[#allocation0 - $0x780] ss:$680 sm:$0x18] %vm208_vm6, %v198_v15  }
  0x8d   :  { %214 = vst.msk [vmem:[#allocation0 + $0x100] ss:$136 sm:$0x60] %vm208_vm6, %v198_v15   ;;  %v1365_v51 = vpop.permute.xlu0 %88  }
  0x8e   :  { %216 = vst.msk [vmem:[#allocation0 + $0x291] sm:$0x80] %vm208_vm6, %v198_v15  }
  0x8f   :  { %12 = vst.msk [vmem:[#allocation0 + $0x40] ss:$136 sm:$0xf] %vm3_vm2, %v1260_v14  }
  0x90   :  { %14 = vst.msk [vmem:[#allocation0 + $0x40] ss:$136 sm:$0xf0] %vm3_vm2, %v1260_v14  }
  0x91   :  { %54 = vst.msk [vmem:[#allocation0 + $0x120] ss:$136 sm:$0x3] %vm3_vm2, %v51_v27  }
  0x92   :  { %v410_v29 = vld [vmem:[#allocation0 + $0x100] sm:$0x1]  ;;  %v512_v30 = vld [vmem:[#allocation0 + $0x188] sm:$0x1]  ;;  %v614_v32 = vld [vmem:[#allocation0 + $0x210] sm:$0x1] }
  0x93   :  { %v308_v31 = vld [vmem:[#allocation0 + $0x78] sm:$0x1]  ;;  %1075 = vst [vmem:[%s1763_s1 + $0x20] sm:$0x1] %v410_v29  ;;  %v818_v34 = vld [vmem:[#allocation0 + $0x320] sm:$0x1] }
  0x94   :  { %1058 = vst [vmem:[%s1763_s1 + $0xf] sm:$0x1] %v308_v31  ;;  %v920_v35 = vld [vmem:[#allocation0 + $0x3a8] sm:$0x1]  ;;  %v1022_v36 = vld [vmem:[#allocation0 + $0x430] sm:$0x1] }
  0x95   :  { %1092 = vst [vmem:[%s1763_s1 + $0x31] sm:$0x1] %v512_v30  ;;  %v716_v33 = vld [vmem:[#allocation0 + $0x298] sm:$0x1]  ;;  %v118_v16 = vpop.permute.xlu0 %117   ;;  %v746_v29 = vld [vmem:[#allocation0 + $0x2c0] sm:$0x1] }
  0x96   :  { %1109 = vst [vmem:[%s1763_s1 + $0x42] sm:$0x1] %v614_v32  ;;  %v266_v43 = vld [vmem:[#allocation0 + $0x40] sm:$0x1]  ;;  %v368_v44 = vld [vmem:[#allocation0 + $0xc8] sm:$0x1] }
  0x97   :  { %1126 = vst [vmem:[%s1763_s1 + $0x53] sm:$0x1] %v716_v33  ;;  %v470_v45 = vld [vmem:[#allocation0 + $0x150] sm:$0x1]  ;;  %v572_v46 = vld [vmem:[#allocation0 + $0x1d8] sm:$0x1]  ;;  %v101_v33 = vpop.permute.xlu1 %100  }
  0x98   :  { %1143 = vst [vmem:[%s1763_s1 + $0x64] sm:$0x1] %v818_v34  ;;  %v674_v47 = vld [vmem:[#allocation0 + $0x260] sm:$0x1]  ;;  %v776_v48 = vld [vmem:[#allocation0 + $0x2e8] sm:$0x1] }
  0x99   :  { %1160 = vst [vmem:[%s1763_s1 + $0x75] sm:$0x1] %v920_v35  ;;  %v878_v49 = vld [vmem:[#allocation0 + $0x370] sm:$0x1]  ;;  %v980_v50 = vld [vmem:[#allocation0 + $0x3f8] sm:$0x1] }
  0x9a   :  { %1177 = vst [vmem:[%s1763_s1 + $0x86] sm:$0x1] %v1022_v36  ;;  %v434_v54 = vld [vmem:[#allocation0 + $0x120] sm:$0x1]  ;;  %v536_v55 = vld [vmem:[#allocation0 + $0x1a8] sm:$0x1] }
  0x9b   :  { %56 = vst.msk [vmem:[#allocation0 - $0x100] ss:$136 sm:$0xc] %vm3_vm2, %v51_v27   ;;  %v848_v30 = vld [vmem:[#allocation0 + $0x348] sm:$0x1] }
  0x9c   :  { %58 = vst.msk [vmem:[#allocation0 + $0x120] ss:$136 sm:$0x30] %vm3_vm2, %v51_v27   ;;  %v950_v31 = vld [vmem:[#allocation0 + $0x3d0] sm:$0x1] }
  0x9d   :  { %60 = vst.msk [vmem:[#allocation0 - $0x100] ss:$136 sm:$0xc0] %vm3_vm2, %v51_v27   ;;  %v440_v27 = vld [vmem:[#allocation0 + $0x128] sm:$0x1] }
  0x9e   :  { %1051 = vst [vmem:[%s1763_s1 + $0x8] sm:$0x1] %v266_v43 }
  0x9f   :  { %1068 = vst [vmem:[%s1763_s1 + $0x19] sm:$0x1] %v368_v44 }
  0xa0   :  { %1085 = vst [vmem:[%s1763_s1 + $0x2a] sm:$0x1] %v470_v45  ;;  %v156_v45 = vpop.permute.xlu0 %155  }
  0xa1   :  { %1102 = vst [vmem:[%s1763_s1 + $0x3b] sm:$0x1] %v572_v46 }
  0xa2   :  { %1119 = vst [vmem:[%s1763_s1 + $0x4c] sm:$0x1] %v674_v47  ;;  %v230_v52 = vld [vmem:[#allocation0 + $0x10] sm:$0x1]  ;;  %v332_v53 = vld [vmem:[#allocation0 + $0x98] sm:$0x1] }
  0xa3   :  { %1136 = vst [vmem:[%s1763_s1 + $0x5d] sm:$0x1] %v776_v48  ;;  %v842_v58 = vld [vmem:[#allocation0 + $0x340] sm:$0x1]  ;;  %v944_v60 = vld [vmem:[#allocation0 + $0x3c8] sm:$0x1]  ;;  %v1568_v48 = vpop.permute.xlu2 %142  }
  0xa4   :  { %1153 = vst [vmem:[%s1763_s1 + $0x6e] sm:$0x1] %v878_v49  ;;  %v638_v56 = vld [vmem:[#allocation0 + $0x230] sm:$0x1]  ;;  %v740_v57 = vld [vmem:[#allocation0 + $0x2b8] sm:$0x1] }
  0xa5   :  { %1170 = vst [vmem:[%s1763_s1 + $0x7f] sm:$0x1] %v980_v50 }
  0xa6   :  { %1045 = vst [vmem:[%s1763_s1 + $0x2] sm:$0x1] %v230_v52 }
  0xa7   :  { %1062 = vst [vmem:[%s1763_s1 + $0x13] sm:$0x1] %v332_v53 }
  0xa8   :  { %1079 = vst [vmem:[%s1763_s1 + $0x24] sm:$0x1] %v434_v54 }
  0xa9   :  { %1096 = vst [vmem:[%s1763_s1 + $0x35] sm:$0x1] %v536_v55 }
  0xaa   :  { %1113 = vst [vmem:[%s1763_s1 + $0x46] sm:$0x1] %v638_v56  ;;  %v1600_v56 = vpop.permute.xlu1 %130  }
  0xab   :  { %1130 = vst [vmem:[%s1763_s1 + $0x57] sm:$0x1] %v740_v57 }
  0xac   :  { %1147 = vst [vmem:[%s1763_s1 + $0x68] sm:$0x1] %v842_v58 }
  0xad   :  { %1164 = vst [vmem:[%s1763_s1 + $0x79] sm:$0x1] %v944_v60 }
  0xae   :  { %1052 = vst [vmem:[%s1763_s1 + $0x9] sm:$0x1] %v272_v61 }
  0xaf   :  { %1103 = vst [vmem:[%s1763_s1 + $0x3c] sm:$0x1] %v578_v62 }
  0xb0   :  { %21 = vst.msk [vmem:[#allocation0 + $0x80] ss:$136 sm:$0xf] %vm3_vm2, %v18_v42  }
  0xb1   :  { %23 = vst.msk [vmem:[#allocation0 + $0x80] ss:$136 sm:$0xf0] %vm3_vm2, %v18_v42  }
  0xb2   :  { %98 = vst.msk [vmem:[#allocation0 + $0x271] sm:$0x80] %vm3_vm2, %v1365_v51  }
  0xb3   :  { %1069 = vst [vmem:[%s1763_s1 + $0x1a] sm:$0x1] %v374_v0 }
  0xb4   :  { %1086 = vst [vmem:[%s1763_s1 + $0x2b] sm:$0x1] %v476_v1 }
  0xb5   :  { %1120 = vst [vmem:[%s1763_s1 + $0x4d] sm:$0x1] %v680_v2 }
  0xb6   :  { %1137 = vst [vmem:[%s1763_s1 + $0x5e] sm:$0x1] %v782_v3 }
  0xb7   :  { %1154 = vst [vmem:[%s1763_s1 + $0x6f] sm:$0x1] %v884_v4  ;;  %v314_v6 = vld [vmem:[#allocation0 + $0x80] sm:$0x1]  ;;  %v416_v7 = vld [vmem:[#allocation0 + $0x108] sm:$0x1] }
  0xb8   :  { %1171 = vst [vmem:[%s1763_s1 + $0x80] sm:$0x1] %v986_v5  ;;  %v518_v8 = vld [vmem:[#allocation0 + $0x190] sm:$0x1]  ;;  %v620_v9 = vld [vmem:[#allocation0 + $0x218] sm:$0x1] }
  0xb9   :  { %1059 = vst [vmem:[%s1763_s1 + $0x10] sm:$0x1] %v314_v6  ;;  %v722_v10 = vld [vmem:[#allocation0 + $0x2a0] sm:$0x1]  ;;  %v824_v12 = vld [vmem:[#allocation0 + $0x328] sm:$0x1] }
  0xba   :  { %1076 = vst [vmem:[%s1763_s1 + $0x21] sm:$0x1] %v416_v7  ;;  %v926_v13 = vld [vmem:[#allocation0 + $0x3b0] sm:$0x1]  ;;  %v1028_v14 = vld [vmem:[#allocation0 + $0x438] sm:$0x1] }
  0xbb   :  { %1093 = vst [vmem:[%s1763_s1 + $0x32] sm:$0x1] %v518_v8  ;;  %v692_v15 = vld [vmem:[#allocation0 + $0x278] sm:$0x1] }
  0xbc   :  { %1110 = vst [vmem:[%s1763_s1 + $0x43] sm:$0x1] %v620_v9 }
  0xbd   :  { %1127 = vst [vmem:[%s1763_s1 + $0x54] sm:$0x1] %v722_v10 }
  0xbe   :  { %1144 = vst [vmem:[%s1763_s1 + $0x65] sm:$0x1] %v824_v12  ;;  %v219_v12 = vld [vmem:[#allocation0] sm:$0x1] }
  0xbf   :  { %1161 = vst [vmem:[%s1763_s1 + $0x76] sm:$0x1] %v926_v13 }
  0xc0   :  { %1178 = vst [vmem:[%s1763_s1 + $0x87] sm:$0x1] %v1028_v14 }
  0xc1   :  { %92 = vst.msk [vmem:[#allocation0 + $0xe0] ss:$136 sm:$0x7] %vm3_vm2, %v1365_v51  }
  0xc2   :  { %94 = vst.msk [vmem:[#allocation0 - $0x7a0] ss:$680 sm:$0x18] %vm3_vm2, %v1365_v51  }
  0xc3   :  { %96 = vst.msk [vmem:[#allocation0 + $0xe0] ss:$136 sm:$0x60] %vm3_vm2, %v1365_v51  }
  0xc4   :  { %1122 = vst [vmem:[%s1763_s1 + $0x4f] sm:$0x1] %v692_v15  ;;  %v320_v15 = vld [vmem:[#allocation0 + $0x88] sm:$0x1] }
  0xc5   :  { %85 = vst.msk [vmem:[#allocation0 + $0x231] sm:$0x80] %vm3_vm2, %v1388_v59  }
  0xc6   :  { %1046 = vst [vmem:[%s1763_s1 + $0x3] sm:$0x1] %v236_v25 }
  0xc7   :  { %1063 = vst [vmem:[%s1763_s1 + $0x14] sm:$0x1] %v338_v26 }
  0xc8   :  { %v386_v17 = vld [vmem:[#allocation0 + $0xe0] sm:$0x1]  ;;  %v488_v18 = vld [vmem:[#allocation0 + $0x168] sm:$0x1]  ;;  %v590_v20 = vld [vmem:[#allocation0 + $0x1f0] sm:$0x1] }
  0xc9   :  { %v284_v19 = vld [vmem:[#allocation0 + $0x58] sm:$0x1]  ;;  %1071 = vst [vmem:[%s1763_s1 + $0x1c] sm:$0x1] %v386_v17  ;;  %v794_v22 = vld [vmem:[#allocation0 + $0x300] sm:$0x1] }
  0xca   :  { %1054 = vst [vmem:[%s1763_s1 + $0xb] sm:$0x1] %v284_v19  ;;  %v896_v23 = vld [vmem:[#allocation0 + $0x388] sm:$0x1]  ;;  %v998_v24 = vld [vmem:[#allocation0 + $0x410] sm:$0x1] }
  0xcb   :  { %1088 = vst [vmem:[%s1763_s1 + $0x2d] sm:$0x1] %v488_v18 }
  0xcc   :  { %1105 = vst [vmem:[%s1763_s1 + $0x3e] sm:$0x1] %v590_v20  ;;  %v644_v32 = vld [vmem:[#allocation0 + $0x238] sm:$0x1] }
  0xcd   :  { %1139 = vst [vmem:[%s1763_s1 + $0x60] sm:$0x1] %v794_v22 }
  0xce   :  { %1156 = vst [vmem:[%s1763_s1 + $0x71] sm:$0x1] %v896_v23 }
  0xcf   :  { %1173 = vst [vmem:[%s1763_s1 + $0x82] sm:$0x1] %v998_v24 }
  0xd0   :  { %1080 = vst [vmem:[%s1763_s1 + $0x25] sm:$0x1] %v440_v27 }
  0xd1   :  { %1097 = vst [vmem:[%s1763_s1 + $0x36] sm:$0x1] %v542_v28 }
  0xd2   :  { %1131 = vst [vmem:[%s1763_s1 + $0x58] sm:$0x1] %v746_v29 }
  0xd3   :  { %1148 = vst [vmem:[%s1763_s1 + $0x69] sm:$0x1] %v848_v30  ;;  %v422_v30 = vld [vmem:[#allocation0 + $0x110] sm:$0x1] }
  0xd4   :  { %1165 = vst [vmem:[%s1763_s1 + $0x7a] sm:$0x1] %v950_v31 }
  0xd5   :  { %1114 = vst [vmem:[%s1763_s1 + $0x47] sm:$0x1] %v644_v32 }
  0xd6   :  { %67 = vst.msk [vmem:[#allocation0 + $0x160] ss:$136 sm:$0x3] %vm3_vm2, %v1414_v63  }
  0xd7   :  { %69 = vst.msk [vmem:[#allocation0 - $0xc0] ss:$136 sm:$0xc] %vm3_vm2, %v1414_v63  }
  0xd8   :  { %71 = vst.msk [vmem:[#allocation0 + $0x160] ss:$136 sm:$0x30] %vm3_vm2, %v1414_v63  }
  0xd9   :  { %73 = vst.msk [vmem:[#allocation0 - $0xc0] ss:$136 sm:$0xc0] %vm3_vm2, %v1414_v63  }
  0xda   :  { %121 = vst.msk [vmem:[#allocation0 + $0x1c0] ss:$-408 sm:$0x3] %vm3_vm2, %v118_v16  }
  0xdb   :  { %123 = vst.msk [vmem:[#allocation0 - $0x60] ss:$136 sm:$0xc] %vm3_vm2, %v118_v16  }
  0xdc   :  { %125 = vst.msk [vmem:[#allocation0 + $0xa40] ss:$-408 sm:$0x30] %vm3_vm2, %v118_v16  }
  0xdd   :  { %v482_v34 = vld [vmem:[#allocation0 + $0x160] sm:$0x1]  ;;  %v584_v35 = vld [vmem:[#allocation0 + $0x1e8] sm:$0x1]  ;;  %222 = vst [vmem:[%s1763_s1] sm:$0x1] %v219_v12 }
  0xde   :  { %v278_v36 = vld [vmem:[#allocation0 + $0x50] sm:$0x1]  ;;  %v380_v37 = vld [vmem:[#allocation0 + $0xd8] sm:$0x1]  ;;  %1087 = vst [vmem:[%s1763_s1 + $0x2c] sm:$0x1] %v482_v34 }
  0xdf   :  { %1053 = vst [vmem:[%s1763_s1 + $0xa] sm:$0x1] %v278_v36  ;;  %v890_v40 = vld [vmem:[#allocation0 + $0x380] sm:$0x1]  ;;  %v992_v41 = vld [vmem:[#allocation0 + $0x408] sm:$0x1] }
  0xe0   :  { %1070 = vst [vmem:[%s1763_s1 + $0x1b] sm:$0x1] %v380_v37  ;;  %v686_v38 = vld [vmem:[#allocation0 + $0x270] sm:$0x1]  ;;  %v788_v39 = vld [vmem:[#allocation0 + $0x2f8] sm:$0x1] }
  0xe1   :  { %1104 = vst [vmem:[%s1763_s1 + $0x3d] sm:$0x1] %v584_v35  ;;  %v248_v42 = vld [vmem:[#allocation0 + $0x28] sm:$0x1]  ;;  %v554_v46 = vld [vmem:[#allocation0 + $0x1c0] sm:$0x1] }
  0xe2   :  { %1121 = vst [vmem:[%s1763_s1 + $0x4e] sm:$0x1] %v686_v38  ;;  %v350_v43 = vld [vmem:[#allocation0 + $0xb0] sm:$0x1]  ;;  %v452_v44 = vld [vmem:[#allocation0 + $0x138] sm:$0x1] }
  0xe3   :  { %1138 = vst [vmem:[%s1763_s1 + $0x5f] sm:$0x1] %v788_v39  ;;  %v656_v47 = vld [vmem:[#allocation0 + $0x248] sm:$0x1]  ;;  %v962_v49 = vld [vmem:[#allocation0 + $0x3e0] sm:$0x1] }
  0xe4   :  { %1155 = vst [vmem:[%s1763_s1 + $0x70] sm:$0x1] %v890_v40  ;;  %v728_v34 = vld [vmem:[#allocation0 + $0x2a8] sm:$0x1]  ;;  %v830_v35 = vld [vmem:[#allocation0 + $0x330] sm:$0x1] }
  0xe5   :  { %1172 = vst [vmem:[%s1763_s1 + $0x81] sm:$0x1] %v992_v41  ;;  %v932_v36 = vld [vmem:[#allocation0 + $0x3b8] sm:$0x1] }
  0xe6   :  { %127 = vst.msk [vmem:[#allocation0 - $0x60] ss:$136 sm:$0xc0] %vm3_vm2, %v118_v16  }
  0xe7   :  { %1048 = vst [vmem:[%s1763_s1 + $0x5] sm:$0x1] %v248_v42 }
  0xe8   :  { %1065 = vst [vmem:[%s1763_s1 + $0x16] sm:$0x1] %v350_v43 }
  0xe9   :  { %1082 = vst [vmem:[%s1763_s1 + $0x27] sm:$0x1] %v452_v44 }
  0xea   :  { %1099 = vst [vmem:[%s1763_s1 + $0x38] sm:$0x1] %v554_v46 }
  0xeb   :  { %1116 = vst [vmem:[%s1763_s1 + $0x49] sm:$0x1] %v656_v47 }
  0xec   :  { %1167 = vst [vmem:[%s1763_s1 + $0x7c] sm:$0x1] %v962_v49 }
  0xed   :  { %v758_v50 = vld [vmem:[#allocation0 + $0x2d0] sm:$0x1]  ;;  %v860_v51 = vld [vmem:[#allocation0 + $0x358] sm:$0x1]  ;;  %1060 = vst [vmem:[%s1763_s1 + $0x11] sm:$0x1] %v320_v15 }
  0xee   :  { %1133 = vst [vmem:[%s1763_s1 + $0x5a] sm:$0x1] %v758_v50 }
  0xef   :  { %1150 = vst [vmem:[%s1763_s1 + $0x6b] sm:$0x1] %v860_v51 }
  0xf0   :  { %113 = vst.msk [vmem:[#allocation0 + $0x60] ss:$136 sm:$0xf] %vm3_vm2, %v1480_v21  }
  0xf1   :  { %115 = vst.msk [vmem:[#allocation0 + $0x60] ss:$136 sm:$0xf0] %vm3_vm2, %v1480_v21  }
  0xf2   :  { %104 = vst.msk [vmem:[#allocation0 + $0x20] ss:$136 sm:$0xf] %vm3_vm2, %v101_v33  }
  0xf3   :  { %106 = vst.msk [vmem:[#allocation0 + $0x20] ss:$136 sm:$0xf0] %vm3_vm2, %v101_v33   ;;  %v524_v33 = vld [vmem:[#allocation0 + $0x198] sm:$0x1] }
  0xf4   :  { %159 = vst.msk [vmem:[#allocation0 + $0x180] ss:$136 sm:$0x3] %vm3_vm2, %v156_v45  }
  0xf5   :  { %161 = vst.msk [vmem:[#allocation0 - $0xa0] ss:$136 sm:$0xc] %vm3_vm2, %v156_v45  }
  0xf6   :  { %163 = vst.msk [vmem:[#allocation0 + $0x180] ss:$136 sm:$0x30] %vm3_vm2, %v156_v45  }
  0xf7   :  { %v290_v52 = vld [vmem:[#allocation0 + $0x60] sm:$0x1]  ;;  %v392_v53 = vld [vmem:[#allocation0 + $0xe8] sm:$0x1]  ;;  %v494_v54 = vld [vmem:[#allocation0 + $0x170] sm:$0x1] }
  0xf8   :  { %1055 = vst [vmem:[%s1763_s1 + $0xc] sm:$0x1] %v290_v52  ;;  %v596_v55 = vld [vmem:[#allocation0 + $0x1f8] sm:$0x1]  ;;  %v698_v57 = vld [vmem:[#allocation0 + $0x280] sm:$0x1] }
  0xf9   :  { %1072 = vst [vmem:[%s1763_s1 + $0x1d] sm:$0x1] %v392_v53  ;;  %v800_v58 = vld [vmem:[#allocation0 + $0x308] sm:$0x1]  ;;  %v902_v59 = vld [vmem:[#allocation0 + $0x390] sm:$0x1] }
  0xfa   :  { %1089 = vst [vmem:[%s1763_s1 + $0x2e] sm:$0x1] %v494_v54  ;;  %v1004_v60 = vld [vmem:[#allocation0 + $0x418] sm:$0x1]  ;;  %v242_v61 = vld [vmem:[#allocation0 + $0x20] sm:$0x1] }
  0xfb   :  { %1106 = vst [vmem:[%s1763_s1 + $0x3f] sm:$0x1] %v596_v55  ;;  %v344_v62 = vld [vmem:[#allocation0 + $0xa8] sm:$0x1]  ;;  %v446_v63 = vld [vmem:[#allocation0 + $0x130] sm:$0x1] }
  0xfc   :  { %1123 = vst [vmem:[%s1763_s1 + $0x50] sm:$0x1] %v698_v57  ;;  %v548_v0 = vld [vmem:[#allocation0 + $0x1b8] sm:$0x1]  ;;  %v650_v1 = vld [vmem:[#allocation0 + $0x240] sm:$0x1] }
  0xfd   :  { %1140 = vst [vmem:[%s1763_s1 + $0x61] sm:$0x1] %v800_v58  ;;  %v752_v2 = vld [vmem:[#allocation0 + $0x2c8] sm:$0x1]  ;;  %v854_v3 = vld [vmem:[#allocation0 + $0x350] sm:$0x1] }
  0xfe   :  { %1157 = vst [vmem:[%s1763_s1 + $0x72] sm:$0x1] %v902_v59  ;;  %v956_v4 = vld [vmem:[#allocation0 + $0x3d8] sm:$0x1]  ;;  %v302_v5 = vld [vmem:[#allocation0 + $0x70] sm:$0x1] }
  0xff   :  { %1174 = vst [vmem:[%s1763_s1 + $0x83] sm:$0x1] %v1004_v60  ;;  %v404_v6 = vld [vmem:[#allocation0 + $0xf8] sm:$0x1]  ;;  %v506_v7 = vld [vmem:[#allocation0 + $0x180] sm:$0x1] }
 0x100   :  { %1047 = vst [vmem:[%s1763_s1 + $0x4] sm:$0x1] %v242_v61  ;;  %v608_v8 = vld [vmem:[#allocation0 + $0x208] sm:$0x1]  ;;  %v914_v9 = vld [vmem:[#allocation0 + $0x3a0] sm:$0x1] }
 0x101   :  { %1064 = vst [vmem:[%s1763_s1 + $0x15] sm:$0x1] %v344_v62  ;;  %v1016_v10 = vld [vmem:[#allocation0 + $0x428] sm:$0x1] }
 0x102   :  { %1081 = vst [vmem:[%s1763_s1 + $0x26] sm:$0x1] %v446_v63 }
 0x103   :  { %1098 = vst [vmem:[%s1763_s1 + $0x37] sm:$0x1] %v548_v0 }
 0x104   :  { %1115 = vst [vmem:[%s1763_s1 + $0x48] sm:$0x1] %v650_v1 }
 0x105   :  { %1132 = vst [vmem:[%s1763_s1 + $0x59] sm:$0x1] %v752_v2 }
 0x106   :  { %1149 = vst [vmem:[%s1763_s1 + $0x6a] sm:$0x1] %v854_v3 }
 0x107   :  { %1166 = vst [vmem:[%s1763_s1 + $0x7b] sm:$0x1] %v956_v4 }
 0x108   :  { %165 = vst.msk [vmem:[#allocation0 - $0xa0] ss:$136 sm:$0xc0] %vm3_vm2, %v156_v45  }
 0x109   :  { %1057 = vst [vmem:[%s1763_s1 + $0xe] sm:$0x1] %v302_v5 }
 0x10a   :  { %1074 = vst [vmem:[%s1763_s1 + $0x1f] sm:$0x1] %v404_v6 }
 0x10b   :  { %1091 = vst [vmem:[%s1763_s1 + $0x30] sm:$0x1] %v506_v7 }
 0x10c   :  { %1108 = vst [vmem:[%s1763_s1 + $0x41] sm:$0x1] %v608_v8 }
 0x10d   :  { %1159 = vst [vmem:[%s1763_s1 + $0x74] sm:$0x1] %v914_v9 }
 0x10e   :  { %1176 = vst [vmem:[%s1763_s1 + $0x85] sm:$0x1] %v1016_v10 }
 0x10f   :  { %v710_v13 = vld [vmem:[#allocation0 + $0x290] sm:$0x1]  ;;  %v812_v14 = vld [vmem:[#allocation0 + $0x318] sm:$0x1]  ;;  %1077 = vst [vmem:[%s1763_s1 + $0x22] sm:$0x1] %v422_v30 }
 0x110   :  { %1125 = vst [vmem:[%s1763_s1 + $0x52] sm:$0x1] %v710_v13 }
 0x111   :  { %1142 = vst [vmem:[%s1763_s1 + $0x63] sm:$0x1] %v812_v14 }
 0x112   :  { %146 = vst.msk [vmem:[#allocation0 + $0x140] ss:$136 sm:$0x3] %vm3_vm2, %v1568_v48  }
 0x113   :  { %148 = vst.msk [vmem:[#allocation0 - $0xe0] ss:$136 sm:$0xc] %vm3_vm2, %v1568_v48  }
 0x114   :  { %150 = vst.msk [vmem:[#allocation0 + $0x140] ss:$136 sm:$0x30] %vm3_vm2, %v1568_v48  }
 0x115   :  { %152 = vst.msk [vmem:[#allocation0 - $0xe0] ss:$136 sm:$0xc0] %vm3_vm2, %v1568_v48  }
 0x116   :  { %134 = vst.msk [vmem:[#allocation0 + $0x200] ss:$-408 sm:$0x3] %vm3_vm2, %v1600_v56  }
 0x117   :  { %136 = vst.msk [vmem:[#allocation0 - $0x20] ss:$136 sm:$0xc] %vm3_vm2, %v1600_v56  }
 0x118   :  { %138 = vst.msk [vmem:[#allocation0 + $0xa80] ss:$-408 sm:$0x30] %vm3_vm2, %v1600_v56  }
 0x119   :  { %v458_v16 = vld [vmem:[#allocation0 + $0x140] sm:$0x1]  ;;  %v560_v17 = vld [vmem:[#allocation0 + $0x1c8] sm:$0x1]  ;;  %1094 = vst [vmem:[%s1763_s1 + $0x33] sm:$0x1] %v524_v33 }
 0x11a   :  { %v254_v18 = vld [vmem:[#allocation0 + $0x30] sm:$0x1]  ;;  %v356_v19 = vld [vmem:[#allocation0 + $0xb8] sm:$0x1]  ;;  %1083 = vst [vmem:[%s1763_s1 + $0x28] sm:$0x1] %v458_v16 }
 0x11b   :  { %1049 = vst [vmem:[%s1763_s1 + $0x6] sm:$0x1] %v254_v18  ;;  %v866_v22 = vld [vmem:[#allocation0 + $0x360] sm:$0x1]  ;;  %v968_v23 = vld [vmem:[#allocation0 + $0x3e8] sm:$0x1] }
 0x11c   :  { %1066 = vst [vmem:[%s1763_s1 + $0x17] sm:$0x1] %v356_v19  ;;  %v662_v20 = vld [vmem:[#allocation0 + $0x250] sm:$0x1]  ;;  %v764_v21 = vld [vmem:[#allocation0 + $0x2d8] sm:$0x1] }
 0x11d   :  { %1100 = vst [vmem:[%s1763_s1 + $0x39] sm:$0x1] %v560_v17  ;;  %v296_v24 = vld [vmem:[#allocation0 + $0x68] sm:$0x1]  ;;  %v602_v27 = vld [vmem:[#allocation0 + $0x200] sm:$0x1] }
 0x11e   :  { %1117 = vst [vmem:[%s1763_s1 + $0x4a] sm:$0x1] %v662_v20  ;;  %v398_v25 = vld [vmem:[#allocation0 + $0xf0] sm:$0x1]  ;;  %v500_v26 = vld [vmem:[#allocation0 + $0x178] sm:$0x1] }
 0x11f   :  { %1134 = vst [vmem:[%s1763_s1 + $0x5b] sm:$0x1] %v764_v21  ;;  %v704_v28 = vld [vmem:[#allocation0 + $0x288] sm:$0x1]  ;;  %v1010_v29 = vld [vmem:[#allocation0 + $0x420] sm:$0x1] }
 0x120   :  { %1151 = vst [vmem:[%s1763_s1 + $0x6c] sm:$0x1] %v866_v22 }
 0x121   :  { %1168 = vst [vmem:[%s1763_s1 + $0x7d] sm:$0x1] %v968_v23 }
 0x122   :  { %140 = vst.msk [vmem:[#allocation0 - $0x20] ss:$136 sm:$0xc0] %vm3_vm2, %v1600_v56  }
 0x123   :  { %1056 = vst [vmem:[%s1763_s1 + $0xd] sm:$0x1] %v296_v24 }
 0x124   :  { %1073 = vst [vmem:[%s1763_s1 + $0x1e] sm:$0x1] %v398_v25 }
 0x125   :  { %1090 = vst [vmem:[%s1763_s1 + $0x2f] sm:$0x1] %v500_v26 }
 0x126   :  { %1107 = vst [vmem:[%s1763_s1 + $0x40] sm:$0x1] %v602_v27 }
 0x127   :  { %1124 = vst [vmem:[%s1763_s1 + $0x51] sm:$0x1] %v704_v28 }
 0x128   :  { %1175 = vst [vmem:[%s1763_s1 + $0x84] sm:$0x1] %v1010_v29 }
 0x129   :  { %v806_v31 = vld [vmem:[#allocation0 + $0x310] sm:$0x1]  ;;  %v908_v32 = vld [vmem:[#allocation0 + $0x398] sm:$0x1]  ;;  %1128 = vst [vmem:[%s1763_s1 + $0x55] sm:$0x1] %v728_v34 }
 0x12a   :  { %1141 = vst [vmem:[%s1763_s1 + $0x62] sm:$0x1] %v806_v31 }
 0x12b   :  { %1158 = vst [vmem:[%s1763_s1 + $0x73] sm:$0x1] %v908_v32 }
 0x12c   :  { %1145 = vst [vmem:[%s1763_s1 + $0x66] sm:$0x1] %v830_v35 }
 0x12d   :  { %1162 = vst [vmem:[%s1763_s1 + $0x77] sm:$0x1] %v932_v36 }

// kernel: forward.1
= control target key start
LH: loop header
LB: loop body
LE: loop exit
PB: predicated region body
PF: predicated region fallthrough
CT: control target
= control target key end

     0   :  { %s7978_s0 = inlined_call_operand.hbm [shape: f32[8,1,144], index: 0, kind: input, shape index: {}]   ;;  %s7979_s1 = inlined_call_operand.hbm [shape: f32[8,1,144], index: 1, kind: input, shape index: {}]   ;;  %s7980_s2 = inlined_call_operand.vmem [shape: f32[8,1,289], index: 2, kind: input, shape index: {}]   ;;  %s7981_s3 = inlined_call_operand.vmem [shape: f32[8,1,384], index: 3, kind: input, shape index: {}]   ;;  %s7982_s4 = inlined_call_operand.hbm [shape: f32[64,1], index: 4, kind: input, shape index: {}]   ;;  %s7983_s5 = inlined_call_operand.vmem [shape: f32[64,1], index: 5, kind: input, shape index: {}]   ;;  %s7984_s6 = inlined_call_operand.vmem [shape: f32[64,1], index: 6, kind: input, shape index: {}]   ;;  %s7985_s7 = inlined_call_operand.hbm [shape: bf16[32,32], index: 7, kind: input, shape index: {}]   ;;  %s7986_s8 = inlined_call_operand.hbm [shape: f32[32,1], index: 8, kind: input, shape index: {}]   ;;  %s7987_s9 = inlined_call_operand.hbm [shape: bf16[144,1024], index: 9, kind: input, shape index: {}]   ;;  %s7988_s10 = inlined_call_operand.vmem [shape: f32[1,512], index: 10, kind: input, shape index: {}]   ;;  %s7989_s11 = inlined_call_operand.vmem [shape: f32[1,512], index: 11, kind: input, shape index: {}]   ;;  %s7990_s12 = inlined_call_operand.vmem [shape: f32[1,144], index: 12, kind: input, shape index: {}]   ;;  %s7991_s13 = inlined_call_operand.vmem [shape: bf16[6,32,32], index: 13, kind: input, shape index: {}]   ;;  %s7992_s14 = inlined_call_operand.vmem [shape: f32[6,32,1], index: 14, kind: input, shape index: {}]   ;;  %s7993_s15 = inlined_call_operand.vmem [shape: bf16[1,32], index: 15, kind: input, shape index: {}]   ;;  %s7994_s16 = inlined_call_operand.vmem [shape: bf16[1,32], index: 16, kind: input, shape index: {}]   ;;  %s7995_s17 = inlined_call_operand.<no memory space> [shape: f32[1,1], index: 17, kind: input, shape index: {}]   ;;  %s7996_s19 = inlined_call_operand.hbm [shape: bf16[144,768], index: 19, kind: input, shape index: {}]   ;;  %s7997_s20 = inlined_call_operand.hbm [shape: bf16[144,768], index: 20, kind: input, shape index: {}]   ;;  %s7998_s21 = inlined_call_operand.vmem [shape: f32[1,768], index: 21, kind: input, shape index: {}]   ;;  %s7999_s22 = inlined_call_operand.vmem [shape: bf16[384,384], index: 22, kind: input, shape index: {}]   ;;  %s8000_s23 = inlined_call_operand.vmem [shape: f32[8,2,384], index: 23, kind: output, shape index: {}]   ;;  %s8001_s18 = inlined_call_operand.<no memory space> [shape: f32[1,1], index: 18, kind: input, shape index: {}]  }
   0x1   :  { %8007 = sst [smem:[#allocation23_spill]] %s7978_s0  ;;  %v28_v0 = vstv %s7995_s17  ;;  %v30_v1 = vstv %s8001_s18 }
   0x2   :  { %8008 = sst [smem:[#allocation24_spill]] %s7979_s1  ;;  %29 = vst [vmem:[#allocation2] sm:$0x1] %v28_v0 }
   0x3   :  { %8009 = sst [smem:[#allocation25_spill]] %s7980_s2  ;;  %31 = vst [vmem:[#allocation3] sm:$0x1] %v30_v1 }
   0x4   :  { %8010 = sst [smem:[#allocation26_spill]] %s7981_s3 }
   0x5   :  { %8011 = sst [smem:[#allocation27_spill]] %s7982_s4 }
   0x6   :  { %8012 = sst [smem:[#allocation28_spill]] %s7983_s5 }
   0x7   :  { %8013 = sst [smem:[#allocation29_spill]] %s7984_s6 }
   0x8   :  { %8014 = sst [smem:[#allocation30_spill]] %s7985_s7 }
   0x9   :  { %8015 = sst [smem:[#allocation31_spill]] %s7986_s8 }
   0xa   :  { %8016 = sst [smem:[#allocation32_spill]] %s7987_s9 }
   0xb   :  { %8017 = sst [smem:[#allocation33_spill]] %s7989_s11 }
   0xc   :  { %8018 = sst [smem:[#allocation34_spill]] %s7990_s12 }
   0xd   :  { %8019 = sst [smem:[#allocation35_spill]] %s7993_s15 }
   0xe   :  { %8020 = sst [smem:[#allocation36_spill]] %s7994_s16 }
   0xf   :  { %8021 = sst [smem:[#allocation37_spill]] %s7996_s19 }
  0x10   :  { %8022 = sst [smem:[#allocation38_spill]] %s7998_s21 }
  0x11   :  { %8023 = sst [smem:[#allocation39_spill]] %s7999_s22 }
  0x12   :  { %8024 = sst [smem:[#allocation40_spill]] %s8000_s23 }
  0x13   :  { %32 = vsyncpa [#allocation5], 0 }
  0x14   :  { %34 = vsyncpa [#allocation5 + $0x1], 0 }
  0x15   :  { %35 = vsyncpa [#allocation7], 0 }
  0x16   :  { %37 = vsyncpa [#allocation7 + $0x1], 0 }
  0x17   :  { %38 = vsyncpa [#allocation10], 0 }
  0x18   :  { %39 = vsyncpa [#allocation13], 0 }
  0x19   :  { %40 = vsyncpa [#allocation16], 0  ;;  %s6746_s5 = smov 0   ;;  %s6748_s1 = smov 0  }
  0x1a   :  { %s6750_s26 = smov 0   ;;  %s6752_s17 = smov 0  }
  0x1b LB: > { %s8025_s6 = sld [smem:[#allocation27_spill]]  ;;  %s6770_s7 = sadd.s32 4294967295, %s6603_s17   ;;  %s6603_s17 = sphi %s6752_s17, %s8050_s17   ;;  %s6599_s26 = sphi %s6750_s26, %s8049_s26   ;;  %s6595_s1 = sphi %s6748_s1, %s8048_s1   ;;  %s6591_s5 = sphi %s6746_s5, %s8047_s5  }
  0x1c   : > { %p4714_p0 = scmp.ge.s32.totalorder %s6603_s17, 1  ;;  %p67_p1 = scmp.eq.s32.totalorder %s6770_s7, 0 }
  0x1d   : > { %p580_p2 = scmp.lt.s32.totalorder %s6603_s17, 9  ;;  %s6605_s29 = smov [#allocation8]  }
  0x1e   : > { %s593_s3 = sshll.u32 %s6605_s29, 4  ;;  %s8027_s30 = sld [smem:[#allocation30_spill]]  ;;  %s594_s3 = int_to_ptr.vmem [resolvable:$true] %s593_s3 }
  0x1f   : > { %p6775_p3 = pnand %p4714_p0, %p580_p2  ;;  %s6606_s18 = smov [#allocation9]  }
  0x20   : > { %s613_s2 = sshll.u32 %s6606_s18, 4  ;;  %s6608_s29 = smov 8   ;;  %s614_s2 = int_to_ptr.vmem [resolvable:$true] %s613_s2 }
  0x21   : > { %s591_s27 = sshll.u32 %s8025_s6, 4  ;;  %p6214_p4 = pneg %p6775_p3  ;;  %s592_s27 = int_to_ptr.hbm [resolvable:$true] %s591_s27 }
  0x22   : > { %s6607_s6 = smov 128   ;;  %s6609_s23 = smov 64  }
  0x23   : > { %p6786_p5 = pnand %p6214_p4, %p67_p1  ;;  %s6610_s21 = smov 4  }
  0x24   : > { %s611_s24 = sshll.u32 %s8027_s30, 4  ;;  %s8029_s9 = sld [smem:[#allocation32_spill]]  ;;  %s612_s24 = int_to_ptr.hbm [resolvable:$true] %s611_s24 }
  0x25   : > { %6217 = dma.hbm_to_vmem [thread:$0]  (!%p6786_p5), %s592_s27, 1024, %s594_s3, [#allocation7], %s6607_s6, %s6607_s6, %s6608_s29  }
  0x26   : > { %6220 = dma.hbm_to_vmem [thread:$0]  (!%p6786_p5), %s612_s24, 256, %s614_s2, [#allocation10], %s6609_s23, %s6609_s23, %s6610_s21  }
  0x27   : > { %s6611_s22 = smov [#allocation12]   ;;  %s8030_s8 = sld [smem:[#allocation31_spill]] }
  0x28   : > { %s641_s16 = sshll.u32 %s6611_s22, 4  ;;  %s6612_s11 = smov 512   ;;  %s642_s16 = int_to_ptr.vmem [resolvable:$true] %s641_s16 }
  0x29   : > { %s6613_s27 = smov 32   ;;  %s6614_s21 = smov [#allocation11]  }
  0x2a   : > { %s639_s30 = sshll.u32 %s8029_s9, 4  ;;  %s627_s23 = sshll.u32 %s6614_s21, 4  ;;  %s640_s30 = int_to_ptr.hbm [resolvable:$true] %s639_s30  ;;  %s628_s23 = int_to_ptr.vmem [resolvable:$true] %s627_s23 }
  0x2b   : > { %6226 = dma.hbm_to_vmem [thread:$0]  (!%p6786_p5), %s640_s30, 9216, %s642_s16, [#allocation13], %s6612_s11, %s6612_s11, %s6613_s27  }
  0x2c   : > { %s8031_s19 = sld [smem:[#allocation37_spill]]  ;;  %s6615_s15 = smov [#allocation14]  }
  0x2d   : > { %s625_s12 = sshll.u32 %s8030_s8, 4  ;;  %s682_s22 = sshll.u32 %s6615_s15, 4  ;;  %s626_s12 = int_to_ptr.hbm [resolvable:$true] %s625_s12  ;;  %s683_s22 = int_to_ptr.vmem [resolvable:$true] %s682_s22 }
  0x2e   : > { %6223 = dma.hbm_to_vmem [thread:$0]  (!%p6786_p5), %s626_s12, 512, %s628_s23, [#allocation10], %s6607_s6, %s6607_s6, %s6608_s29  }
  0x2f   : > { %s694_s0 = sshll.u32 %s7997_s20, 4  ;;  %s6616_s4 = smov 384   ;;  %s695_s0 = int_to_ptr.hbm [resolvable:$true] %s694_s0 }
  0x30   : > { %s6617_s30 = smov 24   ;;  %s6618_s12 = smov [#allocation15]  }
  0x31   : > { %s696_s6 = sshll.u32 %s6618_s12, 4  ;;  %s6815_s29 = sadd.s32 1, %s6603_s17   ;;  %s697_s6 = int_to_ptr.vmem [resolvable:$true] %s696_s6 }
  0x32   : > { %s680_s2 = sshll.u32 %s8031_s19, 4  ;;  %s53_s18 = sadd.s32 1, %s6599_s26  ;;  %s681_s2 = int_to_ptr.hbm [resolvable:$true] %s680_s2 }
  0x33   : > { %6229 = dma.hbm_to_vmem [thread:$0]  (!%p6786_p5), %s681_s2, 6912, %s683_s22, [#allocation13], %s6616_s4, %s6616_s4, %s6617_s30  }
  0x34   : > { %6232 = dma.hbm_to_vmem [thread:$0]  (!%p6786_p5), %s695_s0, 6912, %s697_s6, [#allocation16], %s6616_s4, %s6616_s4, %s6617_s30  }
  0x35   : > { %s50_s27 = ssub.s32 %s6603_s17, %s6815_s29  ;;  %p60_p6 = scmp.ne.s32.totalorder %s6599_s26, %s6595_s1 }
  0x36   : > { %p51_p7 = scmp.eq.s32.totalorder %s50_s27, 0  ;;  %p61_p8 = scmp.eq.s32.totalorder %s6603_s17, 0 }
  0x37   : > { %p66_p9 = scmp.ne.s32.totalorder %s6595_s1, %s6591_s5  ;;  %p6246_p10 = scmp.lt.s32.totalorder %s6603_s17, 8 }
  0x38   : > { %s6827_s21 = scalar_select %p51_p7, %s6599_s26, %s53_s18  }
  0x39   : > { %p62_p11 = por %p61_p8, %p60_p6  ;;  %p6831_p12 = por %p67_p1, %p66_p9 }
  0x3a   : > { %s716_s25 = sand.u32 1, %s6599_s26   ;;  %s4723_s3 = sshll.u32 %s6603_s17, 1 }
  0x3b   : > { %s4722_s24 = sshll.u32 %s716_s25, 1  ;;  %s8033_s22 = sld [smem:[#allocation23_spill]] }
  0x3c   : > { %s720_s0 = scalar_lea.vmem [#allocation4], %s4722_s24  ;;  %p6842_p13 = pnand %p6246_p10, %p62_p11 }
  0x3d   : > { %s728_s5 = sshll.u32 %s720_s0, 4  ;;  %s8035_s6 = sld [smem:[#allocation24_spill]]  ;;  %s729_s5 = int_to_ptr.vmem [resolvable:$true] %s728_s5 }
  0x3e   : > { %s735_s27 = sand.u32 1, %s6603_s17   ;;  %s717_s8 = scalar_lea.sflag [#allocation5], %s716_s25 }
  0x3f   : > { %p6493_p2 = pneg %p6842_p13 }
  0x41   : > { %s724_s11 = scalar_lea.hbm %s8033_s22, %s4723_s3  ;;  %s6496_s9 = scalar_lea.hbm %s8033_s22, 16 }
  0x42   : > { %s726_s16 = sshll.u32 %s724_s11, 4  ;;  %s727_s16 = int_to_ptr.hbm [resolvable:$true] %s726_s16 }
  0x43   : > { %s743_s18 = scalar_lea.hbm %s8035_s6, %s4723_s3  ;;  %s6489_s2 = sshra.s32 %s727_s16, 4  ;;  %s6490_s2 = int_to_ptr.hbm [resolvable:$true] %s6489_s2 }
  0x44   : > { %s6491_s15 = scalar_lea.hbm %s6490_s2, 2  ;;  %p6497_p6 = scmp.lt.s32.totalorder %s6490_s2, %s8033_s22 }
  0x45   : > { %p6492_p0 = scmp.ne.s32.totalorder %s6490_s2, %s6491_s15  ;;  %p6498_p7 = scmp.lt.s32.totalorder %s6496_s9, %s6491_s15 }
  0x47   : > { %p6494_p4 = pnand %p6493_p2, %p6492_p0  ;;  %p6499_p8 = por %p6498_p7, %p6497_p6 }
  0x49   : > { %p6495_p5 = pneg %p6494_p4 }
  0x4b   : > { %p6500_p9 = pnand %p6499_p8, %p6495_p5 }
  0x4d   : > { %6503 = shalt.err (!%p6500_p9)
}
  0x4e   : > { %6236 = dma.hbm_to_vmem [thread:$0]  (!%p6842_p13), %s727_s16, 32, %s729_s5, %s717_s8  }
  0x4f   : > { %s745_s17 = sshll.u32 %s743_s18, 4  ;;  %s739_s25 = scalar_lea.vmem [#allocation6], %s4722_s24  ;;  %s746_s17 = int_to_ptr.hbm [resolvable:$true] %s745_s17 }
  0x50   : > { %s747_s3 = sshll.u32 %s739_s25, 4  ;;  %s736_s19 = scalar_lea.sflag [#allocation7], %s735_s27  ;;  %s748_s3 = int_to_ptr.vmem [resolvable:$true] %s747_s3 }
  0x51   : > { %s6519_s11 = sshra.s32 %s746_s17, 4  ;;  %s6526_s15 = scalar_lea.hbm %s8035_s6, 16  ;;  %s6520_s11 = int_to_ptr.hbm [resolvable:$true] %s6519_s11 }
  0x52   : > { %s6521_s0 = scalar_lea.hbm %s6520_s11, 2  ;;  %p6527_p4 = scmp.lt.s32.totalorder %s6520_s11, %s8035_s6 }
  0x53   : > { %p6522_p10 = scmp.ne.s32.totalorder %s6520_s11, %s6521_s0  ;;  %p6528_p5 = scmp.lt.s32.totalorder %s6526_s15, %s6521_s0 }
  0x55   : > { %p6524_p11 = pnand %p6522_p10, %p6493_p2  ;;  %p6529_p6 = por %p6528_p5, %p6527_p4 }
  0x57   : > { %p6525_p0 = pneg %p6524_p11 }
  0x59   : > { %p6530_p7 = pnand %p6529_p6, %p6525_p0 }
  0x5b   : > { %6533 = shalt.err (!%p6530_p7)
}
  0x5c   : > { %6239 = dma.hbm_to_vmem [thread:$0]  (!%p6842_p13), %s746_s17, 32, %s748_s3, %s736_s19  }
  0x5d   : > { %770 = sbr.rel (%p6775_p3) target bundleno = 2260 (0x8d4), region = 112  ;;  %s772_s24 = sand.u32 (!%p6775_p3), 1, %s6595_s1  }
  0x5e   : > { %s6877_s16 = sshll.u32 (!%p6775_p3), %s772_s24, 1  ;;  %s773_s5 = scalar_lea.sflag (!%p6775_p3), [#allocation5], %s772_s24 }
  0x5f   : > { %s776_s18 = scalar_lea.vmem (!%p6775_p3), [#allocation4], %s6877_s16 }
  0x62   : > { %6566 = dma.done.wait (%p6831_p12), %s773_s5, 32  }
  0x63   : > { %6568 = vsyncadd (%p6831_p12), %s773_s5, 4294967264  ;;  %s782_s19 = sand.u32 1, %s6770_s7   ;;  %s786_s28 = scalar_lea.vmem [#allocation6], %s6877_s16 }
  0x64   : > { %s783_s4 = scalar_lea.sflag [#allocation7], %s782_s19 }
  0x65   : > { %6570 = dma.done.wait (%p6831_p12), %s783_s4, 32  }
  0x66   : > { %6572 = vsyncadd (%p6831_p12), %s783_s4, 4294967264 }
  0x67   : > { %6574 = dma.done.wait (%p67_p1), [#allocation7], 1024  }
  0x68   : > { %6576 = vsyncadd (%p67_p1), [#allocation7], 4294966272 }
  0x69   : > { %6578 = dma.done.wait (%p67_p1), [#allocation10], 768  }
  0x6a   : > { %6580 = vsyncadd (%p67_p1), [#allocation10], 4294966528 }
  0x6b   : > { %6582 = dma.done.wait (%p67_p1), [#allocation13], 16128  }
  0x6c   : > { %6584 = vsyncadd (%p67_p1), [#allocation13], 4294951168 }
  0x6d   : > { %6586 = dma.done.wait (%p67_p1), [#allocation16], 6912  }
  0x6e   : > { %6588 = vsyncadd (%p67_p1), [#allocation16], 4294960384  ;;  %v6619_v2 = vmov 0   ;;  %s8036_s12 = sld [smem:[#allocation28_spill]]  ;;  %v911_v4 = vld [vmem:[#allocation8 + $0x10] sm:$0xff]  ;;  %v909_v5 = vld [vmem:[#allocation8] sm:$0xff] }
  0x6f   : > { %6302 = vset.pattern.permute.xlu2 %v6619_v2  ;;  %6301 = vset.pattern.permute.xlu1 %v6619_v2  ;;  %v912_v7 = vld [vmem:[#allocation8 + $0x18] sm:$0xff]  ;;  %v910_v8 = vld [vmem:[#allocation8 + $0x8] sm:$0xff]  ;;  %s8037_s30 = sld [smem:[#allocation29_spill]]  ;;  %v913_v16 = vld [vmem:[#allocation8 + $0x20] sm:$0xff]  ;;  %vm1177_vm0 = vcmask 261120   ;;  %vm1674_vm1 = vcmask 130048  }
  0x70   : > { %6300 = vset.pattern.permute.xlu0 %v6619_v2  ;;  %919 = vperm.xlu2 %6302, %v909_v5   ;;  %v914_v15 = vld [vmem:[#allocation8 + $0x28] sm:$0xff]  ;;  %v1140_v21 = vld [vmem:[#allocation11 + $0x8] sm:$0xff]  ;;  %v1139_v22 = vld [vmem:[#allocation11] sm:$0xff]  ;;  %s8039_s9 = sld [smem:[#allocation34_spill]]  ;;  %p893_p1 = scmp.lt.s32.totalorder %s6770_s7, 7  ;;  %vm2855_vm2 = vcmask 1040384  }
  0x71   : > { %929 = vperm.xlu0 %6300, %v911_v4   ;;  %v915_v23 = vld [vmem:[#allocation8 + $0x30] sm:$0xff]  ;;  %v916_v25 = vld [vmem:[#allocation8 + $0x38] sm:$0xff]  ;;  %v1141_v29 = vld [vmem:[#allocation11 + $0x10] sm:$0xff]  ;;  %s8040_s23 = sld [smem:[#allocation35_spill]]  ;;  %vm2859_vm3 = vcmask 262144   ;;  %vm4518_vm10 = vcmask 1041408  }
  0x72   : > { %v2007_v30 = vld [vmem:[%s7992_s14 + $0x10] sm:$0xff]  ;;  %v2008_v32 = vld [vmem:[%s7992_s14 + $0x18] sm:$0xff]  ;;  %v2006_v33 = vld [vmem:[%s7992_s14 + $0x8] sm:$0xff]  ;;  %s8041_s25 = sld [smem:[#allocation36_spill]]  ;;  %s8052_s7 = smov (!%p893_p1, %s6770_s7), 7  ;;  %vm4538_vm11 = vcmask 1043456  }
  0x73   : > { %v1142_v31 = vld [vmem:[#allocation11 + $0x18] sm:$0xff]  ;;  %v2005_v34 = vld [vmem:[%s7992_s14] sm:$0xff]  ;;  %v5073_v37 = vld [vmem:[%s7992_s14 + $0x28] sm:$0xff]  ;;  %s6184_s3 = smul.u32 3, %s8052_s7  ;;  %s8043_s24 = sld [smem:[#allocation39_spill]] }
  0x74   : > { %v980_v3 = vld [vmem:[%s8036_s12 + $0x10] sm:$0xff]  ;;  %v981_v6 = vld [vmem:[%s8036_s12 + $0x18] sm:$0xff]  ;;  %v979_v9 = vld [vmem:[%s8036_s12 + $0x8] sm:$0xff]  ;;  %s8045_s27 = sld [smem:[#allocation26_spill]]  ;;  %s6185_s8 = smul.u32 6, %s8052_s7 }
  0x75   : > { %998 = vperm.xlu1 %6301, %v980_v3   ;;  %v978_v10 = vld [vmem:[%s8036_s12] sm:$0xff]  ;;  %v1065_v11 = vld [vmem:[%s8037_s30 + $0x10] sm:$0xff]  ;;  %v1066_v13 = vld [vmem:[%s8037_s30 + $0x18] sm:$0xff] }
  0x76   : > { %v1063_v12 = vld [vmem:[%s8037_s30] sm:$0xff]  ;;  %v1064_v14 = vld [vmem:[%s8037_s30 + $0x8] sm:$0xff]  ;;  %v984_v24 = vld [vmem:[%s8036_s12 + $0x30] sm:$0xff] }
  0x77   : > { %v982_v17 = vld [vmem:[%s8036_s12 + $0x20] sm:$0xff]  ;;  %v983_v19 = vld [vmem:[%s8036_s12 + $0x28] sm:$0xff]  ;;  %v985_v26 = vld [vmem:[%s8036_s12 + $0x38] sm:$0xff] }
  0x78   : > { %924 = vperm.xlu2 %6302, %v910_v8   ;;  %v1067_v18 = vld [vmem:[%s8037_s30 + $0x20] sm:$0xff]  ;;  %v1068_v20 = vld [vmem:[%s8037_s30 + $0x28] sm:$0xff]  ;;  %v1070_v27 = vld [vmem:[%s8037_s30 + $0x38] sm:$0xff] }
  0x79   : > { %934 = vperm.xlu0 %6300, %v912_v7   ;;  %v1069_v28 = vld [vmem:[%s8037_s30 + $0x30] sm:$0xff]  ;;  %v5072_v35 = vld [vmem:[%s7992_s14 + $0x20] sm:$0xff]  ;;  %v5075_v38 = vld [vmem:[%s7992_s14 + $0x38] sm:$0xff] }
  0x7a   : > { %v5074_v36 = vld [vmem:[%s7992_s14 + $0x30] sm:$0xff]  ;;  %v5099_v39 = vld [vmem:[%s7992_s14 + $0x58] sm:$0xff]  ;;  %v5096_v41 = vld [vmem:[%s7992_s14 + $0x40] sm:$0xff]  ;;  %s900_s17 = scalar_lea.vmem %s8045_s27, %s6184_s3 }
  0x7b   : > { %v5098_v40 = vld [vmem:[%s7992_s14 + $0x50] sm:$0xff]  ;;  %v5097_v43 = vld [vmem:[%s7992_s14 + $0x48] sm:$0xff]  ;;  %v5119_v44 = vld [vmem:[%s7992_s14 + $0x78] sm:$0xff] }
  0x7c   : > { %v5118_v42 = vld [vmem:[%s7992_s14 + $0x70] sm:$0xff]  ;;  %v5117_v46 = vld [vmem:[%s7992_s14 + $0x68] sm:$0xff]  ;;  %v5116_v47 = vld [vmem:[%s7992_s14 + $0x60] sm:$0xff] }
  0x7d   : > { %1003 = vperm.xlu1 %6301, %v981_v6   ;;  %v5138_v48 = vld [vmem:[%s7992_s14 + $0x90] sm:$0xff]  ;;  %v5136_v51 = vld [vmem:[%s7992_s14 + $0x80] sm:$0xff]  ;;  %v5139_v52 = vld [vmem:[%s7992_s14 + $0x98] sm:$0xff] }
  0x7e   : > { %v5137_v53 = vld [vmem:[%s7992_s14 + $0x88] sm:$0xff]  ;;  %v907_v55 = vld [vmem:[%s776_s18] sm:$0x3]  ;;  %v5159_v63 = vld [vmem:[%s7992_s14 + $0xb8] sm:$0xff]  ;;  %s8038_s18 = sld [smem:[#allocation33_spill]] }
  0x7f   : > { %v908_v56 = vld [vmem:[%s786_s28] sm:$0x3]  ;;  %v7018_v59 = vperm.slane %v907_v55, 0  ;;  %v7020_v60 = vperm.slane %v907_v55, 1  ;;  %v5158_v0 = vld [vmem:[%s7992_s14 + $0xb0] sm:$0xff]  ;;  %s8044_s28 = sld [smem:[#allocation38_spill]] }
  0x80   : > { %1083 = vperm.xlu2 %6302, %v1065_v11   ;;  %v7022_v61 = vperm.slane %v908_v56, 0  ;;  %v7024_v62 = vperm.slane %v908_v56, 1  ;;  %v5156_v1 = vld [vmem:[%s7992_s14 + $0xa0] sm:$0xff]  ;;  %v5910_v55 = vld [vmem:[#allocation9] sm:$0xff]  ;;  %v5911_v56 = vld [vmem:[#allocation9 + $0x8] sm:$0xff] }
  0x81   : > { %988 = vperm.xlu0 %6300, %v978_v10  }
  0x85   : > { %993 = vperm.xlu1 %6301, %v979_v9  }
  0x88   : > { %1078 = vperm.xlu2 %6302, %v1064_v14  }
  0x89   : > { %1088 = vperm.xlu0 %6300, %v1066_v13  }
  0x8d   : > { %1073 = vperm.xlu1 %6301, %v1063_v12  }
  0x90   : > { %1008 = vperm.xlu2 %6302, %v982_v17  }
  0x91   : > { %939 = vperm.xlu0 %6300, %v913_v16  }
  0x95   : > { %944 = vperm.xlu1 %6301, %v914_v15  }
  0x98   : > { %1098 = vperm.xlu2 %6302, %v1068_v20   ;;  %v5157_v20 = vld [vmem:[%s7992_s14 + $0xa8] sm:$0xff] }
  0x99   : > { %1013 = vperm.xlu0 %6300, %v983_v19   ;;  %v2809_v19 = vld [vmem:[#allocation3] sm:$0x1] }
  0x9d   : > { %1093 = vperm.xlu1 %6301, %v1067_v18  }
  0xa0   : > { %949 = vperm.xlu2 %6302, %v915_v23  }
  0xa1   : > { %1149 = vperm.xlu0 %6300, %v1139_v22   ;;  %v2770_v22 = vld [vmem:[#allocation2] sm:$0x1] }
  0xa5   : > { %1154 = vperm.xlu1 %6301, %v1140_v21  }
  0xa8   : > { %1023 = vperm.xlu2 %6302, %v985_v26  }
  0xa9   : > { %954 = vperm.xlu0 %6300, %v916_v25  }
  0xad   : > { %1018 = vperm.xlu1 %6301, %v984_v24  }
  0xb0   : > { %1159 = vperm.xlu2 %6302, %v1141_v29  }
  0xb1   : > { %1103 = vperm.xlu0 %6300, %v1069_v28  }
  0xb5   : > { %1108 = vperm.xlu1 %6301, %v1070_v27  }
  0xb8   : > { %2034 = vperm.xlu2 %6302, %v2008_v32  }
  0xb9   : > { %1164 = vperm.xlu0 %6300, %v1142_v31  }
  0xbd   : > { %2029 = vperm.xlu1 %6301, %v2007_v30  }
  0xc0   : > { %2165 = vperm.xlu2 %6302, %v5072_v35  }
  0xc1   : > { %2019 = vperm.xlu0 %6300, %v2005_v34  }
  0xc5   : > { %2024 = vperm.xlu1 %6301, %v2006_v33  }
  0xc8   : > { %2180 = vperm.xlu2 %6302, %v5075_v38  }
  0xc9   : > { %2170 = vperm.xlu0 %6300, %v5073_v37  }
  0xca   : > { %v920_v45 = vpop.permute.xlu2 %919 }
  0xcb   : > { %v962_v21 = vmul.f32 %v7018_v59, %v920_v45  ;;  %v963_v23 = vmul.f32 %v7020_v60, %v920_v45 }
  0xcd   : > { %2175 = vperm.xlu1 %6301, %v5074_v36  }
  0xd0   : > { %2383 = vperm.xlu2 %6302, %v5096_v41  }
  0xd1   : > { %2393 = vperm.xlu0 %6300, %v5098_v40  }
  0xd2   : > { %v925_v54 = vpop.permute.xlu2 %924 }
  0xd3   : > { %v964_v24 = vmul.f32 %v7018_v59, %v925_v54  ;;  %v965_v25 = vmul.f32 %v7020_v60, %v925_v54 }
  0xd5   : > { %2398 = vperm.xlu1 %6301, %v5099_v39  }
  0xd8   : > { %2494 = vperm.xlu2 %6302, %v5119_v44  }
  0xd9   : > { %2388 = vperm.xlu0 %6300, %v5097_v43  }
  0xda   : > { %v1084_v6 = vpop.permute.xlu2 %1083 }
  0xdd   : > { %2489 = vperm.xlu1 %6301, %v5118_v42  }
  0xe0   : > { %2599 = vperm.xlu2 %6302, %v5138_v48  }
  0xe1   : > { %2479 = vperm.xlu0 %6300, %v5116_v47  }
  0xe2   : > { %v1079_v40 = vpop.permute.xlu2 %1078 }
  0xe3   : > { %v930_v50 = vpop.permute.xlu0 %929 }
  0xe4   : > { %v966_v4 = vmul.f32 %v7018_v59, %v930_v50  ;;  %v967_v5 = vmul.f32 %v7020_v60, %v930_v50 }
  0xe5   : > { %2484 = vperm.xlu1 %6301, %v5117_v46  }
  0xe7   : > { %v999_v49 = vpop.permute.xlu1 %998 }
  0xe8   : > { %2594 = vperm.xlu2 %6302, %v5137_v53   ;;  %v1035_v2 = vmul.f32 %v7022_v61, %v999_v49  ;;  %v1036_v3 = vmul.f32 %v7024_v62, %v999_v49 }
  0xe9   : > { %2604 = vperm.xlu0 %6300, %v5139_v52  }
  0xea   : > { %v1051_v9 = vadd.f32 %v1035_v2, %v966_v4  ;;  %v1052_v10 = vadd.f32 %v1036_v3, %v967_v5  ;;  %v4942_v2 = vld [vmem:[#allocation12 + $0x180] sm:$0xf]  ;;  %v4950_v5 = vld [vmem:[#allocation12 + $0x188] sm:$0xf] }
  0xeb   : > { %v935_v58 = vpop.permute.xlu0 %934  ;;  %v5964_v3 = vld [vmem:[#allocation12 + $0x19c] sm:$0xf0] }
  0xec   : > { %v968_v13 = vmul.f32 %v7018_v59, %v935_v58  ;;  %v969_v14 = vmul.f32 %v7020_v60, %v935_v58  ;;  %v1115_v26 = vadd.f32 %v1084_v6, %v1051_v9  ;;  %v1116_v29 = vadd.f32 %v1084_v6, %v1052_v10  ;;  %v5972_v58 = vld [vmem:[#allocation12 + $0x1dc] sm:$0xf0]  ;;  %v5965_v6 = vld [vmem:[#allocation12 + $0x1a4] sm:$0xf0] }
  0xed   : > { %2589 = vperm.xlu1 %6301, %v5136_v51   ;;  %v4910_v9 = vld [vmem:[#allocation12 + $0x140] sm:$0xf] }
  0xee   : > { %v1131_v41 = vmax.f32 %v1115_v26, 0.0  ;;  %v1132_v42 = vmax.f32 %v1116_v29, 0.0  ;;  %v5956_v10 = vld [vmem:[#allocation12 + $0x15c] sm:$0xf0]  ;;  %v4822_v29 = vld [vmem:[#allocation12 + $0x88] sm:$0xf] }
  0xef   : > { %v1004_v57 = vpop.permute.xlu1 %1003 }
  0xf0   : > { %2685 = vperm.xlu2 %6302, %v5156_v1   ;;  %v1037_v11 = vmul.f32 %v7022_v61, %v1004_v57  ;;  %v1038_v12 = vmul.f32 %v7024_v62, %v1004_v57  ;;  %v4974_v57 = vld [vmem:[#allocation12 + $0x1c0] sm:$0xf]  ;;  %v5973_v1 = vld [vmem:[#allocation12 + $0x1e4] sm:$0xf0] }
  0xf1   : > { %2695 = vperm.xlu0 %6300, %v5158_v0   ;;  %v4975_v0 = vor.u32 %v5972_v58, %v4974_v57  ;;  %v5960_v58 = vld [vmem:[#allocation12 + $0x184] sm:$0xf] }
  0xf2   : > { %v1053_v27 = vadd.f32 %v1037_v11, %v968_v13  ;;  %v1054_v28 = vadd.f32 %v1038_v12, %v969_v14  ;;  %v4918_v11 = vld [vmem:[#allocation12 + $0x148] sm:$0xf]  ;;  %v4911_v13 = vor.u32 %v5956_v10, %v4910_v9 }
  0xf3   : > { %v989_v8 = vpop.permute.xlu0 %988  ;;  %6176 = vmatpush.bf16.msra.mxu2 %v4975_v0  ;;  %v5957_v12 = vld [vmem:[#allocation12 + $0x164] sm:$0xf0] }
  0xf4   : > { %v1031_v17 = vmul.f32 %v7022_v61, %v989_v8  ;;  %v1032_v18 = vmul.f32 %v7024_v62, %v989_v8  ;;  %v4951_v8 = vor.u32 %v5965_v6, %v4950_v5  ;;  %v4919_v14 = vor.u32 %v5957_v12, %v4918_v11  ;;  %v5952_v6 = vld [vmem:[#allocation12 + $0x144] sm:$0xf]  ;;  %v5958_v11 = vld [vmem:[#allocation12 + $0x16c] sm:$0xf0] }
  0xf5   : > { %2700 = vperm.xlu1 %6301, %v5159_v63   ;;  %v4982_v63 = vld [vmem:[#allocation12 + $0x1c8] sm:$0xf] }
  0xf6   : > { %v1047_v32 = vadd.f32 %v1031_v17, %v962_v21  ;;  %v1048_v33 = vadd.f32 %v1032_v18, %v963_v23  ;;  %v4983_v4 = vor.u32 %v5973_v1, %v4982_v63  ;;  %v4886_v17 = vld [vmem:[#allocation12 + $0x108] sm:$0xf]  ;;  %v4846_v21 = vld [vmem:[#allocation12 + $0xc0] sm:$0xf]  ;;  %v4944_v63 = vld [vmem:[#allocation12 + $0x1a0] sm:$0xf0] }
  0xf7   : > { %v994_v7 = vpop.permute.xlu1 %993  ;;  %v5949_v18 = vld [vmem:[#allocation12 + $0x124] sm:$0xf0] }
  0xf8   : > { %v1033_v15 = vmul.f32 %v7022_v61, %v994_v7  ;;  %v1034_v16 = vmul.f32 %v7024_v62, %v994_v7  ;;  %2773 = vperm.xlu2 %6302, %v2770_v22   ;;  %v4943_v7 = vor.u32 %v5964_v3, %v4942_v2  ;;  %v5940_v22 = vld [vmem:[#allocation12 + $0xdc] sm:$0xf0]  ;;  %v4854_v23 = vld [vmem:[#allocation12 + $0xc8] sm:$0xf]  ;;  %v4947_v2 = vor.u32 %v5960_v58, %v4944_v63  ;;  %v5966_v3 = vld [vmem:[#allocation12 + $0x1ac] sm:$0xf0] }
  0xf9   : > { %2690 = vperm.xlu0 %6300, %v5157_v20   ;;  %v4887_v20 = vor.u32 %v5949_v18, %v4886_v17  ;;  %v5008_v17 = vld [vmem:[#allocation12 + $0x220] sm:$0xf0]  ;;  %v4894_v18 = vld [vmem:[#allocation12 + $0x110] sm:$0xf]  ;;  %v5014_v58 = vld [vmem:[#allocation12 + $0x208] sm:$0xf] }
  0xfa   : > { %v1049_v30 = vadd.f32 %v1033_v15, %v964_v24  ;;  %v1050_v31 = vadd.f32 %v1034_v16, %v965_v25  ;;  %6177 = vmatpush.bf16.msra.mxu2 %v4943_v7  ;;  %v4878_v15 = vld [vmem:[#allocation12 + $0x100] sm:$0xf]  ;;  %v4847_v24 = vor.u32 %v5940_v22, %v4846_v21  ;;  %v5941_v25 = vld [vmem:[#allocation12 + $0xe4] sm:$0xf0] }
  0xfb   : > { %v1089_v35 = vpop.permute.xlu0 %1088  ;;  %v5948_v16 = vld [vmem:[#allocation12 + $0x11c] sm:$0xf0]  ;;  %v4855_v26 = vor.u32 %v5941_v25, %v4854_v23  ;;  %v5981_v63 = vld [vmem:[#allocation12 + $0x224] sm:$0xf0] }
  0xfc   : > { %v1117_v38 = vadd.f32 %v1089_v35, %v1053_v27  ;;  %v1118_v39 = vadd.f32 %v1089_v35, %v1054_v28  ;;  %v1113_v45 = vadd.f32 %v1079_v40, %v1049_v30  ;;  %v1114_v46 = vadd.f32 %v1079_v40, %v1050_v31  ;;  %v4814_v27 = vld [vmem:[#allocation12 + $0x80] sm:$0xf]  ;;  %v7060_v40 = vpop.permute.xlu2 %1008 }
  0xfd   : > { %2812 = vperm.xlu1 %6301, %v2809_v19   ;;  %v4879_v19 = vor.u32 %v5948_v16, %v4878_v15  ;;  %v5932_v28 = vld [vmem:[#allocation12 + $0x9c] sm:$0xf0]  ;;  %v5976_v15 = vld [vmem:[#allocation12 + $0x204] sm:$0xf] }
  0xfe   : > { %v1133_v43 = vmax.f32 %v1117_v38, 0.0  ;;  %v1134_v44 = vmax.f32 %v1118_v39, 0.0  ;;  %v1129_v51 = vmax.f32 %v1113_v45, 0.0  ;;  %v1130_v52 = vmax.f32 %v1114_v46, 0.0  ;;  %6178 = vmatpush.bf16.msra.mxu2 %v4911_v13  ;;  %v5924_v35 = vld [vmem:[#allocation12 + $0x5c] sm:$0xf0] }
  0xff   : > { %v1074_v34 = vpop.permute.xlu1 %1073  ;;  %v4815_v31 = vor.u32 %v5932_v28, %v4814_v27  ;;  %v5925_v38 = vld [vmem:[#allocation12 + $0x64] sm:$0xf0]  ;;  %v5980_v46 = vld [vmem:[#allocation12 + $0x21c] sm:$0xf0]  ;;  %v5936_v27 = vld [vmem:[#allocation12 + $0xc4] sm:$0xf] }
 0x100   : > { %v1111_v36 = vadd.f32 %v1074_v34, %v1047_v32  ;;  %v1112_v37 = vadd.f32 %v1074_v34, %v1048_v33  ;;  %v1145_v49 = vpack.c.bf16 %v1133_v43, %v1131_v41  ;;  %v1146_v50 = vpack.c.bf16 %v1134_v44, %v1132_v42  ;;  %v5933_v32 = vld [vmem:[#allocation12 + $0xa4] sm:$0xf0]  ;;  %v4782_v34 = vld [vmem:[#allocation12 + $0x40] sm:$0xf]  ;;  %v4848_v28 = vld [vmem:[#allocation12 + $0xe0] sm:$0xf0] }
 0x101   : > { %v4823_v33 = vor.u32 %v5933_v32, %v4822_v29  ;;  %v4750_v41 = vld [vmem:[#allocation12] sm:$0xf]  ;;  %v4862_v29 = vld [vmem:[#allocation12 + $0xd0] sm:$0xf] }
 0x102   : > { %v1127_v47 = vmax.f32 %v1111_v36, 0.0  ;;  %v1128_v48 = vmax.f32 %v1112_v37, 0.0  ;;  %1190 = vmatpush.bf16.msra.mxu0 %v1145_v49  ;;  %1209 = vmatpush.bf16.msra.mxu1 %v1146_v50  ;;  %v4790_v36 = vld [vmem:[#allocation12 + $0x48] sm:$0xf]  ;;  %v4783_v37 = vor.u32 %v5924_v35, %v4782_v34  ;;  %v5916_v42 = vld [vmem:[#allocation12 + $0x1c] sm:$0xf0]  ;;  %v4851_v34 = vor.u32 %v5936_v27, %v4848_v28 }
 0x103   : > { %6179 = vmatpush.bf16.msra.mxu2 %v4879_v19  ;;  %v7058_v30 = vpop.permute.xlu0 %939  ;;  %v4791_v39 = vor.u32 %v5925_v38, %v4790_v36  ;;  %v5006_v43 = vld [vmem:[#allocation12 + $0x200] sm:$0xf]  ;;  %v4751_v45 = vor.u32 %v5916_v42, %v4750_v41  ;;  %v5942_v35 = vld [vmem:[#allocation12 + $0xec] sm:$0xf0]  ;;  %v4816_v41 = vld [vmem:[#allocation12 + $0xa0] sm:$0xf0] }
 0x104   : > { %v1143_v53 = vpack.c.bf16 %v1129_v51, %v1127_v47  ;;  %v1144_v54 = vpack.c.bf16 %v1130_v52, %v1128_v48  ;;  %v4758_v47 = vld [vmem:[#allocation12 + $0x8] sm:$0xf]  ;;  %v5007_v49 = vor.u32 %v5980_v46, %v5006_v43  ;;  %v5968_v52 = vld [vmem:[#allocation12 + $0x1c4] sm:$0xf]  ;;  %v7064_v1 = vpop.permute.xlu2 %1098  ;;  %v971_v32 = vmul.f32 %v7020_v60, %v7058_v30  ;;  %v4830_v42 = vld [vmem:[#allocation12 + $0x90] sm:$0xf] }
 0x105   : > { %v5917_v48 = vld [vmem:[#allocation12 + $0x24] sm:$0xf0]  ;;  %v4863_v38 = vor.u32 %v5942_v35, %v4862_v29  ;;  %v1039_v43 = vmul.f32 %v7022_v61, %v7060_v40  ;;  %v4998_v35 = vld [vmem:[#allocation12 + $0x1d8] sm:$0xf] }
 0x106   : > { %1191 = vmatpush.bf16.msra.mxu0 %v1143_v53  ;;  %1210 = vmatpush.bf16.msra.mxu1 %v1144_v54  ;;  %v4759_v50 = vor.u32 %v5917_v48, %v4758_v47  ;;  %v4976_v53 = vld [vmem:[#allocation12 + $0x1e0] sm:$0xf0]  ;;  %v4990_v54 = vld [vmem:[#allocation12 + $0x1d0] sm:$0xf] }
 0x107   : > { %6180 = vmatpush.bf16.msra.mxu2 %v4847_v24  ;;  %v7062_v44 = vpop.permute.xlu1 %944  ;;  %1707 = vmatpush.bf16.msra.mxu3 %v5007_v49  ;;  %v5934_v47 = vld [vmem:[#allocation12 + $0xac] sm:$0xf0] }
 0x108   : > { %v972_v36 = vmul.f32 %v7018_v59, %v7062_v44 }
 0x109   : > { %4744 = vmatmul.msk.bf16.vlgmr.msra.gmra.mxu0 %vm1177_vm0, %v5910_v55  ;;  %4746 = vmatmul.msk.bf16.vlgmr.msra.gmra.mxu1 %vm1177_vm0, %v5910_v55  ;;  %v4979_v55 = vor.u32 %v5968_v52, %v4976_v53 }
 0x10a   : > { %1681 = vmatpush.bf16.msrb.mxu0 %v4975_v0  ;;  %1757 = vmatpush.bf16.msrb.mxu1 %v4983_v4  ;;  %v4958_v0 = vld [vmem:[#allocation12 + $0x190] sm:$0xf] }
 0x10b   : > { %6181 = vmatpush.bf16.msra.mxu2 %v4815_v31  ;;  %v1014_v51 = vpop.permute.xlu0 %1013  ;;  %1719 = vmatpush.bf16.msrb.mxu3 %v4979_v55  ;;  %v4959_v4 = vor.u32 %v5966_v3, %v4958_v0  ;;  %v5015_v3 = vor.u32 %v5981_v63, %v5014_v58 }
 0x10c   : > { %v7068_v22 = vpop.permute.xlu2 %949  ;;  %v1041_v23 = vmul.f32 %v7022_v61, %v1014_v51 }
 0x10e   : > { %1682 = vmatpush.bf16.msrb.mxu0 %v4943_v7  ;;  %1758 = vmatpush.bf16.msrb.mxu1 %v4951_v8  ;;  %v4912_v7 = vld [vmem:[#allocation12 + $0x160] sm:$0xf0]  ;;  %v4926_v8 = vld [vmem:[#allocation12 + $0x150] sm:$0xf]  ;;  %v1057_v48 = vadd.f32 %v1041_v23, %v972_v36 }
 0x10f   : > { %6182 = vmatpush.bf16.msra.mxu2 %v4783_v37  ;;  %v7066_v5 = vpop.permute.xlu1 %1093  ;;  %1720 = vmatpush.bf16.msrb.mxu3 %v4947_v2  ;;  %v4915_v10 = vor.u32 %v5952_v6, %v4912_v7  ;;  %v4927_v12 = vor.u32 %v5958_v11, %v4926_v8  ;;  %v4752_v11 = vld [vmem:[#allocation12 + $0x20] sm:$0xf0] }
 0x112   : > { %1683 = vmatpush.bf16.msrb.mxu0 %v4911_v13  ;;  %1759 = vmatpush.bf16.msrb.mxu1 %v4919_v14  ;;  %v5944_v13 = vld [vmem:[#allocation12 + $0x104] sm:$0xf] }
 0x113   : > { %6183 = vmatpush.bf16.msra.mxu2 %v4751_v45  ;;  %v1150_v9 = vpop.permute.xlu0 %1149  ;;  %1721 = vmatpush.bf16.msrb.mxu3 %v4915_v10  ;;  %v4880_v14 = vld [vmem:[#allocation12 + $0x120] sm:$0xf0] }
 0x114   : > { %v4883_v16 = vor.u32 %v5944_v13, %v4880_v14 }
 0x116   : > { %1684 = vmatpush.bf16.msrb.mxu0 %v4879_v19  ;;  %1760 = vmatpush.bf16.msrb.mxu1 %v4887_v20  ;;  %v5950_v19 = vld [vmem:[#allocation12 + $0x12c] sm:$0xf0]  ;;  %v5011_v20 = vor.u32 %v5976_v15, %v5008_v17  ;;  %v1024_v17 = vpop.permute.xlu2 %1023 }
 0x117   : > { %v4895_v21 = vor.u32 %v5950_v19, %v4894_v18  ;;  %1722 = vmatpush.bf16.msrb.mxu3 %v4883_v16  ;;  %1783 = vmatpush.bf16.msrb.mxu2 %v5015_v3  ;;  %v4766_v16 = vld [vmem:[#allocation12 + $0x10] sm:$0xf]  ;;  %v5016_v3 = vld [vmem:[#allocation12 + $0x228] sm:$0xf0] }
 0x119   : > { %4745 = vmatmul.msk.bf16.gmra.mxu0 %vm1177_vm0, %v5911_v56  ;;  %4747 = vmatmul.msk.bf16.gmra.mxu1 %vm1177_vm0, %v5911_v56  ;;  %v5974_v56 = vld [vmem:[#allocation12 + $0x1ec] sm:$0xf0] }
 0x11a   : > { %1685 = vmatpush.bf16.msrb.mxu0 %v4847_v24  ;;  %1761 = vmatpush.bf16.msrb.mxu1 %v4855_v26  ;;  %v4991_v57 = vor.u32 %v5974_v56, %v4990_v54  ;;  %v1042_v24 = vmul.f32 %v7024_v62, %v1014_v51  ;;  %v4784_v51 = vld [vmem:[#allocation12 + $0x60] sm:$0xf0]  ;;  %v4798_v56 = vld [vmem:[#allocation12 + $0x50] sm:$0xf] }
 0x11b   : > { %1723 = vmatpush.bf16.msrb.mxu3 %v4851_v34  ;;  %v4984_v34 = vld [vmem:[#allocation12 + $0x1e8] sm:$0xf0] }
 0x11e   : > { %1686 = vmatpush.bf16.msrb.mxu0 %v4815_v31  ;;  %1762 = vmatpush.bf16.msrb.mxu1 %v4823_v33  ;;  %v970_v31 = vmul.f32 %v7018_v59, %v7058_v30  ;;  %v1155_v33 = vpop.permute.xlu1 %1154  ;;  %v7084_v30 = vpop.permute.xlu0 %954 }
 0x120   : > { %v1055_v52 = vadd.f32 %v1039_v43, %v970_v31 }
 0x122   : > { %1687 = vmatpush.bf16.msrb.mxu0 %v4783_v37  ;;  %1763 = vmatpush.bf16.msrb.mxu1 %v4791_v39  ;;  %v973_v37 = vmul.f32 %v7020_v60, %v7062_v44  ;;  %v5928_v39 = vld [vmem:[#allocation12 + $0x84] sm:$0xf] }
 0x123   : > { %v4819_v46 = vor.u32 %v5928_v39, %v4816_v41  ;;  %v5920_v44 = vld [vmem:[#allocation12 + $0x44] sm:$0xf]  ;;  %v5975_v39 = vld [vmem:[#allocation12 + $0x1f4] sm:$0xf0]  ;;  %v976_v41 = vmul.f32 %v7018_v59, %v7084_v30 }
 0x124   : > { %v1058_v49 = vadd.f32 %v1042_v24, %v973_v37  ;;  %v4787_v2 = vor.u32 %v5920_v44, %v4784_v51  ;;  %v4999_v43 = vor.u32 %v5975_v39, %v4998_v35  ;;  %v5967_v44 = vld [vmem:[#allocation12 + $0x1b4] sm:$0xf0]  ;;  %v1045_v51 = vmul.f32 %v7022_v61, %v1024_v17  ;;  %v5929_v39 = vld [vmem:[#allocation12 + $0x8c] sm:$0xf] }
 0x125   : > { %1724 = vmatpush.bf16.msrb.mxu3 %v4819_v46  ;;  %v4952_v46 = vld [vmem:[#allocation12 + $0x1a8] sm:$0xf0]  ;;  %v4870_v35 = vld [vmem:[#allocation12 + $0xd8] sm:$0xf] }
 0x126   : > { %1688 = vmatpush.bf16.msrb.mxu0 %v4751_v45  ;;  %1764 = vmatpush.bf16.msrb.mxu1 %v4759_v50  ;;  %v1040_v45 = vmul.f32 %v7024_v62, %v7060_v40  ;;  %v4831_v50 = vor.u32 %v5934_v47, %v4830_v42  ;;  %v1119_v40 = vadd.f32 %v7066_v5, %v1055_v52  ;;  %v1019_v18 = vpop.permute.xlu1 %1018  ;;  %v1104_v23 = vpop.permute.xlu0 %1103  ;;  %v4966_v47 = vld [vmem:[#allocation12 + $0x198] sm:$0xf] }
 0x127   : > { %v1122_v7 = vadd.f32 %v7064_v1, %v1058_v49  ;;  %v1043_v36 = vmul.f32 %v7022_v61, %v1019_v18  ;;  %v1044_v37 = vmul.f32 %v7024_v62, %v1019_v18  ;;  %v977_v42 = vmul.f32 %v7020_v60, %v7084_v30  ;;  %v1160_v30 = vpop.permute.xlu2 %1159  ;;  %v4902_v18 = vld [vmem:[#allocation12 + $0x118] sm:$0xf] }
 0x128   : > { %v1056_v53 = vadd.f32 %v1040_v45, %v971_v32  ;;  %v5961_v45 = vld [vmem:[#allocation12 + $0x18c] sm:$0xf]  ;;  %v975_v49 = vmul.f32 %v7020_v60, %v7068_v22  ;;  %v1046_v52 = vmul.f32 %v7024_v62, %v1024_v17 }
 0x129   : > { %1725 = vmatpush.bf16.msrb.mxu3 %v4787_v2  ;;  %v5977_v60 = vld [vmem:[#allocation12 + $0x20c] sm:$0xf] }
 0x12a   : > { %1833 = vmatpush.bf16.msra.mxu1 %v4991_v57  ;;  %1745 = vmatpush.bf16.msra.mxu0 %v5011_v20  ;;  %v5926_v57 = vld [vmem:[#allocation12 + $0x6c] sm:$0xf0]  ;;  %v1120_v0 = vadd.f32 %v7066_v5, %v1056_v53  ;;  %v4967_v53 = vor.u32 %v5967_v44, %v4966_v47  ;;  %v1060_v58 = vadd.f32 %v1044_v37, %v975_v49  ;;  %v5943_v37 = vld [vmem:[#allocation12 + $0xf4] sm:$0xf0]  ;;  %v5921_v47 = vld [vmem:[#allocation12 + $0x4c] sm:$0xf] }
 0x12b   : > { %v4799_v10 = vor.u32 %v5926_v57, %v4798_v56  ;;  %v5918_v5 = vld [vmem:[#allocation12 + $0x2c] sm:$0xf0]  ;;  %v1062_v2 = vadd.f32 %v1046_v52, %v977_v42  ;;  %v4838_v42 = vld [vmem:[#allocation12 + $0x98] sm:$0xf] }
 0x12c   : > { %v1124_v61 = vadd.f32 %v1104_v23, %v1060_v58  ;;  %v4806_v49 = vld [vmem:[#allocation12 + $0x58] sm:$0xf]  ;;  %v5022_v44 = vld [vmem:[#allocation12 + $0x210] sm:$0xf] }
 0x12e   : > { %1834 = vmatpush.bf16.msra.mxu1 %v4959_v4  ;;  %v1121_v4 = vadd.f32 %v7064_v1, %v1057_v48  ;;  %v4767_v1 = vor.u32 %v5918_v5, %v4766_v16  ;;  %v974_v48 = vmul.f32 %v7018_v59, %v7068_v22  ;;  %v1109_v56 = vpop.permute.xlu1 %1108  ;;  %v1061_v22 = vadd.f32 %v1045_v51, %v976_v41  ;;  %v4824_v41 = vld [vmem:[#allocation12 + $0xa8] sm:$0xf0]  ;;  %v5982_v51 = vld [vmem:[#allocation12 + $0x22c] sm:$0xf0] }
 0x12f   : > { %v5023_v52 = vor.u32 %v5982_v51, %v5022_v44  ;;  %v4840_v44 = vld [vmem:[#allocation12 + $0xb8] sm:$0xf0] }
 0x130   : > { %v1059_v57 = vadd.f32 %v1043_v36, %v974_v48  ;;  %v4792_v48 = vld [vmem:[#allocation12 + $0x68] sm:$0xf0] }
 0x132   : > { %1835 = vmatpush.bf16.msra.mxu1 %v4927_v12 }
 0x136   : > { %1836 = vmatpush.bf16.msra.mxu1 %v4895_v21 }
 0x13a   : > { %1837 = vmatpush.bf16.msra.mxu1 %v4863_v38 }
 0x13e   : > { %1838 = vmatpush.bf16.msra.mxu1 %v4831_v50  ;;  %v4955_v50 = vor.u32 %v5961_v45, %v4952_v46  ;;  %v5935_v45 = vld [vmem:[#allocation12 + $0xb4] sm:$0xf0] }
 0x13f   : > { %v4839_v46 = vor.u32 %v5935_v45, %v4838_v42  ;;  %v4904_v45 = vld [vmem:[#allocation12 + $0x138] sm:$0xf0] }
 0x142   : > { %1839 = vmatpush.bf16.msra.mxu1 %v4799_v10  ;;  %v1126_v10 = vadd.f32 %v1109_v56, %v1062_v2 }
 0x146   : > { %1840 = vmatpush.bf16.msra.mxu1 %v4767_v1 }
 0x186   : > { %v1193_v25 = vpop.f32.mrf.mxu0  ;;  %v1212_v26 = vpop.f32.mrf.mxu1 }
 0x187   : > { %v1194_v54 = vadd.f32 %v1193_v25, %v1150_v9  ;;  %v1213_v55 = vadd.f32 %v1212_v26, %v1150_v9  ;;  %v5912_v9 = vld [vmem:[#allocation12 + $0x4] sm:$0xf] }
 0x188   : > { %v4755_v21 = vor.u32 %v5912_v9, %v4752_v11 }
 0x189   : > { %v1222_v12 = vadd.f32 %v1194_v54, %v1119_v40  ;;  %v1223_v13 = vadd.f32 %v1213_v55, %v1120_v0  ;;  %v5953_v54 = vld [vmem:[#allocation12 + $0x14c] sm:$0xf]  ;;  %v4934_v40 = vld [vmem:[#allocation12 + $0x158] sm:$0xf] }
 0x18a   : > { %1726 = vmatpush.bf16.msrb.mxu3 %v4755_v21  ;;  %v4920_v55 = vld [vmem:[#allocation12 + $0x168] sm:$0xf0]  ;;  %v5959_v0 = vld [vmem:[#allocation12 + $0x174] sm:$0xf0] }
 0x18b   : > { %v1230_v24 = vmax.f32 %v1222_v12, 0.0  ;;  %v1231_v25 = vmax.f32 %v1223_v13, 0.0  ;;  %v4923_v62 = vor.u32 %v5953_v54, %v4920_v55  ;;  %v4935_v12 = vor.u32 %v5959_v0, %v4934_v40  ;;  %v5945_v13 = vld [vmem:[#allocation12 + $0x10c] sm:$0xf]  ;;  %v4992_v40 = vld [vmem:[#allocation12 + $0x1f0] sm:$0xf0] }
 0x18c   : > { %v5913_v54 = vld [vmem:[#allocation12 + $0xc] sm:$0xf] }
 0x18d   : > { %v4760_v55 = vld [vmem:[#allocation12 + $0x28] sm:$0xf0] }
 0x18e   : > { %v1195_v6 = vpop.f32.mrf.mxu0  ;;  %v1214_v8 = vpop.f32.mrf.mxu1  ;;  %v4763_v58 = vor.u32 %v5913_v54, %v4760_v55  ;;  %v5915_v54 = vld [vmem:[#allocation12 + $0x1c] sm:$0xf] }
 0x18f   : > { %v1196_v14 = vadd.f32 %v1195_v6, %v1155_v33  ;;  %v1215_v15 = vadd.f32 %v1214_v8, %v1155_v33  ;;  %v5969_v33 = vld [vmem:[#allocation12 + $0x1cc] sm:$0xf]  ;;  %v1165_v6 = vpop.permute.xlu0 %1164  ;;  %v1125_v8 = vadd.f32 %v1109_v56, %v1061_v22  ;;  %v4774_v56 = vld [vmem:[#allocation12 + $0x18] sm:$0xf]  ;;  %v4960_v22 = vld [vmem:[#allocation12 + $0x1b0] sm:$0xf0] }
 0x190   : > { %v4987_v38 = vor.u32 %v5969_v33, %v4984_v34  ;;  %v5937_v33 = vld [vmem:[#allocation12 + $0xcc] sm:$0xf]  ;;  %v4776_v55 = vld [vmem:[#allocation12 + $0x38] sm:$0xf0] }
 0x191   : > { %v1224_v19 = vadd.f32 %v1196_v14, %v1121_v4  ;;  %v1225_v20 = vadd.f32 %v1215_v15, %v1122_v7  ;;  %v1123_v4 = vadd.f32 %v1104_v23, %v1059_v57  ;;  %v5019_v7 = vor.u32 %v5977_v60, %v5016_v3  ;;  %v4888_v14 = vld [vmem:[#allocation12 + $0x128] sm:$0xf0]  ;;  %v5919_v57 = vld [vmem:[#allocation12 + $0x34] sm:$0xf0]  ;;  %v5962_v60 = vld [vmem:[#allocation12 + $0x194] sm:$0xf] }
 0x192   : > { %v4891_v1 = vor.u32 %v5945_v13, %v4888_v14  ;;  %v4856_v34 = vld [vmem:[#allocation12 + $0xe8] sm:$0xf0]  ;;  %v4963_v2 = vor.u32 %v5962_v60, %v4960_v22  ;;  %v5954_v3 = vld [vmem:[#allocation12 + $0x154] sm:$0xf] }
 0x193   : > { %v1232_v26 = vmax.f32 %v1224_v19, 0.0  ;;  %v1233_v27 = vmax.f32 %v1225_v20, 0.0  ;;  %v5951_v19 = vld [vmem:[#allocation12 + $0x134] sm:$0xf0]  ;;  %v4859_v36 = vor.u32 %v5937_v33, %v4856_v34  ;;  %v5930_v14 = vld [vmem:[#allocation12 + $0x94] sm:$0xf] }
 0x194   : > { %v4903_v23 = vor.u32 %v5951_v19, %v4902_v18  ;;  %v5030_v18 = vld [vmem:[#allocation12 + $0x218] sm:$0xf]  ;;  %v5963_v33 = vld [vmem:[#allocation12 + $0x19c] sm:$0xf] }
 0x195   : > { %v7090_v28 = vpack.c.bf16 %v1232_v26, %v1230_v24  ;;  %v7092_v29 = vpack.c.bf16 %v1233_v27, %v1231_v25  ;;  %v5983_v19 = vld [vmem:[#allocation12 + $0x234] sm:$0xf0]  ;;  %v4968_v34 = vld [vmem:[#allocation12 + $0x1b8] sm:$0xf0] }
 0x196   : > { %v1198_v31 = vpop.f32.mrf.mxu0  ;;  %v1217_v32 = vpop.f32.mrf.mxu1 }
 0x197   : > { %1689 = vmatmul.bf16.vlgmr.msrb.gmra.mxu0 %v7090_v28  ;;  %5036 = vmatmul.msk.bf16.vlgmr.msra.gmra.mxu3 %vm1674_vm1, %v7092_v29  ;;  %v1199_v63 = vadd.f32 %v1198_v31, %v1160_v30  ;;  %v1218_v59 = vadd.f32 %v1217_v32, %v1160_v30  ;;  %v4795_v30 = vor.u32 %v5921_v47, %v4792_v48  ;;  %v5939_v47 = vld [vmem:[#allocation12 + $0xdc] sm:$0xf] }
 0x198   : > { %1765 = vmatmul.bf16.vlgmr.msrb.gmra.mxu1 %v7090_v28  ;;  %1795 = vmatpush.bf16.msra.mxu3 %v4987_v38  ;;  %v4871_v38 = vor.u32 %v5943_v37, %v4870_v35  ;;  %v4971_v35 = vor.u32 %v5963_v33, %v4968_v34  ;;  %v4936_v37 = vld [vmem:[#allocation12 + $0x178] sm:$0xf0] }
 0x199   : > { %1909 = vmatpush.bf16.msrb.mxu1 %v4999_v43  ;;  %v1226_v15 = vadd.f32 %v1199_v63, %v1123_v4  ;;  %v1227_v16 = vadd.f32 %v1218_v59, %v1124_v61  ;;  %1821 = vmatpush.bf16.msrb.mxu0 %v5019_v7  ;;  %v4827_v43 = vor.u32 %v5929_v39, %v4824_v41  ;;  %v5970_v59 = vld [vmem:[#allocation12 + $0x1d4] sm:$0xf]  ;;  %v5032_v39 = vld [vmem:[#allocation12 + $0x238] sm:$0xf0] }
 0x19a   : > { %v4775_v63 = vor.u32 %v5919_v57, %v4774_v56  ;;  %v4995_v0 = vor.u32 %v5970_v59, %v4992_v40  ;;  %v4928_v4 = vld [vmem:[#allocation12 + $0x170] sm:$0xf0]  ;;  %v4872_v48 = vld [vmem:[#allocation12 + $0xf8] sm:$0xf0]  ;;  %v4779_v56 = vor.u32 %v5915_v54, %v4776_v55 }
 0x19b   : > { %v1234_v24 = vmax.f32 %v1226_v15, 0.0  ;;  %v1235_v25 = vmax.f32 %v1227_v16, 0.0  ;;  %v5978_v61 = vld [vmem:[#allocation12 + $0x214] sm:$0xf]  ;;  %v4931_v7 = vor.u32 %v5954_v3, %v4928_v4 }
 0x19c   : > { %1796 = vmatpush.bf16.msra.mxu3 %v4955_v50  ;;  %v5927_v50 = vld [vmem:[#allocation12 + $0x74] sm:$0xf0]  ;;  %v4832_v15 = vld [vmem:[#allocation12 + $0xb0] sm:$0xf0] }
 0x19d   : > { %1910 = vmatpush.bf16.msrb.mxu1 %v4967_v53  ;;  %v4807_v53 = vor.u32 %v5927_v50, %v4806_v49  ;;  %v4835_v16 = vor.u32 %v5930_v14, %v4832_v15  ;;  %v4875_v49 = vor.u32 %v5939_v47, %v4872_v48  ;;  %v5931_v50 = vld [vmem:[#allocation12 + $0x9c] sm:$0xf] }
 0x19e   : > { %v1200_v9 = vpop.f32.mrf.mxu0  ;;  %v1219_v11 = vpop.f32.mrf.mxu1  ;;  %v4843_v51 = vor.u32 %v5931_v50, %v4840_v44 }
 0x19f   : > { %v1201_v5 = vadd.f32 %v1200_v9, %v1165_v6  ;;  %v1220_v17 = vadd.f32 %v1219_v11, %v1165_v6  ;;  %v5024_v6 = vld [vmem:[#allocation12 + $0x230] sm:$0xf0] }
 0x1a0   : > { %1797 = vmatpush.bf16.msra.mxu3 %v4923_v62  ;;  %v5027_v62 = vor.u32 %v5978_v61, %v5024_v6  ;;  %v5938_v11 = vld [vmem:[#allocation12 + $0xd4] sm:$0xf] }
 0x1a1   : > { %v1228_v20 = vadd.f32 %v1201_v5, %v1125_v8  ;;  %v1229_v21 = vadd.f32 %v1220_v17, %v1126_v10  ;;  %1911 = vmatpush.bf16.msrb.mxu1 %v4935_v12  ;;  %v5946_v8 = vld [vmem:[#allocation12 + $0x114] sm:$0xf] }
 0x1a2   : > { %v4896_v10 = vld [vmem:[#allocation12 + $0x130] sm:$0xf0] }
 0x1a3   : > { %v1236_v26 = vmax.f32 %v1228_v20, 0.0  ;;  %v1237_v27 = vmax.f32 %v1229_v21, 0.0  ;;  %v4899_v9 = vor.u32 %v5946_v8, %v4896_v10  ;;  %v4864_v12 = vld [vmem:[#allocation12 + $0xf0] sm:$0xf0]  ;;  %v5031_v20 = vor.u32 %v5983_v19, %v5030_v18 }
 0x1a4   : > { %1798 = vmatpush.bf16.msra.mxu3 %v4891_v1  ;;  %v4867_v13 = vor.u32 %v5938_v11, %v4864_v12  ;;  %v5922_v5 = vld [vmem:[#allocation12 + $0x54] sm:$0xf] }
 0x1a5   : > { %v7110_v31 = vpack.c.bf16 %v1236_v26, %v1234_v24  ;;  %v7112_v32 = vpack.c.bf16 %v1237_v27, %v1235_v25  ;;  %1912 = vmatpush.bf16.msrb.mxu1 %v4903_v23  ;;  %v4800_v17 = vld [vmem:[#allocation12 + $0x70] sm:$0xf0]  ;;  %v5971_v25 = vld [vmem:[#allocation12 + $0x1dc] sm:$0xf] }
 0x1a6   : > { %v4803_v21 = vor.u32 %v5922_v5, %v4800_v17  ;;  %v5914_v1 = vld [vmem:[#allocation12 + $0x14] sm:$0xf]  ;;  %v5000_v26 = vld [vmem:[#allocation12 + $0x1f8] sm:$0xf0] }
 0x1a7   : > { %1694 = vmatmul.bf16.vlgmr.msra.gmra.mxu2 %v7110_v31  ;;  %5037 = vmatmul.msk.bf16.gmra.mxu3 %vm1674_vm1, %v7112_v32  ;;  %v4768_v23 = vld [vmem:[#allocation12 + $0x30] sm:$0xf0]  ;;  %v5003_v27 = vor.u32 %v5971_v25, %v5000_v26 }
 0x1a8   : > { %5038 = vmatmul.msk.bf16.vlgmr.msra.gmra.mxu0 %vm1674_vm1, %v7092_v29  ;;  %1770 = vmatmul.bf16.gmra.mxu1 %v7110_v31  ;;  %v4771_v24 = vor.u32 %v5914_v1, %v4768_v23 }
 0x1a9   : > { %1799 = vmatpush.bf16.msra.mxu3 %v4859_v36  ;;  %1913 = vmatpush.bf16.msrb.mxu1 %v4871_v38  ;;  %v5955_v36 = vld [vmem:[#allocation12 + $0x15c] sm:$0xf] }
 0x1aa   : > { %1859 = vmatpush.bf16.msra.mxu2 %v5023_v52  ;;  %1897 = vmatpush.bf16.msra.mxu0 %v5027_v62  ;;  %v5979_v38 = vld [vmem:[#allocation12 + $0x21c] sm:$0xf]  ;;  %v4939_v42 = vor.u32 %v5955_v36, %v4936_v37 }
 0x1ab   : > { %v5035_v41 = vor.u32 %v5979_v38, %v5032_v39  ;;  %v5923_v52 = vld [vmem:[#allocation12 + $0x5c] sm:$0xf] }
 0x1ad   : > { %1800 = vmatpush.bf16.msra.mxu3 %v4827_v43  ;;  %1914 = vmatpush.bf16.msrb.mxu1 %v4839_v46  ;;  %v5947_v43 = vld [vmem:[#allocation12 + $0x11c] sm:$0xf] }
 0x1ae   : > { %v4907_v46 = vor.u32 %v5947_v43, %v4904_v45 }
 0x1b1   : > { %1801 = vmatpush.bf16.msra.mxu3 %v4795_v30  ;;  %1915 = vmatpush.bf16.msrb.mxu1 %v4807_v53  ;;  %v4808_v30 = vld [vmem:[#allocation12 + $0x78] sm:$0xf0] }
 0x1b2   : > { %v4811_v53 = vor.u32 %v5923_v52, %v4808_v30 }
 0x1b5   : > { %1802 = vmatpush.bf16.msra.mxu3 %v4763_v58  ;;  %1916 = vmatpush.bf16.msrb.mxu1 %v4775_v63 }
 0x1b7   : > { %1727 = vmatmul.bf16.vlgmr.msrb.gmra.mxu3 %v7090_v28  ;;  %5040 = vmatmul.msk.bf16.vlgmr.msrb.gmra.mxu2 %vm1674_vm1, %v7092_v29 }
 0x1b8   : > { %5039 = vmatmul.msk.bf16.gmra.mxu0 %vm1674_vm1, %v7112_v32  ;;  %1841 = vmatmul.bf16.vlgmr.msra.gmra.mxu1 %v7090_v28 }
 0x1b9   : > { %1871 = vmatpush.bf16.msrb.mxu3 %v4995_v0  ;;  %1935 = vmatpush.bf16.msrb.mxu2 %v5031_v20 }
 0x1bd   : > { %1872 = vmatpush.bf16.msrb.mxu3 %v4963_v2 }
 0x1c1   : > { %1873 = vmatpush.bf16.msrb.mxu3 %v4931_v7 }
 0x1c5   : > { %1874 = vmatpush.bf16.msrb.mxu3 %v4899_v9 }
 0x1c7   : > { %1732 = vmatmul.bf16.gmra.mxu3 %v7110_v31  ;;  %5041 = vmatmul.msk.bf16.gmra.mxu2 %vm1674_vm1, %v7112_v32 }
 0x1c8   : > { %5042 = vmatmul.msk.bf16.vlgmr.msrb.gmra.mxu0 %vm1674_vm1, %v7092_v29  ;;  %1846 = vmatmul.bf16.gmra.mxu1 %v7110_v31 }
 0x1c9   : > { %1875 = vmatpush.bf16.msrb.mxu3 %v4867_v13  ;;  %1973 = vmatpush.bf16.msrb.mxu0 %v5035_v41 }
 0x1cd   : > { %1876 = vmatpush.bf16.msrb.mxu3 %v4835_v16 }
 0x1d1   : > { %1877 = vmatpush.bf16.msrb.mxu3 %v4803_v21 }
 0x1d5   : > { %1878 = vmatpush.bf16.msrb.mxu3 %v4771_v24 }
 0x1d7   : > { %1803 = vmatmul.bf16.vlgmr.msra.gmra.mxu3 %v7090_v28  ;;  %5044 = vmatmul.msk.bf16.vlgmr.msra.gmra.mxu2 %vm1674_vm1, %v7092_v29 }
 0x1d8   : > { %5043 = vmatmul.msk.bf16.gmra.mxu0 %vm1674_vm1, %v7112_v32  ;;  %1917 = vmatmul.bf16.vlgmr.msrb.gmra.mxu1 %v7090_v28 }
 0x1d9   : > { %1947 = vmatpush.bf16.msra.mxu3 %v5003_v27 }
 0x1dd   : > { %1948 = vmatpush.bf16.msra.mxu3 %v4971_v35 }
 0x1e1   : > { %1949 = vmatpush.bf16.msra.mxu3 %v4939_v42 }
 0x1e5   : > { %1950 = vmatpush.bf16.msra.mxu3 %v4907_v46 }
 0x1e7   : > { %1808 = vmatmul.bf16.gmra.mxu3 %v7110_v31  ;;  %5045 = vmatmul.msk.bf16.gmra.mxu2 %vm1674_vm1, %v7112_v32 }
 0x1e8   : > { %5046 = vmatmul.msk.bf16.vlgmr.msra.gmra.mxu0 %vm1674_vm1, %v7092_v29  ;;  %1922 = vmatmul.bf16.gmra.mxu1 %v7110_v31 }
 0x1e9   : > { %1951 = vmatpush.bf16.msra.mxu3 %v4875_v49 }
 0x1ed   : > { %1952 = vmatpush.bf16.msra.mxu3 %v4843_v51 }
 0x1f1   : > { %1953 = vmatpush.bf16.msra.mxu3 %v4811_v53  ;;  %v7187_v53 = vld [vmem:[%s7991_s13] sm:$0xff] }
 0x1f5   : > { %1954 = vmatpush.bf16.msra.mxu3 %v4779_v56 }
 0x1f7   : > { %1879 = vmatmul.bf16.vlgmr.msrb.gmra.mxu3 %v7090_v28  ;;  %5048 = vmatmul.msk.bf16.vlgmr.msrb.gmra.mxu2 %vm1674_vm1, %v7092_v29 }
 0x1f8   : > { %5047 = vmatmul.msk.bf16.gmra.mxu0 %vm1674_vm1, %v7112_v32 }
 0x207   : > { %1884 = vmatmul.bf16.gmra.mxu3 %v7110_v31  ;;  %5049 = vmatmul.msk.bf16.gmra.mxu2 %vm1674_vm1, %v7112_v32 }
 0x208   : > { %5050 = vmatmul.msk.bf16.vlgmr.msrb.gmra.mxu0 %vm1674_vm1, %v7092_v29 }
 0x214   : > { %v1690_v57 = vpop.f32.mrf.mxu0 }
 0x215   : > { %v1766_v0 = vpop.f32.mrf.mxu1 }
 0x217   : > { %1955 = vmatmul.bf16.vlgmr.msra.gmra.mxu3 %v7090_v28 }
 0x218   : > { %5051 = vmatmul.msk.bf16.gmra.mxu0 %vm1674_vm1, %v7112_v32 }
 0x21a   : > { %v1709_v58 = vpop.f32.mrf.mxu3 }
 0x21b   : > { %v1710_v63 = vadd.f32 %v1709_v58, %v1690_v57 }
 0x21c   : > { %v1692_v59 = vpop.f32.mrf.mxu0 }
 0x21d   : > { %v7158_v3 = vpop.f32.mrf.mxu1 }
 0x222   : > { %v1711_v40 = vpop.f32.mrf.mxu3 }
 0x223   : > { %v1712_v48 = vadd.f32 %v1711_v40, %v1692_v59 }
 0x225   : > { %v1747_v60 = vpop.f32.mrf.mxu0  ;;  %v1771_v6 = vpop.f32.mrf.mxu1 }
 0x227   : > { %1960 = vmatmul.bf16.gmra.mxu3 %v7110_v31 }
 0x22a   : > { %v1695_v22 = vpop.f32.mrf.mxu2  ;;  %v1714_v2 = vpop.f32.mrf.mxu3 }
 0x22b   : > { %v1715_v33 = vadd.f32 %v1714_v2, %v1695_v22 }
 0x22d   : > { %v7160_v4 = vpop.f32.mrf.mxu0  ;;  %v1773_v9 = vpop.f32.mrf.mxu1 }
 0x232   : > { %v1697_v29 = vpop.f32.mrf.mxu2  ;;  %v1716_v61 = vpop.f32.mrf.mxu3 }
 0x233   : > { %v1717_v34 = vadd.f32 %v1716_v61, %v1697_v29 }
 0x235   : > { %v1752_v28 = vpop.f32.mrf.mxu0  ;;  %v1842_v15 = vpop.f32.mrf.mxu1 }
 0x23a   : > { %v1728_v62 = vpop.f32.mrf.mxu3  ;;  %v1785_v32 = vpop.f32.mrf.mxu2 }
 0x23b   : > { %v7162_v7 = vadd.f32 %v1747_v60, %v1728_v62  ;;  %v7164_v8 = vadd.f32 %v1785_v32, %v1766_v0 }
 0x23d   : > { %v1754_v10 = vpop.f32.mrf.mxu0  ;;  %v1844_v18 = vpop.f32.mrf.mxu1 }
 0x242   : > { %v7166_v11 = vpop.f32.mrf.mxu3  ;;  %v7168_v31 = vpop.f32.mrf.mxu2 }
 0x245   : > { %v1823_v12 = vpop.f32.mrf.mxu0  ;;  %v1847_v23 = vpop.f32.mrf.mxu1 }
 0x24a   : > { %v1733_v13 = vpop.f32.mrf.mxu3  ;;  %v1790_v14 = vpop.f32.mrf.mxu2 }
 0x24b   : > { %v1753_v40 = vadd.f32 %v1752_v28, %v1733_v13 }
 0x24d   : > { %v7170_v16 = vpop.f32.mrf.mxu0  ;;  %v1849_v39 = vpop.f32.mrf.mxu1 }
 0x252   : > { %v1735_v5 = vpop.f32.mrf.mxu3  ;;  %v1792_v17 = vpop.f32.mrf.mxu2 }
 0x253   : > { %v1755_v22 = vadd.f32 %v1754_v10, %v1735_v5  ;;  %v1793_v2 = vadd.f32 %v1792_v17, %v1773_v9  ;;  %v1750_v17 = vadd.f32 %v7160_v4, %v7166_v11 }
 0x255   : > { %v7172_v19 = vpop.f32.mrf.mxu0  ;;  %v1918_v49 = vpop.f32.mrf.mxu1 }
 0x25a   : > { %v1804_v20 = vpop.f32.mrf.mxu3  ;;  %v1861_v21 = vpop.f32.mrf.mxu2 }
 0x25b   : > { %v7174_v1 = vadd.f32 %v1823_v12, %v1804_v20  ;;  %v1862_v24 = vadd.f32 %v1861_v21, %v1842_v15 }
 0x25d   : > { %v7176_v25 = vpop.f32.mrf.mxu0  ;;  %v1993_v36 = vadd.f32 %v1862_v24, %v1715_v33  ;;  %v1920_v56 = vpop.f32.mrf.mxu1 }
 0x262   : > { %v7178_v26 = vpop.f32.mrf.mxu3  ;;  %v1863_v27 = vpop.f32.mrf.mxu2 }
 0x263   : > { %v1864_v35 = vadd.f32 %v1863_v27, %v1844_v18  ;;  %v1788_v27 = vadd.f32 %v7168_v31, %v7158_v3 }
 0x265   : > { %v1997_v37 = vadd.f32 %v1864_v35, %v1717_v34  ;;  %v1899_v43 = vpop.f32.mrf.mxu0  ;;  %v1923_v18 = vpop.f32.mrf.mxu1 }
 0x267   : > { %v2013_v38 = vpack.c.bf16 %v1997_v37, %v1993_v36 }
 0x269   : > { %2059 = vmatpush.bf16.msra.mxu1 %v2013_v38 }
 0x26a   : > { %v7180_v41 = vpop.f32.mrf.mxu3  ;;  %v1866_v42 = vpop.f32.mrf.mxu2 }
 0x26b   : > { %v1867_v45 = vadd.f32 %v1866_v42, %v1847_v23  ;;  %v5985_v23 = vld [vmem:[%s7991_s13 + $0x8] sm:$0xff] }
 0x26d   : > { %v1985_v44 = vsub.f32 %v1710_v63, %v1867_v45  ;;  %v1901_v51 = vpop.f32.mrf.mxu0  ;;  %v1791_v63 = vadd.f32 %v1790_v14, %v1771_v6  ;;  %v1925_v10 = vpop.f32.mrf.mxu1 }
 0x272   : > { %v7182_v46 = vpop.f32.mrf.mxu3  ;;  %v1868_v47 = vpop.f32.mrf.mxu2 }
 0x273   : > { %v1869_v50 = vadd.f32 %v1868_v47, %v1849_v39 }
 0x275   : > { %v1989_v52 = vsub.f32 %v1712_v48, %v1869_v50  ;;  %v1904_v57 = vpop.f32.mrf.mxu0 }
 0x277   : > { %v2009_v30 = vpack.c.bf16 %v1989_v52, %v1985_v44 }
 0x279   : > { %2060 = vmatpush.bf16.msra.mxu1 %v2009_v30 }
 0x27a   : > { %v1880_v54 = vpop.f32.mrf.mxu3  ;;  %v1937_v55 = vpop.f32.mrf.mxu2 }
 0x27b   : > { %v1900_v58 = vadd.f32 %v1899_v43, %v1880_v54  ;;  %v1938_v59 = vadd.f32 %v1937_v55, %v1918_v49 }
 0x27c   : > { %5060 = vmatmul.msk.bf16.vlgmr.msra.gmra.mxu1 %vm1177_vm0, %v7187_v53 }
 0x27d   : > { %v1994_v62 = vadd.f32 %v1900_v58, %v1753_v40  ;;  %v1995_v32 = vadd.f32 %v1938_v59, %v1791_v63  ;;  %v1906_v24 = vpop.f32.mrf.mxu0  ;;  %v2035_v59 = vpop.permute.xlu2 %2034 }
 0x282   : > { %v1882_v0 = vpop.f32.mrf.mxu3  ;;  %v1939_v60 = vpop.f32.mrf.mxu2 }
 0x283   : > { %v1902_v29 = vadd.f32 %v1901_v51, %v1882_v0  ;;  %v1940_v61 = vadd.f32 %v1939_v60, %v1920_v56  ;;  %v2020_v60 = vpop.permute.xlu0 %2019 }
 0x285   : > { %v1998_v12 = vadd.f32 %v1902_v29, %v1755_v22  ;;  %v1999_v15 = vadd.f32 %v1940_v61, %v1793_v2  ;;  %v1975_v35 = vpop.f32.mrf.mxu0 }
 0x287   : > { %v2014_v20 = vpack.c.bf16 %v1998_v12, %v1994_v62  ;;  %v2015_v21 = vpack.c.bf16 %v1999_v15, %v1995_v32  ;;  %v5986_v32 = vld [vmem:[%s7991_s13 + $0x10] sm:$0xff] }
 0x289   : > { %2078 = vmatpush.bf16.msra.mxu2 %v2014_v20  ;;  %2097 = vmatpush.bf16.msrb.mxu3 %v2015_v21  ;;  %v5987_v21 = vld [vmem:[%s7991_s13 + $0x18] sm:$0xff] }
 0x28a   : > { %v1885_v28 = vpop.f32.mrf.mxu3  ;;  %v1942_v6 = vpop.f32.mrf.mxu2 }
 0x28b   : > { %v1905_v9 = vadd.f32 %v1904_v57, %v1885_v28  ;;  %v1943_v13 = vadd.f32 %v1942_v6, %v1923_v18  ;;  %v2030_v57 = vpop.permute.xlu1 %2029 }
 0x28c   : > { %5061 = vmatmul.msk.bf16.gmra.mxu1 %vm1177_vm0, %v5985_v23 }
 0x28d   : > { %v1986_v36 = vsub.f32 %v7162_v7, %v1905_v9  ;;  %v1987_v37 = vsub.f32 %v7164_v8, %v1943_v13  ;;  %v1977_v3 = vpop.f32.mrf.mxu0  ;;  %v1829_v7 = vadd.f32 %v7172_v19, %v7180_v41  ;;  %v1831_v8 = vadd.f32 %v7176_v25, %v7182_v46 }
 0x28e   : > { %v1826_v19 = vadd.f32 %v7170_v16, %v7178_v26 }
 0x292   : > { %v1887_v14 = vpop.f32.mrf.mxu3  ;;  %v1944_v5 = vpop.f32.mrf.mxu2 }
 0x293   : > { %v1907_v33 = vadd.f32 %v1906_v24, %v1887_v14  ;;  %v1945_v34 = vadd.f32 %v1944_v5, %v1925_v10  ;;  %v2025_v63 = vpop.permute.xlu1 %2024 }
 0x295   : > { %v1990_v38 = vsub.f32 %v1750_v17, %v1907_v33  ;;  %v1991_v39 = vsub.f32 %v1788_v27, %v1945_v34  ;;  %v1980_v50 = vpop.f32.mrf.mxu0 }
 0x297   : > { %v2010_v42 = vpack.c.bf16 %v1990_v38, %v1986_v36  ;;  %v2011_v43 = vpack.c.bf16 %v1991_v39, %v1987_v37 }
 0x299   : > { %2079 = vmatpush.bf16.msra.mxu2 %v2010_v42  ;;  %2098 = vmatpush.bf16.msrb.mxu3 %v2011_v43 }
 0x29a   : > { %v1956_v45 = vpop.f32.mrf.mxu3 }
 0x29b   : > { %v1976_v4 = vadd.f32 %v1975_v35, %v1956_v45 }
 0x29c   : > { %5062 = vmatmul.msk.bf16.vlgmr.msra.gmra.mxu2 %vm1177_vm0, %v7187_v53  ;;  %5064 = vmatmul.msk.bf16.vlgmr.msrb.gmra.mxu3 %vm1177_vm0, %v7187_v53 }
 0x29d   : > { %v1996_v47 = vadd.f32 %v1976_v4, %v1829_v7  ;;  %v1982_v52 = vpop.f32.mrf.mxu0 }
 0x2a2   : > { %v1958_v11 = vpop.f32.mrf.mxu3 }
 0x2a3   : > { %v1978_v31 = vadd.f32 %v1977_v3, %v1958_v11 }
 0x2a5   : > { %v2000_v48 = vadd.f32 %v1978_v31, %v1831_v8 }
 0x2a7   : > { %v2016_v49 = vpack.c.bf16 %v2000_v48, %v1996_v47 }
 0x2a9   : > { %2116 = vmatpush.bf16.msra.mxu0 %v2016_v49 }
 0x2aa   : > { %v1961_v44 = vpop.f32.mrf.mxu3 }
 0x2ab   : > { %v1981_v51 = vadd.f32 %v1980_v50, %v1961_v44 }
 0x2ac   : > { %5063 = vmatmul.msk.bf16.gmra.mxu2 %vm1177_vm0, %v5985_v23  ;;  %5065 = vmatmul.msk.bf16.gmra.mxu3 %vm1177_vm0, %v5985_v23 }
 0x2ad   : > { %v1988_v25 = vsub.f32 %v7174_v1, %v1981_v51 }
 0x2b2   : > { %v1963_v30 = vpop.f32.mrf.mxu3 }
 0x2b3   : > { %v1983_v41 = vadd.f32 %v1982_v52, %v1963_v30 }
 0x2b5   : > { %v1992_v46 = vsub.f32 %v1826_v19, %v1983_v41 }
 0x2b7   : > { %v2012_v54 = vpack.c.bf16 %v1992_v46, %v1988_v25 }
 0x2b9   : > { %2117 = vmatpush.bf16.msra.mxu0 %v2012_v54 }
 0x2bc   : > { %5066 = vmatmul.msk.bf16.vlgmr.msra.gmra.mxu0 %vm1177_vm0, %v7187_v53 }
 0x2cc   : > { %5067 = vmatmul.msk.bf16.gmra.mxu0 %vm1177_vm0, %v5985_v23 }
 0x2f9   : > { %v2062_v55 = vpop.f32.mrf.mxu1 }
 0x2fa   : > { %v2063_v1 = vadd.f32 %v2062_v55, %v2020_v60 }
 0x2fc   : > { %v2129_v62 = vmax.f32 %v2063_v1, 0.0  ;;  %v7249_v1 = vld [vmem:[%s8038_s18] sm:$0xf]  ;;  %s8046_s18 = sld [smem:[#allocation40_spill]] }
 0x301   : > { %v2064_v56 = vpop.f32.mrf.mxu1 }
 0x302   : > { %v2065_v16 = vadd.f32 %v2064_v56, %v2025_v63  ;;  %s905_s16 = scalar_lea.vmem %s8046_s18, %s6185_s8 }
 0x304   : > { %v2133_v29 = vmax.f32 %v2065_v16, 0.0 }
 0x306   : > { %v2155_v53 = vpack.c.bf16 %v2133_v29, %v2129_v62 }
 0x309   : > { %v2067_v58 = vpop.f32.mrf.mxu1 }
 0x30a   : > { %v2068_v40 = vadd.f32 %v2067_v58, %v2030_v57  ;;  %v7233_v58 = vpop.permute.xlu2 %2165 }
 0x30c   : > { %v2137_v22 = vmax.f32 %v2068_v40, 0.0 }
 0x311   : > { %v2069_v0 = vpop.f32.mrf.mxu1 }
 0x312   : > { %v2070_v26 = vadd.f32 %v2069_v0, %v2035_v59  ;;  %v7237_v0 = vpop.permute.xlu1 %2175 }
 0x314   : > { %v2141_v2 = vmax.f32 %v2070_v26, 0.0  ;;  %v7239_v26 = vpop.permute.xlu2 %2180 }
 0x316   : > { %v2159_v61 = vpack.c.bf16 %v2141_v2, %v2137_v22 }
 0x318   : > { %2205 = vmatpush.bf16.msrb.mxu1 %v2159_v61  ;;  %v7254_v61 = vpop.permute.xlu0 %2170 }
 0x31c   : > { %2206 = vmatpush.bf16.msrb.mxu1 %v2155_v53 }
 0x31f   : > { %v2081_v12 = vpop.f32.mrf.mxu2  ;;  %v2100_v15 = vpop.f32.mrf.mxu3  ;;  %5084 = vmatmul.msk.bf16.vlgmr.msrb.gmra.mxu1 %vm1177_vm0, %v5986_v32 }
 0x320   : > { %v2082_v27 = vadd.f32 %v2081_v12, %v2020_v60  ;;  %v2101_v33 = vadd.f32 %v2100_v15, %v2020_v60 }
 0x322   : > { %v2130_v3 = vmax.f32 %v2082_v27, 0.0  ;;  %v2131_v4 = vmax.f32 %v2101_v33, 0.0 }
 0x327   : > { %v2083_v18 = vpop.f32.mrf.mxu2  ;;  %v2102_v20 = vpop.f32.mrf.mxu3 }
 0x328   : > { %v2084_v13 = vadd.f32 %v2083_v18, %v2025_v63  ;;  %v2103_v14 = vadd.f32 %v2102_v20, %v2025_v63  ;;  %v2295_v18 = vperm.slane %v7249_v1, 0 }
 0x32a   : > { %v2134_v39 = vmax.f32 %v2084_v13, 0.0  ;;  %v2135_v42 = vmax.f32 %v2103_v14, 0.0 }
 0x32c   : > { %v2156_v11 = vpack.c.bf16 %v2134_v39, %v2130_v3  ;;  %v2157_v7 = vpack.c.bf16 %v2135_v42, %v2131_v4 }
 0x32f   : > { %v2086_v23 = vpop.f32.mrf.mxu2  ;;  %v2105_v24 = vpop.f32.mrf.mxu3  ;;  %5085 = vmatmul.msk.bf16.gmra.mxu1 %vm1177_vm0, %v5987_v21 }
 0x330   : > { %v2087_v28 = vadd.f32 %v2086_v23, %v2030_v57  ;;  %v2106_v6 = vadd.f32 %v2105_v24, %v2030_v57 }
 0x332   : > { %v2138_v35 = vmax.f32 %v2087_v28, 0.0  ;;  %v2139_v36 = vmax.f32 %v2106_v6, 0.0 }
 0x337   : > { %v2088_v10 = vpop.f32.mrf.mxu2  ;;  %v2107_v9 = vpop.f32.mrf.mxu3 }
 0x338   : > { %v2089_v5 = vadd.f32 %v2088_v10, %v2035_v59  ;;  %v2108_v17 = vadd.f32 %v2107_v9, %v2035_v59 }
 0x339   : > { %v2119_v34 = vpop.f32.mrf.mxu0 }
 0x33a   : > { %v2142_v37 = vmax.f32 %v2089_v5, 0.0  ;;  %v2143_v38 = vmax.f32 %v2108_v17, 0.0  ;;  %v2120_v44 = vadd.f32 %v2119_v34, %v2020_v60  ;;  %v7244_v60 = vld [vmem:[%s7988_s10] sm:$0xf] }
 0x33b   : > { %v2280_v53 = vperm.slane %v7244_v60, 2  ;;  %v2278_v15 = vperm.slane %v7244_v60, 0 }
 0x33c   : > { %v2160_v43 = vpack.c.bf16 %v2142_v37, %v2138_v35  ;;  %v2161_v45 = vpack.c.bf16 %v2143_v38, %v2139_v36  ;;  %v2132_v41 = vmax.f32 %v2120_v44, 0.0 }
 0x33e   : > { %2224 = vmatpush.bf16.msrb.mxu2 %v2160_v43  ;;  %2243 = vmatpush.bf16.msra.mxu3 %v2161_v45 }
 0x341   : > { %v2121_v8 = vpop.f32.mrf.mxu0 }
 0x342   : > { %2225 = vmatpush.bf16.msrb.mxu2 %v2156_v11  ;;  %2244 = vmatpush.bf16.msra.mxu3 %v2157_v7  ;;  %v2122_v49 = vadd.f32 %v2121_v8, %v2025_v63 }
 0x344   : > { %v2136_v30 = vmax.f32 %v2122_v49, 0.0 }
 0x345   : > { %5086 = vmatmul.msk.bf16.vlgmr.msrb.gmra.mxu2 %vm1177_vm0, %v5986_v32  ;;  %5088 = vmatmul.msk.bf16.vlgmr.msra.gmra.mxu3 %vm1177_vm0, %v5986_v32 }
 0x346   : > { %v2158_v25 = vpack.c.bf16 %v2136_v30, %v2132_v41 }
 0x349   : > { %v2124_v31 = vpop.f32.mrf.mxu0 }
 0x34a   : > { %v2125_v47 = vadd.f32 %v2124_v31, %v2030_v57 }
 0x34c   : > { %v2140_v51 = vmax.f32 %v2125_v47, 0.0 }
 0x351   : > { %v2126_v48 = vpop.f32.mrf.mxu0 }
 0x352   : > { %v2127_v50 = vadd.f32 %v2126_v48, %v2035_v59 }
 0x354   : > { %v2144_v52 = vmax.f32 %v2127_v50, 0.0 }
 0x355   : > { %5087 = vmatmul.msk.bf16.gmra.mxu2 %vm1177_vm0, %v5987_v21  ;;  %5089 = vmatmul.msk.bf16.gmra.mxu3 %vm1177_vm0, %v5987_v21 }
 0x356   : > { %v2162_v19 = vpack.c.bf16 %v2144_v52, %v2140_v51 }
 0x358   : > { %2262 = vmatpush.bf16.msrb.mxu0 %v2162_v19 }
 0x35c   : > { %2263 = vmatpush.bf16.msrb.mxu0 %v2158_v25 }
 0x35f   : > { %5090 = vmatmul.msk.bf16.vlgmr.msrb.gmra.mxu0 %vm1177_vm0, %v5986_v32  ;;  %v2297_v32 = vperm.slane %v7249_v1, 2 }
 0x36f   : > { %5091 = vmatmul.msk.bf16.gmra.mxu0 %vm1177_vm0, %v5987_v21 }
 0x39c   : > { %v2208_v46 = vpop.f32.mrf.mxu1 }
 0x39d   : > { %v2209_v12 = vadd.f32 %v2208_v46, %v7233_v58 }
 0x39f   : > { %v2319_v9 = vmul.f32 %v2295_v18, %v2209_v12  ;;  %v2286_v4 = vmul.f32 %v2278_v15, %v2209_v12 }
 0x3a4   : > { %v2210_v54 = vpop.f32.mrf.mxu1 }
 0x3a5   : > { %v2211_v20 = vadd.f32 %v2210_v54, %v7254_v61 }
 0x3a7   : > { %v2323_v13 = vmul.f32 %v2295_v18, %v2211_v20  ;;  %v2290_v17 = vmul.f32 %v2278_v15, %v2211_v20 }
 0x3ac   : > { %v2213_v56 = vpop.f32.mrf.mxu1 }
 0x3ad   : > { %v2214_v2 = vadd.f32 %v2213_v56, %v7237_v0 }
 0x3af   : > { %v2327_v24 = vmul.f32 %v2278_v15, %v2214_v2  ;;  %v2303_v36 = vmul.f32 %v2295_v18, %v2214_v2 }
 0x3b1   : > { %v2335_v37 = vadd.f32 %v2327_v24, %v2319_v9  ;;  %v2311_v49 = vsub.f32 %v2286_v4, %v2303_v36 }
 0x3b3   : > { %v2351_v50 = vmax.f32 %v2335_v37, 0.0  ;;  %v2343_v46 = vmax.f32 %v2311_v49, 0.0 }
 0x3b4   : > { %v2215_v40 = vpop.f32.mrf.mxu1 }
 0x3b5   : > { %v2216_v29 = vadd.f32 %v2215_v40, %v7239_v26 }
 0x3b7   : > { %v2331_v28 = vmul.f32 %v2278_v15, %v2216_v29  ;;  %v2307_v14 = vmul.f32 %v2295_v18, %v2216_v29  ;;  %v2279_v15 = vperm.slane %v7244_v60, 1  ;;  %v2296_v18 = vperm.slane %v7249_v1, 1 }
 0x3b9   : > { %v2339_v38 = vadd.f32 %v2331_v28, %v2323_v13  ;;  %v2315_v11 = vsub.f32 %v2290_v17, %v2307_v14 }
 0x3bb   : > { %v2355_v44 = vmax.f32 %v2339_v38, 0.0  ;;  %v2347_v30 = vmax.f32 %v2315_v11, 0.0 }
 0x3c8   : > { %v2246_v55 = vpop.f32.mrf.mxu3  ;;  %v7231_v57 = vpop.f32.mrf.mxu2 }
 0x3c9   : > { %v2247_v62 = vadd.f32 %v2246_v55, %v7233_v58  ;;  %v2228_v12 = vadd.f32 %v7231_v57, %v7233_v58 }
 0x3cb   : > { %v2321_v6 = vmul.f32 %v2297_v32, %v2247_v62  ;;  %v2288_v39 = vmul.f32 %v2280_v53, %v2247_v62  ;;  %v2281_v62 = vperm.slane %v7244_v60, 3 }
 0x3d0   : > { %v2248_v59 = vpop.f32.mrf.mxu3  ;;  %v7235_v63 = vpop.f32.mrf.mxu2 }
 0x3d1   : > { %v2249_v10 = vadd.f32 %v2248_v59, %v7254_v61  ;;  %v2230_v20 = vadd.f32 %v7235_v63, %v7254_v61 }
 0x3d3   : > { %v2292_v42 = vmul.f32 %v2280_v53, %v2249_v10  ;;  %v2325_v43 = vmul.f32 %v2297_v32, %v2249_v10  ;;  %v2320_v10 = vmul.f32 %v2296_v18, %v2228_v12  ;;  %v2324_v57 = vmul.f32 %v2296_v18, %v2230_v20 }
 0x3d8   : > { %v2251_v16 = vpop.f32.mrf.mxu3  ;;  %v2232_v27 = vpop.f32.mrf.mxu2 }
 0x3d9   : > { %v2252_v22 = vadd.f32 %v2251_v16, %v7237_v0 }
 0x3db   : > { %v2329_v23 = vmul.f32 %v2280_v53, %v2252_v22  ;;  %v2305_v33 = vmul.f32 %v2297_v32, %v2252_v22  ;;  %v2233_v22 = vadd.f32 %v2232_v27, %v7237_v0 }
 0x3dc   : > { %v2265_v21 = vpop.f32.mrf.mxu0 }
 0x3dd   : > { %v2337_v34 = vadd.f32 %v2329_v23, %v2321_v6  ;;  %v2313_v8 = vsub.f32 %v2288_v39, %v2305_v33  ;;  %v2266_v29 = vadd.f32 %v2265_v21, %v7233_v58  ;;  %v2328_v23 = vmul.f32 %v2279_v15, %v2233_v22 }
 0x3de   : > { %v2304_v14 = vmul.f32 %v2296_v18, %v2233_v22 }
 0x3df   : > { %v2353_v31 = vmax.f32 %v2337_v34, 0.0  ;;  %v2345_v19 = vmax.f32 %v2313_v8, 0.0  ;;  %v2289_v17 = vmul.f32 %v2281_v62, %v2266_v29 }
 0x3e0   : > { %v2253_v5 = vpop.f32.mrf.mxu3  ;;  %v2234_v54 = vpop.f32.mrf.mxu2 }
 0x3e1   : > { %v2254_v35 = vadd.f32 %v2253_v5, %v7239_v26  ;;  %v2363_v41 = vadd.f32 %v2353_v31, %v2351_v50  ;;  %v2359_v16 = vadd.f32 %v2345_v19, %v2343_v46  ;;  %v2235_v2 = vadd.f32 %v2234_v54, %v7239_v26  ;;  %v2399_v46 = vpop.permute.xlu1 %2398 }
 0x3e2   : > { %v2336_v5 = vadd.f32 %v2328_v23, %v2320_v10 }
 0x3e3   : > { %v2309_v45 = vmul.f32 %v2297_v32, %v2254_v35  ;;  %v2333_v3 = vmul.f32 %v2280_v53, %v2254_v35  ;;  %v2298_v53 = vperm.slane %v7249_v1, 3  ;;  %v2332_v24 = vmul.f32 %v2279_v15, %v2235_v2 }
 0x3e4   : > { %v2267_v7 = vpop.f32.mrf.mxu0  ;;  %v2308_v58 = vmul.f32 %v2296_v18, %v2235_v2  ;;  %v2291_v1 = vmul.f32 %v2279_v15, %v2230_v20  ;;  %v5990_v20 = vld [vmem:[%s7991_s13 + $0x30] sm:$0xff] }
 0x3e5   : > { %v2317_v47 = vsub.f32 %v2292_v42, %v2309_v45  ;;  %v2341_v48 = vadd.f32 %v2333_v3, %v2325_v43  ;;  %v2322_v28 = vmul.f32 %v2298_v53, %v2266_v29  ;;  %v2268_v6 = vadd.f32 %v2267_v7, %v7254_v61 }
 0x3e6   : > { %v2340_v27 = vadd.f32 %v2332_v24, %v2324_v57  ;;  %v2287_v61 = vmul.f32 %v2279_v15, %v2228_v12  ;;  %v2316_v37 = vsub.f32 %v2291_v1, %v2308_v58  ;;  %v2352_v3 = vmax.f32 %v2336_v5, 0.0  ;;  %v5991_v24 = vld [vmem:[%s7991_s13 + $0x38] sm:$0xff] }
 0x3e7   : > { %v2349_v51 = vmax.f32 %v2317_v47, 0.0  ;;  %v2357_v52 = vmax.f32 %v2341_v48, 0.0  ;;  %v2293_v33 = vmul.f32 %v2281_v62, %v2268_v6  ;;  %v2326_v34 = vmul.f32 %v2298_v53, %v2268_v6 }
 0x3e8   : > { %v2312_v45 = vsub.f32 %v2287_v61, %v2304_v14  ;;  %v2356_v4 = vmax.f32 %v2340_v27, 0.0  ;;  %v2551_v27 = vld [vmem:[%s8039_s9] sm:$0x3]  ;;  %s8042_s9 = sld [smem:[#allocation25_spill]] }
 0x3e9   : > { %v2365_v25 = vadd.f32 %v2357_v52, %v2355_v44  ;;  %v2361_v56 = vadd.f32 %v2349_v51, %v2347_v30  ;;  %v5989_v44 = vld [vmem:[%s7991_s13 + $0x28] sm:$0xff]  ;;  %v2490_v5 = vpop.permute.xlu1 %2489  ;;  %v2553_v61 = vperm.slane %v2551_v27, 0 }
 0x3ea   : > { %v2344_v48 = vmax.f32 %v2312_v45, 0.0 }
 0x3eb   : > { %v2379_v55 = vpack.c.bf16 %v2365_v25, %v2363_v41  ;;  %v2377_v32 = vpack.c.bf16 %v2361_v56, %v2359_v16  ;;  %v2394_v41 = vpop.permute.xlu0 %2393  ;;  %v2384_v16 = vpop.permute.xlu2 %2383 }
 0x3ec   : > { %v2270_v59 = vpop.f32.mrf.mxu0 }
 0x3ed   : > { %v2271_v40 = vadd.f32 %v2270_v59, %v7237_v0  ;;  %2423 = vmatpush.bf16.msra.mxu1 %v2379_v55  ;;  %v5988_v0 = vld [vmem:[%s7991_s13 + $0x20] sm:$0xff] }
 0x3ee   : > { %s896_s2 = scalar_lea.vmem %s8042_s9, %s6184_s3 }
 0x3ef   : > { %v2330_v21 = vmul.f32 %v2281_v62, %v2271_v40  ;;  %v2306_v9 = vmul.f32 %v2298_v53, %v2271_v40 }
 0x3f1   : > { %2424 = vmatpush.bf16.msra.mxu1 %v2377_v32  ;;  %v2338_v63 = vadd.f32 %v2330_v21, %v2322_v28  ;;  %v2314_v38 = vsub.f32 %v2289_v17, %v2306_v9 }
 0x3f3   : > { %v2354_v39 = vmax.f32 %v2338_v63, 0.0  ;;  %v2346_v8 = vmax.f32 %v2314_v38, 0.0  ;;  %v2389_v55 = vpop.permute.xlu0 %2388 }
 0x3f4   : > { %v2272_v60 = vpop.f32.mrf.mxu0  ;;  %5108 = vmatmul.msk.bf16.vlgmr.msra.gmra.mxu1 %vm1177_vm0, %v5988_v0 }
 0x3f5   : > { %v2273_v13 = vadd.f32 %v2272_v60, %v7239_v26  ;;  %v2348_v26 = vmax.f32 %v2316_v37, 0.0  ;;  %v2364_v31 = vadd.f32 %v2354_v39, %v2352_v3  ;;  %v2360_v51 = vadd.f32 %v2346_v8, %v2344_v48 }
 0x3f7   : > { %v2310_v35 = vmul.f32 %v2298_v53, %v2273_v13  ;;  %v2334_v36 = vmul.f32 %v2281_v62, %v2273_v13 }
 0x3f9   : > { %v2318_v42 = vsub.f32 %v2293_v33, %v2310_v35  ;;  %v2342_v43 = vadd.f32 %v2334_v36, %v2326_v34  ;;  %v2485_v35 = vpop.permute.xlu1 %2484  ;;  %v2495_v36 = vpop.permute.xlu2 %2494 }
 0x3fb   : > { %v2350_v11 = vmax.f32 %v2318_v42, 0.0  ;;  %v2358_v7 = vmax.f32 %v2342_v43, 0.0  ;;  %v2480_v38 = vpop.permute.xlu0 %2479 }
 0x3fd   : > { %v2366_v47 = vadd.f32 %v2358_v7, %v2356_v4  ;;  %v2362_v50 = vadd.f32 %v2350_v11, %v2348_v26 }
 0x3ff   : > { %v2380_v49 = vpack.c.bf16 %v2366_v47, %v2364_v31  ;;  %v2378_v52 = vpack.c.bf16 %v2362_v50, %v2360_v51 }
 0x401   : > { %2442 = vmatpush.bf16.msra.mxu2 %v2380_v49 }
 0x404   : > { %5109 = vmatmul.msk.bf16.gmra.mxu1 %vm1177_vm0, %v5989_v44 }
 0x405   : > { %2443 = vmatpush.bf16.msra.mxu2 %v2378_v52  ;;  %v2554_v52 = vperm.slane %v2551_v27, 1 }
 0x408   : > { %5110 = vmatmul.msk.bf16.vlgmr.msra.gmra.mxu2 %vm1177_vm0, %v5988_v0 }
 0x418   : > { %5111 = vmatmul.msk.bf16.gmra.mxu2 %vm1177_vm0, %v5989_v44  ;;  %v5992_v44 = vld [vmem:[%s7991_s13 + $0x40] sm:$0xff] }
 0x471   : > { %v2426_v30 = vpop.f32.mrf.mxu1 }
 0x472   : > { %v2427_v2 = vadd.f32 %v2426_v30, %v2384_v16 }
 0x474   : > { %v2455_v12 = vmax.f32 %v2427_v2, 0.0  ;;  %v5993_v2 = vld [vmem:[%s7991_s13 + $0x48] sm:$0xff] }
 0x479   : > { %v2428_v19 = vpop.f32.mrf.mxu1 }
 0x47a   : > { %v2429_v59 = vadd.f32 %v2428_v19, %v2389_v55 }
 0x47c   : > { %v2457_v53 = vmax.f32 %v2429_v59, 0.0 }
 0x47e   : > { %v2473_v15 = vpack.c.bf16 %v2457_v53, %v2455_v12  ;;  %v2600_v12 = vpop.permute.xlu2 %2599 }
 0x481   : > { %v2431_v25 = vpop.f32.mrf.mxu1 }
 0x482   : > { %v2432_v54 = vadd.f32 %v2431_v25, %v2394_v41 }
 0x484   : > { %v2459_v29 = vmax.f32 %v2432_v54, 0.0 }
 0x489   : > { %v2433_v56 = vpop.f32.mrf.mxu1 }
 0x48a   : > { %v2434_v40 = vadd.f32 %v2433_v56, %v2399_v46 }
 0x48b   : > { %v2445_v22 = vpop.f32.mrf.mxu2 }
 0x48c   : > { %v2461_v62 = vmax.f32 %v2434_v40, 0.0  ;;  %v2446_v10 = vadd.f32 %v2445_v22, %v2384_v16 }
 0x48e   : > { %v2475_v32 = vpack.c.bf16 %v2461_v62, %v2459_v29  ;;  %v2456_v9 = vmax.f32 %v2446_v10, 0.0 }
 0x490   : > { %2519 = vmatpush.bf16.msrb.mxu3 %v2475_v32 }
 0x493   : > { %v2447_v18 = vpop.f32.mrf.mxu2 }
 0x494   : > { %2520 = vmatpush.bf16.msrb.mxu3 %v2473_v15  ;;  %v2448_v28 = vadd.f32 %v2447_v18, %v2389_v55  ;;  %v2595_v18 = vpop.permute.xlu2 %2594 }
 0x496   : > { %v2458_v60 = vmax.f32 %v2448_v28, 0.0  ;;  %v2590_v28 = vpop.permute.xlu1 %2589 }
 0x497   : > { %5128 = vmatmul.msk.bf16.vlgmr.msrb.gmra.mxu3 %vm1177_vm0, %v5990_v20 }
 0x498   : > { %v2474_v63 = vpack.c.bf16 %v2458_v60, %v2456_v9 }
 0x49b   : > { %v2450_v0 = vpop.f32.mrf.mxu2 }
 0x49c   : > { %v2451_v21 = vadd.f32 %v2450_v0, %v2394_v41  ;;  %v2605_v0 = vpop.permute.xlu0 %2604 }
 0x49e   : > { %v2460_v57 = vmax.f32 %v2451_v21, 0.0 }
 0x4a3   : > { %v2452_v23 = vpop.f32.mrf.mxu2 }
 0x4a4   : > { %v2453_v6 = vadd.f32 %v2452_v23, %v2399_v46 }
 0x4a6   : > { %v2462_v58 = vmax.f32 %v2453_v6, 0.0 }
 0x4a7   : > { %5129 = vmatmul.msk.bf16.gmra.mxu3 %vm1177_vm0, %v5991_v24 }
 0x4a8   : > { %v2476_v1 = vpack.c.bf16 %v2462_v58, %v2460_v57 }
 0x4aa   : > { %2538 = vmatpush.bf16.msra.mxu0 %v2476_v1 }
 0x4ae   : > { %2539 = vmatpush.bf16.msra.mxu0 %v2474_v63 }
 0x4b1   : > { %5130 = vmatmul.msk.bf16.vlgmr.msra.gmra.mxu0 %vm1177_vm0, %v5990_v20 }
 0x4c1   : > { %5131 = vmatmul.msk.bf16.gmra.mxu0 %vm1177_vm0, %v5991_v24 }
 0x51a   : > { %v2522_v13 = vpop.f32.mrf.mxu3 }
 0x51b   : > { %v2523_v42 = vadd.f32 %v2522_v13, %v2480_v38 }
 0x51d   : > { %v2557_v7 = vmul.f32 %v2553_v61, %v2523_v42 }
 0x51f   : > { %v2565_v48 = vmax.f32 %v2557_v7, 0.0 }
 0x522   : > { %v2524_v14 = vpop.f32.mrf.mxu3 }
 0x523   : > { %v2525_v37 = vadd.f32 %v2524_v14, %v2485_v35  ;;  %v5994_v14 = vld [vmem:[%s7991_s13 + $0x50] sm:$0xff] }
 0x525   : > { %v2559_v3 = vmul.f32 %v2553_v61, %v2525_v37 }
 0x527   : > { %v2567_v31 = vmax.f32 %v2559_v3, 0.0 }
 0x529   : > { %v2583_v49 = vpack.c.bf16 %v2567_v31, %v2565_v48 }
 0x52a   : > { %v2527_v17 = vpop.f32.mrf.mxu3 }
 0x52b   : > { %v2528_v34 = vadd.f32 %v2527_v17, %v2490_v5 }
 0x52d   : > { %v2561_v43 = vmul.f32 %v2553_v61, %v2528_v34 }
 0x52e   : > { %v2541_v33 = vpop.f32.mrf.mxu0 }
 0x52f   : > { %v2569_v26 = vmax.f32 %v2561_v43, 0.0  ;;  %v2542_v41 = vadd.f32 %v2541_v33, %v2480_v38  ;;  %v5995_v33 = vld [vmem:[%s7991_s13 + $0x58] sm:$0xff] }
 0x531   : > { %v2558_v56 = vmul.f32 %v2554_v52, %v2542_v41 }
 0x532   : > { %v2529_v39 = vpop.f32.mrf.mxu3 }
 0x533   : > { %v2530_v45 = vadd.f32 %v2529_v39, %v2495_v36  ;;  %v2566_v29 = vmax.f32 %v2558_v56, 0.0 }
 0x535   : > { %v2563_v4 = vmul.f32 %v2553_v61, %v2530_v45 }
 0x536   : > { %v2543_v11 = vpop.f32.mrf.mxu0 }
 0x537   : > { %v2571_v8 = vmax.f32 %v2563_v4, 0.0  ;;  %v2544_v30 = vadd.f32 %v2543_v11, %v2485_v35  ;;  %v2696_v4 = vpop.permute.xlu0 %2695 }
 0x539   : > { %v2585_v47 = vpack.c.bf16 %v2571_v8, %v2569_v26  ;;  %v2560_v54 = vmul.f32 %v2554_v52, %v2544_v30  ;;  %v7324_v26 = vpop.permute.xlu1 %2700 }
 0x53b   : > { %2629 = vmatpush.bf16.msrb.mxu1 %v2585_v47  ;;  %v2568_v16 = vmax.f32 %v2560_v54, 0.0  ;;  %v6089_v54 = vld [vmem:[#allocation15 + $0x134] sm:$0xf0] }
 0x53d   : > { %v2584_v62 = vpack.c.bf16 %v2568_v16, %v2566_v29 }
 0x53e   : > { %v2546_v50 = vpop.f32.mrf.mxu0 }
 0x53f   : > { %2630 = vmatpush.bf16.msrb.mxu1 %v2583_v49  ;;  %v2547_v51 = vadd.f32 %v2546_v50, %v2490_v5  ;;  %v2691_v31 = vpop.permute.xlu0 %2690  ;;  %v7327_v50 = vpop.permute.xlu2 %2685 }
 0x541   : > { %v2562_v25 = vmul.f32 %v2554_v52, %v2547_v51  ;;  %v6095_v51 = vld [vmem:[#allocation15 + $0x164] sm:$0xf0] }
 0x542   : > { %5148 = vmatmul.msk.bf16.vlgmr.msrb.gmra.mxu1 %vm1177_vm0, %v5992_v44 }
 0x543   : > { %v2570_v59 = vmax.f32 %v2562_v25, 0.0  ;;  %v5322_v25 = vld [vmem:[#allocation15 + $0x120] sm:$0xf] }
 0x544   : > { %v5323_v16 = vor.u32 %v6089_v54, %v5322_v25  ;;  %v6050_v25 = vld [vmem:[#allocation15 + $0x4] sm:$0xf]  ;;  %v5362_v54 = vld [vmem:[#allocation15 + $0x160] sm:$0xf] }
 0x546   : > { %v2548_v19 = vpop.f32.mrf.mxu0 }
 0x547   : > { %v2549_v46 = vadd.f32 %v2548_v19, %v2495_v36 }
 0x549   : > { %v2564_v55 = vmul.f32 %v2554_v52, %v2549_v46 }
 0x54b   : > { %v2572_v40 = vmax.f32 %v2564_v55, 0.0 }
 0x54d   : > { %v2586_v22 = vpack.c.bf16 %v2572_v40, %v2570_v59  ;;  %v6092_v59 = vld [vmem:[#allocation15 + $0x154] sm:$0xf]  ;;  %v5348_v40 = vld [vmem:[#allocation15 + $0x168] sm:$0xf0] }
 0x54f   : > { %2648 = vmatpush.bf16.msrb.mxu2 %v2586_v22  ;;  %v5298_v22 = vld [vmem:[#allocation15 + $0xf0] sm:$0xf] }
 0x552   : > { %5149 = vmatmul.msk.bf16.gmra.mxu1 %vm1177_vm0, %v5993_v2 }
 0x553   : > { %2649 = vmatpush.bf16.msrb.mxu2 %v2584_v62  ;;  %v5351_v62 = vor.u32 %v6092_v59, %v5348_v40  ;;  %v5330_v40 = vld [vmem:[#allocation15 + $0x128] sm:$0xf] }
 0x556   : > { %5150 = vmatmul.msk.bf16.vlgmr.msrb.gmra.mxu2 %vm1177_vm0, %v5992_v44  ;;  %v5346_v44 = vld [vmem:[#allocation15 + $0x150] sm:$0xf] }
 0x557   : > { %v5347_v41 = vor.u32 %v6095_v51, %v5346_v44  ;;  %v5354_v44 = vld [vmem:[#allocation15 + $0x158] sm:$0xf]  ;;  %v6096_v51 = vld [vmem:[#allocation15 + $0x16c] sm:$0xf0] }
 0x566   : > { %5151 = vmatmul.msk.bf16.gmra.mxu2 %vm1177_vm0, %v5993_v2  ;;  %v6083_v2 = vld [vmem:[#allocation15 + $0x104] sm:$0xf0] }
 0x5bf   : > { %v2632_v53 = vpop.f32.mrf.mxu1 }
 0x5c0   : > { %v2633_v10 = vadd.f32 %v2632_v53, %v2590_v28 }
 0x5c2   : > { %v2661_v9 = vmax.f32 %v2633_v10, 0.0 }
 0x5c7   : > { %v2634_v32 = vpop.f32.mrf.mxu1 }
 0x5c8   : > { %v2635_v23 = vadd.f32 %v2634_v32, %v2595_v18  ;;  %v6086_v32 = vld [vmem:[#allocation15 + $0x124] sm:$0xf] }
 0x5ca   : > { %v2663_v60 = vmax.f32 %v2635_v23, 0.0 }
 0x5cc   : > { %v2679_v63 = vpack.c.bf16 %v2663_v60, %v2661_v9  ;;  %v5276_v9 = vld [vmem:[#allocation15 + $0xd8] sm:$0xf0] }
 0x5cf   : > { %v2637_v15 = vpop.f32.mrf.mxu1 }
 0x5d0   : > { %v2638_v20 = vadd.f32 %v2637_v15, %v2600_v12  ;;  %v5299_v15 = vor.u32 %v6083_v2, %v5298_v22  ;;  %v5338_v22 = vld [vmem:[#allocation15 + $0x130] sm:$0xf] }
 0x5d2   : > { %v2665_v57 = vmax.f32 %v2638_v20, 0.0  ;;  %v6077_v20 = vld [vmem:[#allocation15 + $0xd4] sm:$0xf0] }
 0x5d7   : > { %v2639_v21 = vpop.f32.mrf.mxu1 }
 0x5d8   : > { %v2640_v24 = vadd.f32 %v2639_v21, %v2605_v0  ;;  %v7338_v21 = vld [vmem:[%s8041_s25] sm:$0x1] }
 0x5d9   : > { %v2651_v6 = vpop.f32.mrf.mxu2 }
 0x5da   : > { %v2667_v58 = vmax.f32 %v2640_v24, 0.0  ;;  %v2652_v36 = vadd.f32 %v2651_v6, %v2590_v28  ;;  %v6080_v28 = vld [vmem:[#allocation15 + $0xf4] sm:$0xf]  ;;  %v5300_v6 = vld [vmem:[#allocation15 + $0x108] sm:$0xf0] }
 0x5db   : > { %v5303_v60 = vor.u32 %v6080_v28, %v5300_v6  ;;  %v6079_v28 = vld [vmem:[#allocation15 + $0xe4] sm:$0xf0] }
 0x5dc   : > { %v2681_v1 = vpack.c.bf16 %v2667_v58, %v2665_v57  ;;  %v2662_v42 = vmax.f32 %v2652_v36, 0.0  ;;  %v5250_v57 = vld [vmem:[#allocation15 + $0x90] sm:$0xf]  ;;  %v6071_v58 = vld [vmem:[#allocation15 + $0xa4] sm:$0xf0] }
 0x5dd   : > { %v5252_v36 = vld [vmem:[#allocation15 + $0xa8] sm:$0xf0] }
 0x5de   : > { %2725 = vmatpush.bf16.msra.mxu3 %v2681_v1  ;;  %v6074_v1 = vld [vmem:[#allocation15 + $0xc4] sm:$0xf] }
 0x5e1   : > { %v2653_v13 = vpop.f32.mrf.mxu2 }
 0x5e2   : > { %2726 = vmatpush.bf16.msra.mxu3 %v2679_v63  ;;  %v2654_v34 = vadd.f32 %v2653_v13, %v2595_v18  ;;  %v5274_v18 = vld [vmem:[#allocation15 + $0xc0] sm:$0xf]  ;;  %v5251_v63 = vor.u32 %v6071_v58, %v5250_v57  ;;  %v6072_v57 = vld [vmem:[#allocation15 + $0xac] sm:$0xf0] }
 0x5e3   : > { %v5275_v10 = vor.u32 %v6077_v20, %v5274_v18  ;;  %v5226_v13 = vld [vmem:[#allocation15 + $0x60] sm:$0xf]  ;;  %v6085_v18 = vld [vmem:[#allocation15 + $0x114] sm:$0xf0] }
 0x5e4   : > { %v2664_v38 = vmax.f32 %v2654_v34, 0.0  ;;  %v5266_v58 = vld [vmem:[#allocation15 + $0xa0] sm:$0xf] }
 0x5e5   : > { %5168 = vmatmul.msk.bf16.vlgmr.msra.gmra.mxu3 %vm1177_vm0, %v5994_v14 }
 0x5e6   : > { %v2680_v43 = vpack.c.bf16 %v2664_v38, %v2662_v42  ;;  %v6059_v38 = vld [vmem:[#allocation15 + $0x44] sm:$0xf0] }
 0x5e9   : > { %v2656_v5 = vpop.f32.mrf.mxu2 }
 0x5ea   : > { %v2657_v17 = vadd.f32 %v2656_v5, %v2600_v12  ;;  %v5324_v12 = vld [vmem:[#allocation15 + $0x138] sm:$0xf0] }
 0x5eb   : > { %v5327_v24 = vor.u32 %v6086_v32, %v5324_v12  ;;  %v6084_v32 = vld [vmem:[#allocation15 + $0x10c] sm:$0xf0]  ;;  %v5314_v12 = vld [vmem:[#allocation15 + $0x100] sm:$0xf] }
 0x5ec   : > { %v2666_v61 = vmax.f32 %v2657_v17, 0.0  ;;  %v5315_v20 = vor.u32 %v6085_v18, %v5314_v12  ;;  %v6103_v12 = vld [vmem:[#allocation15 + $0x1a4] sm:$0xf0] }
 0x5ed   : > { %v6047_v18 = vld [vmem:[#allocation14 + $0x194] sm:$0xf0] }
 0x5f1   : > { %v2658_v27 = vpop.f32.mrf.mxu2 }
 0x5f2   : > { %v2659_v35 = vadd.f32 %v2658_v27, %v2605_v0  ;;  %v7333_v0 = vld [vmem:[%s8040_s23] sm:$0x1]  ;;  %v5279_v27 = vor.u32 %v6074_v1, %v5276_v9  ;;  %v6073_v1 = vld [vmem:[#allocation15 + $0xb4] sm:$0xf0]  ;;  %v6098_v9 = vld [vmem:[#allocation15 + $0x184] sm:$0xf] }
 0x5f4   : > { %v2668_v37 = vmax.f32 %v2659_v35, 0.0  ;;  %v6068_v35 = vld [vmem:[#allocation15 + $0x94] sm:$0xf] }
 0x5f5   : > { %5169 = vmatmul.msk.bf16.gmra.mxu3 %vm1177_vm0, %v5995_v33 }
 0x5f6   : > { %v2682_v39 = vpack.c.bf16 %v2668_v37, %v2666_v61  ;;  %v5202_v37 = vld [vmem:[#allocation15 + $0x30] sm:$0xf] }
 0x5f8   : > { %2744 = vmatpush.bf16.msrb.mxu0 %v2682_v39 }
 0x5fc   : > { %2745 = vmatpush.bf16.msrb.mxu0 %v2680_v43 }
 0x5ff   : > { %5170 = vmatmul.msk.bf16.vlgmr.msrb.gmra.mxu0 %vm1177_vm0, %v5994_v14  ;;  %v6065_v14 = vld [vmem:[#allocation15 + $0x74] sm:$0xf0] }
 0x600   : > { %3245 = vmatpush.bf16.msra.mxu0 %v5347_v41  ;;  %v5227_v61 = vor.u32 %v6065_v14, %v5226_v13  ;;  %v5267_v13 = vor.u32 %v6073_v1, %v5266_v58  ;;  %v6051_v58 = vld [vmem:[#allocation15 + $0xc] sm:$0xf]  ;;  %v5188_v1 = vld [vmem:[#allocation15 + $0x20] sm:$0xf0] }
 0x604   : > { %3246 = vmatpush.bf16.msra.mxu0 %v5323_v16  ;;  %v6090_v16 = vld [vmem:[#allocation15 + $0x13c] sm:$0xf0] }
 0x605   : > { %v5331_v2 = vor.u32 %v6090_v16, %v5330_v40  ;;  %v6063_v16 = vld [vmem:[#allocation15 + $0x6c] sm:$0xf] }
 0x608   : > { %3247 = vmatpush.bf16.msra.mxu0 %v5299_v15 }
 0x60c   : > { %3248 = vmatpush.bf16.msra.mxu0 %v5275_v10  ;;  %v5258_v10 = vld [vmem:[#allocation15 + $0x98] sm:$0xf] }
 0x60f   : > { %5171 = vmatmul.msk.bf16.gmra.mxu0 %vm1177_vm0, %v5995_v33 }
 0x610   : > { %3249 = vmatpush.bf16.msra.mxu0 %v5251_v63  ;;  %v5372_v63 = vld [vmem:[#allocation15 + $0x198] sm:$0xf0] }
 0x611   : > { %v5375_v14 = vor.u32 %v6098_v9, %v5372_v63  ;;  %v5191_v9 = vor.u32 %v6051_v58, %v5188_v1  ;;  %v5448_v58 = vld [vmem:[#allocation14 + $0x60] sm:$0xf]  ;;  %v6038_v1 = vld [vmem:[#allocation14 + $0x154] sm:$0xf] }
 0x614   : > { %3250 = vmatpush.bf16.msra.mxu0 %v5227_v61 }
 0x668   : > { %v2728_v45 = vpop.f32.mrf.mxu3 }
 0x669   : > { %v2729_v52 = vadd.f32 %v2728_v45, %v7327_v50  ;;  %v5255_v45 = vor.u32 %v6068_v35, %v5252_v36  ;;  %v5242_v35 = vld [vmem:[#allocation15 + $0x70] sm:$0xf]  ;;  %v6067_v36 = vld [vmem:[#allocation15 + $0x84] sm:$0xf0] }
 0x66b   : > { %v2757_v29 = vmax.f32 %v2729_v52, 0.0  ;;  %v5204_v52 = vld [vmem:[#allocation15 + $0x48] sm:$0xf0] }
 0x670   : > { %v2730_v3 = vpop.f32.mrf.mxu3 }
 0x671   : > { %v2731_v48 = vadd.f32 %v2730_v3, %v2691_v31 }
 0x673   : > { %v2759_v55 = vmax.f32 %v2731_v48, 0.0 }
 0x675   : > { %v2765_v53 = vpack.c.bf16 %v2759_v55, %v2757_v29  ;;  %v6097_v55 = vld [vmem:[#allocation15 + $0x174] sm:$0xf0]  ;;  %v6091_v29 = vld [vmem:[#allocation15 + $0x144] sm:$0xf0] }
 0x676   : > { %v5363_v59 = vor.u32 %v6097_v55, %v5362_v54  ;;  %v6069_v54 = vld [vmem:[#allocation15 + $0x9c] sm:$0xf]  ;;  %v5260_v55 = vld [vmem:[#allocation15 + $0xb0] sm:$0xf0] }
 0x678   : > { %v2733_v11 = vpop.f32.mrf.mxu3 }
 0x679   : > { %v2734_v8 = vadd.f32 %v2733_v11, %v2696_v4  ;;  %v6062_v11 = vld [vmem:[#allocation15 + $0x64] sm:$0xf] }
 0x67b   : > { %v2761_v30 = vmax.f32 %v2734_v8, 0.0  ;;  %v5228_v8 = vld [vmem:[#allocation15 + $0x78] sm:$0xf0] }
 0x67c   : > { %v7322_v7 = vpop.f32.mrf.mxu0 }
 0x67d   : > { %v2748_v39 = vadd.f32 %v7322_v7, %v7327_v50  ;;  %v6056_v50 = vld [vmem:[#allocation15 + $0x34] sm:$0xf] }
 0x67e   : > { %v5207_v41 = vor.u32 %v6056_v50, %v5204_v52  ;;  %v5370_v52 = vld [vmem:[#allocation15 + $0x180] sm:$0xf] }
 0x67f   : > { %v2758_v48 = vmax.f32 %v2748_v39, 0.0  ;;  %v6060_v39 = vld [vmem:[#allocation15 + $0x4c] sm:$0xf0] }
 0x680   : > { %v2735_v47 = vpop.f32.mrf.mxu3 }
 0x681   : > { %v2736_v49 = vadd.f32 %v2735_v47, %v7324_v26  ;;  %v6053_v47 = vld [vmem:[#allocation15 + $0x14] sm:$0xf0] }
 0x683   : > { %v2763_v19 = vmax.f32 %v2736_v49, 0.0  ;;  %v5231_v49 = vor.u32 %v6062_v11, %v5228_v8 }
 0x684   : > { %v2749_v46 = vpop.f32.mrf.mxu0 }
 0x685   : > { %v2767_v56 = vpack.c.bf16 %v2763_v19, %v2761_v30  ;;  %v2750_v33 = vadd.f32 %v2749_v46, %v2691_v31  ;;  %v5203_v31 = vor.u32 %v6059_v38, %v5202_v37  ;;  %v5355_v19 = vor.u32 %v6096_v51, %v5354_v44  ;;  %v5180_v46 = vld [vmem:[#allocation15 + $0x18] sm:$0xf0]  ;;  %v5210_v38 = vld [vmem:[#allocation15 + $0x38] sm:$0xf]  ;;  %v5194_v44 = vld [vmem:[#allocation15 + $0x10] sm:$0xf] }
 0x686   : > { %v5243_v37 = vor.u32 %v6067_v36, %v5242_v35  ;;  %v6055_v51 = vld [vmem:[#allocation15 + $0x24] sm:$0xf0]  ;;  %v5544_v35 = vld [vmem:[#allocation14 + $0x120] sm:$0xf] }
 0x687   : > { %2786 = vmatpush.bf16.msra.mxu1 %v2767_v56  ;;  %2825 = vmatpush.bf16.msra.mxu2 %v2767_v56  ;;  %v2760_v3 = vmax.f32 %v2750_v33, 0.0  ;;  %v5183_v56 = vor.u32 %v6050_v25, %v5180_v46  ;;  %v5195_v50 = vor.u32 %v6055_v51, %v5194_v44  ;;  %v5284_v25 = vld [vmem:[#allocation15 + $0xe0] sm:$0xf0]  ;;  %v6035_v36 = vld [vmem:[#allocation14 + $0x134] sm:$0xf0] }
 0x688   : > { %3251 = vmatpush.bf16.msra.mxu0 %v5203_v31  ;;  %v5186_v31 = vld [vmem:[#allocation15 + $0x8] sm:$0xf] }
 0x689   : > { %v2766_v7 = vpack.c.bf16 %v2760_v3, %v2758_v48  ;;  %v5218_v3 = vld [vmem:[#allocation15 + $0x40] sm:$0xf] }
 0x68b   : > { %2787 = vmatpush.bf16.msra.mxu1 %v2765_v53  ;;  %2826 = vmatpush.bf16.msra.mxu2 %v2765_v53  ;;  %v5306_v53 = vld [vmem:[#allocation15 + $0xf8] sm:$0xf] }
 0x68c   : > { %v2752_v23 = vpop.f32.mrf.mxu0  ;;  %v5307_v15 = vor.u32 %v6084_v32, %v5306_v53  ;;  %v6057_v53 = vld [vmem:[#allocation15 + $0x3c] sm:$0xf]  ;;  %v5212_v32 = vld [vmem:[#allocation15 + $0x50] sm:$0xf0] }
 0x68d   : > { %v2753_v5 = vadd.f32 %v2752_v23, %v2696_v4  ;;  %v5290_v23 = vld [vmem:[#allocation15 + $0xd0] sm:$0xf] }
 0x68e   : > { %5172 = vmatmul.msk.bf16.vlgmr.msra.gmra.mxu1 %vm1177_vm0, %v7333_v0  ;;  %5174 = vmatmul.msk.bf16.vlgmr.msra.gmra.mxu2 %vm1177_vm0, %v7338_v21  ;;  %v5291_v6 = vor.u32 %v6079_v28, %v5290_v23 }
 0x68f   : > { %3271 = vmatpush.bf16.msrb.mxu2 %v5351_v62  ;;  %v2762_v42 = vmax.f32 %v2753_v5, 0.0  ;;  %v5339_v62 = vor.u32 %v6091_v29, %v5338_v22  ;;  %v5234_v5 = vld [vmem:[#allocation15 + $0x68] sm:$0xf]  ;;  %v5236_v22 = vld [vmem:[#allocation15 + $0x80] sm:$0xf0] }
 0x693   : > { %3272 = vmatpush.bf16.msrb.mxu2 %v5327_v24 }
 0x694   : > { %v2754_v17 = vpop.f32.mrf.mxu0 }
 0x695   : > { %v2755_v34 = vadd.f32 %v2754_v17, %v7324_v26  ;;  %v5178_v26 = vld [vmem:[#allocation15] sm:$0xf] }
 0x696   : > { %v5179_v30 = vor.u32 %v6053_v47, %v5178_v26  ;;  %v6066_v17 = vld [vmem:[#allocation15 + $0x7c] sm:$0xf0]  ;;  %v6081_v47 = vld [vmem:[#allocation15 + $0xfc] sm:$0xf] }
 0x697   : > { %3273 = vmatpush.bf16.msrb.mxu2 %v5303_v60  ;;  %v2764_v43 = vmax.f32 %v2755_v34, 0.0  ;;  %v5259_v60 = vor.u32 %v6072_v57, %v5258_v10  ;;  %v5235_v33 = vor.u32 %v6066_v17, %v5234_v5  ;;  %v5356_v34 = vld [vmem:[#allocation15 + $0x170] sm:$0xf0]  ;;  %v6054_v26 = vld [vmem:[#allocation15 + $0x1c] sm:$0xf0] }
 0x698   : > { %3252 = vmatpush.bf16.msra.mxu0 %v5179_v30  ;;  %v5187_v48 = vor.u32 %v6054_v26, %v5186_v31  ;;  %v6101_v30 = vld [vmem:[#allocation15 + $0x194] sm:$0xf0]  ;;  %v5378_v10 = vld [vmem:[#allocation15 + $0x188] sm:$0xf]  ;;  %v6102_v57 = vld [vmem:[#allocation15 + $0x19c] sm:$0xf0] }
 0x699   : > { %v2768_v4 = vpack.c.bf16 %v2764_v43, %v2762_v42  ;;  %v6087_v42 = vld [vmem:[#allocation15 + $0x12c] sm:$0xf]  ;;  %v5211_v43 = vor.u32 %v6060_v39, %v5210_v38  ;;  %v6041_v5 = vld [vmem:[#allocation14 + $0x164] sm:$0xf0]  ;;  %v5576_v17 = vld [vmem:[#allocation14 + $0x158] sm:$0xf] }
 0x69a   : > { %v6099_v38 = vld [vmem:[#allocation15 + $0x18c] sm:$0xf] }
 0x69b   : > { %3274 = vmatpush.bf16.msrb.mxu2 %v5279_v27  ;;  %2799 = vmatpush.bf16.msrb.mxu1 %v2768_v4  ;;  %v6093_v27 = vld [vmem:[#allocation15 + $0x15c] sm:$0xf] }
 0x69c   : > { %2838 = vmatpush.bf16.msrb.mxu3 %v2768_v4  ;;  %3297 = vmatpush.bf16.msrb.mxu0 %v5355_v19  ;;  %v5359_v61 = vor.u32 %v6093_v27, %v5356_v34  ;;  %v6061_v4 = vld [vmem:[#allocation15 + $0x54] sm:$0xf0]  ;;  %v5371_v19 = vor.u32 %v6101_v30, %v5370_v52  ;;  %v6042_v27 = vld [vmem:[#allocation14 + $0x16c] sm:$0xf0]  ;;  %v5496_v30 = vld [vmem:[#allocation14 + $0xc0] sm:$0xf] }
 0x69d   : > { %v5219_v8 = vor.u32 %v6061_v4, %v5218_v3  ;;  %v5577_v34 = vor.u32 %v6042_v27, %v5576_v17  ;;  %v5545_v4 = vor.u32 %v6035_v36, %v5544_v35  ;;  %v6088_v17 = vld [vmem:[#allocation15 + $0x134] sm:$0xf]  ;;  %v5340_v27 = vld [vmem:[#allocation15 + $0x148] sm:$0xf0]  ;;  %v5424_v35 = vld [vmem:[#allocation14 + $0x30] sm:$0xf] }
 0x69e   : > { %v6005_v36 = vld [vmem:[#allocation14 + $0x44] sm:$0xf0] }
 0x69f   : > { %3275 = vmatpush.bf16.msrb.mxu2 %v5255_v45  ;;  %2800 = vmatpush.bf16.msrb.mxu1 %v2766_v7  ;;  %v5332_v45 = vld [vmem:[#allocation15 + $0x140] sm:$0xf0] }
 0x6a0   : > { %2839 = vmatpush.bf16.msrb.mxu3 %v2766_v7  ;;  %3298 = vmatpush.bf16.msrb.mxu0 %v5331_v2  ;;  %v5335_v11 = vor.u32 %v6087_v42, %v5332_v45  ;;  %v5239_v2 = vor.u32 %v6063_v16, %v5236_v22  ;;  %v5380_v42 = vld [vmem:[#allocation15 + $0x1a0] sm:$0xf0]  ;;  %v5388_v45 = vld [vmem:[#allocation15 + $0x1a8] sm:$0xf0]  ;;  %v5472_v22 = vld [vmem:[#allocation14 + $0x90] sm:$0xf] }
 0x6a1   : > { %v5383_v44 = vor.u32 %v6099_v38, %v5380_v42  ;;  %v5432_v38 = vld [vmem:[#allocation14 + $0x38] sm:$0xf]  ;;  %v5343_v42 = vor.u32 %v6088_v17, %v5340_v27  ;;  %v6058_v17 = vld [vmem:[#allocation15 + $0x44] sm:$0xf]  ;;  %v5220_v27 = vld [vmem:[#allocation15 + $0x58] sm:$0xf0] }
 0x6a2   : > { %5173 = vmatmul.msk.bf16.vlgmr.msrb.gmra.mxu1 %vm1177_vm0, %v7333_v0  ;;  %v5282_v0 = vld [vmem:[#allocation15 + $0xc8] sm:$0xf] }
 0x6a3   : > { %3276 = vmatpush.bf16.msrb.mxu2 %v5231_v49  ;;  %5175 = vmatmul.msk.bf16.vlgmr.msrb.gmra.mxu3 %vm1177_vm0, %v7338_v21  ;;  %v6078_v21 = vld [vmem:[#allocation15 + $0xdc] sm:$0xf0]  ;;  %v5308_v49 = vld [vmem:[#allocation15 + $0x110] sm:$0xf0] }
 0x6a4   : > { %3299 = vmatpush.bf16.msrb.mxu0 %v5307_v15  ;;  %v5283_v24 = vor.u32 %v6078_v21, %v5282_v0  ;;  %3291 = vmatpush.bf16.msra.mxu3 %v5375_v14  ;;  %v5311_v7 = vor.u32 %v6081_v47, %v5308_v49  ;;  %v5592_v15 = vld [vmem:[#allocation14 + $0x180] sm:$0xf]  ;;  %v5215_v0 = vor.u32 %v6057_v53, %v5212_v32  ;;  %v5568_v14 = vld [vmem:[#allocation14 + $0x150] sm:$0xf]  ;;  %v6029_v47 = vld [vmem:[#allocation14 + $0x104] sm:$0xf0] }
 0x6a5   : > { %3265 = vmatpush.bf16.msra.mxu1 %v5371_v19  ;;  %v5593_v28 = vor.u32 %v6047_v18, %v5592_v15  ;;  %v6030_v49 = vld [vmem:[#allocation14 + $0x10c] sm:$0xf0]  ;;  %v6023_v19 = vld [vmem:[#allocation14 + $0xd4] sm:$0xf0] }
 0x6a6   : > { %v5497_v16 = vor.u32 %v6023_v19, %v5496_v30  ;;  %v5480_v15 = vld [vmem:[#allocation14 + $0x98] sm:$0xf]  ;;  %v6018_v18 = vld [vmem:[#allocation14 + $0xac] sm:$0xf0]  ;;  %v6049_v30 = vld [vmem:[#allocation14 + $0x1a4] sm:$0xf0] }
 0x6a7   : > { %3277 = vmatpush.bf16.msrb.mxu2 %v5207_v41  ;;  %v6075_v41 = vld [vmem:[#allocation15 + $0xcc] sm:$0xf] }
 0x6a8   : > { %3300 = vmatpush.bf16.msrb.mxu0 %v5283_v24  ;;  %3323 = vmatpush.bf16.msrb.mxu3 %v5359_v61  ;;  %v5287_v46 = vor.u32 %v6075_v41, %v5284_v25  ;;  %v5552_v61 = vld [vmem:[#allocation14 + $0x128] sm:$0xf] }
 0x6a9   : > { %v2847_v41 = vld [vmem:[%s896_s2] sm:$0x7] }
 0x6aa   : > { %v5504_v25 = vld [vmem:[#allocation14 + $0xc8] sm:$0xf] }
 0x6ab   : > { %3278 = vmatpush.bf16.msrb.mxu2 %v5183_v56  ;;  %v5263_v56 = vor.u32 %v6069_v54, %v5260_v55  ;;  %v2849_v54 = vperm.slane %v2847_v41, 0  ;;  %v2850_v55 = vperm.slane %v2847_v41, 1 }
 0x6ac   : > { %3301 = vmatpush.bf16.msrb.mxu0 %v5259_v60  ;;  %3324 = vmatpush.bf16.msrb.mxu3 %v5335_v11  ;;  %v5379_v60 = vor.u32 %v6102_v57, %v5378_v10  ;;  %v5364_v10 = vld [vmem:[#allocation15 + $0x178] sm:$0xf0] }
 0x6ad   : > { %v2856_v53 = vsel %vm2855_vm2, %v2849_v54, 0.0  ;;  %v2857_v32 = vsel %vm2855_vm2, %v2850_v55, 0.0  ;;  %v6076_v55 = vld [vmem:[#allocation15 + $0xd4] sm:$0xf] }
 0x6ae   : > { %3317 = vmatpush.bf16.msrb.mxu1 %v5379_v60  ;;  %v6011_v60 = vld [vmem:[#allocation14 + $0x74] sm:$0xf0] }
 0x6af   : > { %3349 = vmatpush.bf16.msra.mxu2 %v5363_v59  ;;  %v2813_v59 = vpop.permute.xlu1 %2812 }
 0x6b0   : > { %3302 = vmatpush.bf16.msrb.mxu0 %v5235_v33  ;;  %3325 = vmatpush.bf16.msrb.mxu3 %v5311_v7  ;;  %v2815_v29 = vperm.slane %v2813_v59, 0  ;;  %v5569_v33 = vor.u32 %v6041_v5, %v5568_v14  ;;  %v7377_v7 = vpop.permute.xlu2 %2773  ;;  %v5449_v5 = vor.u32 %v6011_v60, %v5448_v58  ;;  %v5244_v58 = vld [vmem:[#allocation15 + $0x88] sm:$0xf0]  ;;  %v6008_v60 = vld [vmem:[#allocation14 + $0x64] sm:$0xf] }
 0x6b1   : > { %v2776_v59 = vperm.slane %v7377_v7, 0 }
 0x6b3   : > { %3350 = vmatpush.bf16.msra.mxu2 %v5339_v62  ;;  %v5386_v62 = vld [vmem:[#allocation15 + $0x190] sm:$0xf] }
 0x6b4   : > { %3303 = vmatpush.bf16.msrb.mxu0 %v5211_v43  ;;  %3326 = vmatpush.bf16.msrb.mxu3 %v5287_v46  ;;  %v5387_v24 = vor.u32 %v6103_v12, %v5386_v62  ;;  %v6100_v43 = vld [vmem:[#allocation15 + $0x194] sm:$0xf]  ;;  %v6024_v46 = vld [vmem:[#allocation14 + $0xdc] sm:$0xf0]  ;;  %v6017_v62 = vld [vmem:[#allocation14 + $0xa4] sm:$0xf0] }
 0x6b5   : > { %v5391_v51 = vor.u32 %v6100_v43, %v5388_v45  ;;  %v5425_v43 = vor.u32 %v6005_v36, %v5424_v35  ;;  %v6082_v45 = vld [vmem:[#allocation15 + $0x104] sm:$0xf]  ;;  %v5512_v35 = vld [vmem:[#allocation14 + $0xd0] sm:$0xf]  ;;  %v6025_v36 = vld [vmem:[#allocation14 + $0xe4] sm:$0xf0] }
 0x6b7   : > { %3351 = vmatpush.bf16.msra.mxu2 %v5315_v20 }
 0x6b8   : > { %3304 = vmatpush.bf16.msrb.mxu0 %v5187_v48  ;;  %3327 = vmatpush.bf16.msrb.mxu3 %v5263_v56  ;;  %v5528_v48 = vld [vmem:[#allocation14 + $0xf8] sm:$0xf] }
 0x6b9   : > { %v5529_v52 = vor.u32 %v6030_v49, %v5528_v48  ;;  %v5522_v48 = vld [vmem:[#allocation14 + $0x108] sm:$0xf0]  ;;  %v5408_v49 = vld [vmem:[#allocation14 + $0x8] sm:$0xf] }
 0x6bb   : > { %3352 = vmatpush.bf16.msra.mxu2 %v5291_v6 }
 0x6bc   : > { %3328 = vmatpush.bf16.msrb.mxu3 %v5239_v2  ;;  %v2851_v2 = vperm.slane %v2847_v41, 2 }
 0x6bf   : > { %3353 = vmatpush.bf16.msra.mxu2 %v5267_v13 }
 0x6c0   : > { %3329 = vmatpush.bf16.msrb.mxu3 %v5215_v0  ;;  %v2860_v0 = vsel %vm2859_vm3, %v2851_v2, 0.0  ;;  %v5498_v2 = vld [vmem:[#allocation14 + $0xd8] sm:$0xf0] }
 0x6c3   : > { %3354 = vmatpush.bf16.msra.mxu2 %v5243_v37  ;;  %v6036_v37 = vld [vmem:[#allocation14 + $0x13c] sm:$0xf0] }
 0x6c4   : > { %3330 = vmatpush.bf16.msrb.mxu3 %v5191_v9  ;;  %v5553_v11 = vor.u32 %v6036_v37, %v5552_v61  ;;  %v5570_v9 = vld [vmem:[#allocation14 + $0x168] sm:$0xf0]  ;;  %v6032_v61 = vld [vmem:[#allocation14 + $0x124] sm:$0xf]  ;;  %v5546_v37 = vld [vmem:[#allocation14 + $0x138] sm:$0xf0] }
 0x6c7   : > { %3355 = vmatpush.bf16.msra.mxu2 %v5219_v8  ;;  %v5520_v8 = vld [vmem:[#allocation14 + $0xf0] sm:$0xf] }
 0x6cb   : > { %3356 = vmatpush.bf16.msra.mxu2 %v5195_v50  ;;  %v5521_v50 = vor.u32 %v6029_v47, %v5520_v8  ;;  %v6026_v47 = vld [vmem:[#allocation14 + $0xf4] sm:$0xf] }
 0x70b   : > { %v7351_v40 = vpop.f32.mrf.mxu1 }
 0x711   : > { %v2828_v20 = vpop.f32.mrf.mxu2 }
 0x712   : > { %v2829_v21 = vadd.f32 %v2828_v20, %v2815_v29  ;;  %v2858_v20 = vadd.f32 %v2857_v32, %v2856_v53 }
 0x713   : > { %v2791_v23 = vpop.f32.mrf.mxu1 }
 0x714   : > { %v7353_v6 = vpack.c.bf16 %v2829_v21, %v2829_v21  ;;  %v2861_v21 = vadd.f32 %v2860_v0, %v2858_v20  ;;  %v5473_v23 = vor.u32 %v6017_v62, %v5472_v22  ;;  %v6043_v62 = vld [vmem:[#allocation14 + $0x174] sm:$0xf0]  ;;  %v5474_v20 = vld [vmem:[#allocation14 + $0xa8] sm:$0xf0]  ;;  %v5560_v0 = vld [vmem:[#allocation14 + $0x130] sm:$0xf] }
 0x716   : > { %3253 = vmatmul.bf16.vlgmr.msra.gmra.mxu0 %v7353_v6  ;;  %3279 = vmatmul.bf16.vlgmr.msrb.gmra.mxu2 %v7353_v6 }
 0x717   : > { %3369 = vmatpush.bf16.msra.mxu0 %v5387_v24  ;;  %3694 = vmatpush.bf16.msrb.mxu2 %v5593_v28  ;;  %v5481_v24 = vor.u32 %v6018_v18, %v5480_v15  ;;  %v6094_v28 = vld [vmem:[#allocation15 + $0x164] sm:$0xf]  ;;  %v5268_v15 = vld [vmem:[#allocation15 + $0xb8] sm:$0xf0] }
 0x718   : > { %2862 = vadd.xlane.f32.xlu0 %v2861_v21  ;;  %v5367_v14 = vor.u32 %v6094_v28, %v5364_v10  ;;  %v6014_v18 = vld [vmem:[#allocation14 + $0x94] sm:$0xf]  ;;  %v6037_v21 = vld [vmem:[#allocation14 + $0x144] sm:$0xf0]  ;;  %v6064_v10 = vld [vmem:[#allocation15 + $0x74] sm:$0xf] }
 0x719   : > { %v2830_v63 = vpop.f32.mrf.mxu2  ;;  %v5561_v28 = vor.u32 %v6037_v21, %v5560_v0  ;;  %v5538_v0 = vld [vmem:[#allocation14 + $0x118] sm:$0xf0] }
 0x71a   : > { %v5456_v63 = vld [vmem:[#allocation14 + $0x68] sm:$0xf] }
 0x71f   : > { %v7358_v13 = vpop.f32.mrf.mxu1 }
 0x720   : > { %v2803_v12 = vadd.f32 %v7358_v13, %v2776_v59  ;;  %v6012_v13 = vld [vmem:[#allocation14 + $0x7c] sm:$0xf0] }
 0x722   : > { %v7385_v57 = vpack.c.bf16 %v2803_v12, %v2803_v12 }
 0x726   : > { %v2841_v39 = vpop.f32.mrf.mxu3  ;;  %3305 = vmatmul.bf16.vlgmr.msrb.gmra.mxu0 %v7353_v6  ;;  %3357 = vmatmul.bf16.vlgmr.msra.gmra.mxu2 %v7353_v6 }
 0x727   : > { %v2842_v3 = vadd.f32 %v2841_v39, %v2815_v29  ;;  %3674 = vmatpush.bf16.msrb.mxu0 %v5569_v33  ;;  %3726 = vmatpush.bf16.msra.mxu2 %v5577_v34  ;;  %v2804_v31 = vpop.f32.mrf.mxu1  ;;  %v5505_v29 = vor.u32 %v6024_v46, %v5504_v25  ;;  %v5573_v33 = vor.u32 %v6038_v1, %v5570_v9  ;;  %v6006_v39 = vld [vmem:[#allocation14 + $0x4c] sm:$0xf0]  ;;  %v5450_v1 = vld [vmem:[#allocation14 + $0x78] sm:$0xf0]  ;;  %v5536_v9 = vld [vmem:[#allocation14 + $0x100] sm:$0xf] }
 0x728   : > { %v5457_v34 = vor.u32 %v6012_v13, %v5456_v63  ;;  %v5433_v8 = vor.u32 %v6006_v39, %v5432_v38  ;;  %v5999_v31 = vld [vmem:[#allocation14 + $0x14] sm:$0xf0]  ;;  %v2790_v25 = vadd.f32 %v7351_v40, %v2776_v59  ;;  %v5525_v46 = vor.u32 %v6026_v47, %v5522_v48  ;;  %v6070_v59 = vld [vmem:[#allocation15 + $0xa4] sm:$0xf] }
 0x729   : > { %v7366_v26 = vpack.c.bf16 %v2842_v3, %v2842_v3  ;;  %v5316_v3 = vld [vmem:[#allocation15 + $0x118] sm:$0xf0]  ;;  %v6031_v63 = vld [vmem:[#allocation14 + $0x114] sm:$0xf0]  ;;  %v5247_v13 = vor.u32 %v6064_v10, %v5244_v58  ;;  %v5513_v39 = vor.u32 %v6025_v36, %v5512_v35  ;;  %v6022_v10 = vld [vmem:[#allocation14 + $0xd4] sm:$0xf] }
 0x72a   : > { %v5319_v19 = vor.u32 %v6082_v45, %v5316_v3  ;;  %v7397_v12 = vpack.c.bf16 %v2790_v25, %v2790_v25  ;;  %v5488_v45 = vld [vmem:[#allocation14 + $0xa0] sm:$0xf]  ;;  %v6019_v3 = vld [vmem:[#allocation14 + $0xb4] sm:$0xf0]  ;;  %v5586_v25 = vld [vmem:[#allocation14 + $0x178] sm:$0xf0] }
 0x72b   : > { %5392 = vmatmul.msk.bf16.vlgmr.msra.gmra.mxu1 %vm1674_vm1, %v7366_v26  ;;  %5393 = vmatmul.msk.bf16.vlgmr.msra.gmra.mxu3 %vm1674_vm1, %v7366_v26  ;;  %v5514_v58 = vld [vmem:[#allocation14 + $0xe8] sm:$0xf0] }
 0x72c   : > { %3675 = vmatpush.bf16.msrb.mxu0 %v5545_v4  ;;  %3727 = vmatpush.bf16.msra.mxu2 %v5553_v11  ;;  %v5400_v4 = vld [vmem:[#allocation14] sm:$0xf]  ;;  %v5549_v11 = vor.u32 %v6032_v61, %v5546_v37  ;;  %v5223_v61 = vor.u32 %v6058_v17, %v5220_v27  ;;  %v6052_v37 = vld [vmem:[#allocation15 + $0x14] sm:$0xf]  ;;  %v6009_v27 = vld [vmem:[#allocation14 + $0x6c] sm:$0xf] }
 0x72d   : > { %3343 = vmatpush.bf16.msra.mxu1 %v5383_v44  ;;  %3395 = vmatpush.bf16.msra.mxu3 %v5391_v51  ;;  %v6000_v44 = vld [vmem:[#allocation14 + $0x1c] sm:$0xf0]  ;;  %v5600_v51 = vld [vmem:[#allocation14 + $0x188] sm:$0xf]  ;;  %v5401_v41 = vor.u32 %v5999_v31, %v5400_v4  ;;  %v6044_v4 = vld [vmem:[#allocation14 + $0x184] sm:$0xf] }
 0x72e   : > { %v2843_v56 = vpop.f32.mrf.mxu3  ;;  %v5409_v54 = vor.u32 %v6000_v44, %v5408_v49  ;;  %v5602_v31 = vld [vmem:[#allocation14 + $0x1a0] sm:$0xf0]  ;;  %v5489_v49 = vor.u32 %v6019_v3, %v5488_v45  ;;  %v6039_v44 = vld [vmem:[#allocation14 + $0x15c] sm:$0xf]  ;;  %v5466_v35 = vld [vmem:[#allocation14 + $0x88] sm:$0xf0] }
 0x72f   : > { %v5292_v56 = vld [vmem:[#allocation15 + $0xe8] sm:$0xf0]  ;;  %v5997_v45 = vld [vmem:[#allocation14 + $0xc] sm:$0xf]  ;;  %v5410_v3 = vld [vmem:[#allocation14 + $0x20] sm:$0xf0] }
 0x730   : > { %3676 = vmatpush.bf16.msrb.mxu0 %v5521_v50  ;;  %3728 = vmatpush.bf16.msra.mxu2 %v5529_v52  ;;  %v6048_v50 = vld [vmem:[#allocation14 + $0x19c] sm:$0xf0]  ;;  %v5608_v52 = vld [vmem:[#allocation14 + $0x190] sm:$0xf]  ;;  %v5295_v32 = vor.u32 %v6076_v55, %v5292_v56  ;;  %v6033_v56 = vld [vmem:[#allocation14 + $0x12c] sm:$0xf] }
 0x731   : > { %v5601_v22 = vor.u32 %v6048_v50, %v5600_v51  ;;  %v5609_v53 = vor.u32 %v6049_v30, %v5608_v52  ;;  %v5578_v51 = vld [vmem:[#allocation14 + $0x170] sm:$0xf0]  ;;  %v5464_v50 = vld [vmem:[#allocation14 + $0x70] sm:$0xf] }
 0x734   : > { %3677 = vmatpush.bf16.msrb.mxu0 %v5497_v16  ;;  %3729 = vmatpush.bf16.msra.mxu2 %v5505_v29  ;;  %v6020_v16 = vld [vmem:[#allocation14 + $0xc4] sm:$0xf]  ;;  %v5584_v29 = vld [vmem:[#allocation14 + $0x160] sm:$0xf] }
 0x735   : > { %v5501_v40 = vor.u32 %v6020_v16, %v5498_v2  ;;  %v5585_v7 = vor.u32 %v6043_v62, %v5584_v29  ;;  %v5554_v16 = vld [vmem:[#allocation14 + $0x140] sm:$0xf0]  ;;  %v6007_v2 = vld [vmem:[#allocation14 + $0x54] sm:$0xf0]  ;;  %v6034_v29 = vld [vmem:[#allocation14 + $0x134] sm:$0xf] }
 0x736   : > { %5396 = vmatmul.msk.bf16.vlgmr.msra.gmra.mxu0 %vm1674_vm1, %v7366_v26  ;;  %5614 = vmatmul.msk.bf16.vlgmr.msrb.gmra.mxu2 %vm1674_vm1, %v7385_v57  ;;  %v5562_v62 = vld [vmem:[#allocation14 + $0x148] sm:$0xf0] }
 0x738   : > { %3678 = vmatpush.bf16.msrb.mxu0 %v5473_v23  ;;  %3730 = vmatpush.bf16.msra.mxu2 %v5481_v24  ;;  %v5271_v23 = vor.u32 %v6070_v59, %v5268_v15  ;;  %v5477_v24 = vor.u32 %v6014_v18, %v5474_v20  ;;  %v5530_v59 = vld [vmem:[#allocation14 + $0x110] sm:$0xf0]  ;;  %v5416_v15 = vld [vmem:[#allocation14 + $0x10] sm:$0xf]  ;;  %v6001_v18 = vld [vmem:[#allocation14 + $0x24] sm:$0xf0] }
 0x739   : > { %v6028_v20 = vld [vmem:[#allocation14 + $0x104] sm:$0xf] }
 0x73b   : > { %5394 = vmatmul.msk.bf16.vlgmr.msrb.gmra.mxu1 %vm1674_vm1, %v7366_v26  ;;  %3331 = vmatmul.bf16.vlgmr.msrb.gmra.mxu3 %v7353_v6 }
 0x73c   : > { %3375 = vmatpush.bf16.msrb.mxu1 %v5367_v14  ;;  %3679 = vmatpush.bf16.msrb.mxu0 %v5449_v5  ;;  %v5453_v14 = vor.u32 %v6008_v60, %v5450_v1  ;;  %v5537_v5 = vor.u32 %v6031_v63, %v5536_v9  ;;  %v5517_v1 = vor.u32 %v6022_v10, %v5514_v58  ;;  %v6015_v9 = vld [vmem:[#allocation14 + $0x9c] sm:$0xf]  ;;  %v5482_v63 = vld [vmem:[#allocation14 + $0xb0] sm:$0xf0]  ;;  %v6120_v10 = vld [vmem:[%s8043_s24 + $0x80] sm:$0xf0] }
 0x73d   : > { %3700 = vmatpush.bf16.msrb.mxu3 %v5573_v33  ;;  %3731 = vmatpush.bf16.msra.mxu2 %v5457_v34  ;;  %v6002_v33 = vld [vmem:[#allocation14 + $0x34] sm:$0xf]  ;;  %v5426_v34 = vld [vmem:[#allocation14 + $0x48] sm:$0xf0] }
 0x73e   : > { %v5429_v38 = vor.u32 %v6002_v33, %v5426_v34  ;;  %v5458_v33 = vld [vmem:[#allocation14 + $0x80] sm:$0xf0]  ;;  %v6010_v34 = vld [vmem:[#allocation14 + $0x74] sm:$0xf]  ;;  %v5802_v58 = vld [vmem:[%s8043_s24 + $0x168] sm:$0xf] }
 0x73f   : > { %v5461_v36 = vor.u32 %v6009_v27, %v5458_v33 }
 0x740   : > { %3376 = vmatpush.bf16.msrb.mxu1 %v5343_v42  ;;  %3680 = vmatpush.bf16.msrb.mxu0 %v5425_v43  ;;  %v5996_v42 = vld [vmem:[#allocation14 + $0x4] sm:$0xf]  ;;  %v5402_v43 = vld [vmem:[#allocation14 + $0x18] sm:$0xf0] }
 0x741   : > { %3701 = vmatpush.bf16.msrb.mxu3 %v5549_v11  ;;  %3732 = vmatpush.bf16.msra.mxu2 %v5433_v8  ;;  %v5594_v11 = vld [vmem:[#allocation14 + $0x198] sm:$0xf0]  ;;  %v6045_v8 = vld [vmem:[#allocation14 + $0x18c] sm:$0xf]  ;;  %v5405_v48 = vor.u32 %v5996_v42, %v5402_v43 }
 0x742   : > { %v5597_v52 = vor.u32 %v6044_v4, %v5594_v11  ;;  %v5605_v30 = vor.u32 %v6045_v8, %v5602_v31  ;;  %v5998_v4 = vld [vmem:[#allocation14 + $0x14] sm:$0xf]  ;;  %v5418_v11 = vld [vmem:[#allocation14 + $0x28] sm:$0xf0] }
 0x743   : > { %v6046_v8 = vld [vmem:[#allocation14 + $0x194] sm:$0xf]  ;;  %v5610_v31 = vld [vmem:[#allocation14 + $0x1a8] sm:$0xf0] }
 0x744   : > { %3377 = vmatpush.bf16.msrb.mxu1 %v5319_v19  ;;  %3681 = vmatpush.bf16.msrb.mxu0 %v5401_v41  ;;  %v6013_v19 = vld [vmem:[#allocation14 + $0x84] sm:$0xf0]  ;;  %v6040_v41 = vld [vmem:[#allocation14 + $0x164] sm:$0xf] }
 0x745   : > { %3702 = vmatpush.bf16.msrb.mxu3 %v5525_v46  ;;  %3733 = vmatpush.bf16.msra.mxu2 %v5409_v54  ;;  %v5581_v46 = vor.u32 %v6039_v44, %v5578_v51  ;;  %v5465_v54 = vor.u32 %v6013_v19, %v5464_v50  ;;  %v5589_v55 = vor.u32 %v6040_v41, %v5586_v25 }
 0x747   : > { %3682 = vmatmul.bf16.vlgmr.msrb.gmra.mxu0 %v7397_v12 }
 0x748   : > { %3746 = vmatpush.bf16.msra.mxu0 %v5601_v22  ;;  %3734 = vmatmul.bf16.vlgmr.msra.gmra.mxu2 %v7397_v12  ;;  %v5440_v22 = vld [vmem:[#allocation14 + $0x40] sm:$0xf] }
 0x749   : > { %3798 = vmatpush.bf16.msrb.mxu2 %v5609_v53  ;;  %3378 = vmatpush.bf16.msrb.mxu1 %v5295_v32  ;;  %v5557_v53 = vor.u32 %v6033_v56, %v5554_v16  ;;  %v5441_v32 = vor.u32 %v6007_v2, %v5440_v22 }
 0x74a   : > { %3703 = vmatpush.bf16.msrb.mxu3 %v5501_v40  ;;  %v5565_v40 = vor.u32 %v6034_v29, %v5562_v62 }
 0x74b   : > { %5395 = vmatmul.msk.bf16.vlgmr.msra.gmra.mxu1 %vm1674_vm1, %v7366_v26  ;;  %5397 = vmatmul.msk.bf16.vlgmr.msra.gmra.mxu3 %vm1674_vm1, %v7366_v26  ;;  %v5196_v26 = vld [vmem:[#allocation15 + $0x28] sm:$0xf0] }
 0x74c   : > { %3778 = vmatpush.bf16.msrb.mxu0 %v5585_v7  ;;  %v5199_v47 = vor.u32 %v6052_v37, %v5196_v26  ;;  %v6027_v7 = vld [vmem:[#allocation14 + $0xfc] sm:$0xf] }
 0x74d   : > { %3379 = vmatpush.bf16.msrb.mxu1 %v5271_v23  ;;  %v5533_v21 = vor.u32 %v6027_v7, %v5530_v59  ;;  %v5417_v23 = vor.u32 %v6001_v18, %v5416_v15  ;;  %v6003_v37 = vld [vmem:[#allocation14 + $0x3c] sm:$0xf] }
 0x74e   : > { %3704 = vmatpush.bf16.msrb.mxu3 %v5477_v24  ;;  %v6021_v24 = vld [vmem:[#allocation14 + $0xcc] sm:$0xf]  ;;  %v5442_v26 = vld [vmem:[#allocation14 + $0x58] sm:$0xf0] }
 0x750   : > { %3779 = vmatpush.bf16.msrb.mxu0 %v5561_v28  ;;  %v5506_v28 = vld [vmem:[#allocation14 + $0xe0] sm:$0xf0] }
 0x751   : > { %3380 = vmatpush.bf16.msrb.mxu1 %v5247_v13  ;;  %v5509_v60 = vor.u32 %v6021_v24, %v5506_v28  ;;  %v6016_v13 = vld [vmem:[#allocation14 + $0xa4] sm:$0xf]  ;;  %v5682_v28 = vld [vmem:[%s8043_s24 + $0x78] sm:$0xf] }
 0x752   : > { %3705 = vmatpush.bf16.msrb.mxu3 %v5453_v14  ;;  %v5490_v14 = vld [vmem:[#allocation14 + $0xb8] sm:$0xf0] }
 0x753   : > { %v5493_v17 = vor.u32 %v6016_v13, %v5490_v14  ;;  %v5670_v14 = vld [vmem:[%s8043_s24 + $0x60] sm:$0xf] }
 0x754   : > { %3780 = vmatpush.bf16.msrb.mxu0 %v5537_v5  ;;  %v5485_v5 = vor.u32 %v6015_v9, %v5482_v63 }
 0x755   : > { %3381 = vmatpush.bf16.msrb.mxu1 %v5223_v61  ;;  %v5469_v61 = vor.u32 %v6010_v34, %v5466_v35  ;;  %v6147_v34 = vld [vmem:[%s8043_s24 + $0x158] sm:$0xf0]  ;;  %v6125_v35 = vld [vmem:[%s8043_s24 + $0xac] sm:$0xf] }
 0x756   : > { %3706 = vmatpush.bf16.msrb.mxu3 %v5429_v38  ;;  %v5434_v38 = vld [vmem:[#allocation14 + $0x50] sm:$0xf0] }
 0x757   : > { %5616 = vmatmul.msk.bf16.vlgmr.msra.gmra.mxu0 %vm1674_vm1, %v7385_v57  ;;  %v5437_v42 = vor.u32 %v6003_v37, %v5434_v38 }
 0x758   : > { %3781 = vmatpush.bf16.msrb.mxu0 %v5513_v39  ;;  %5618 = vmatmul.msk.bf16.vlgmr.msrb.gmra.mxu2 %vm1674_vm1, %v7385_v57  ;;  %v6004_v39 = vld [vmem:[#allocation14 + $0x44] sm:$0xf] }
 0x759   : > { %3382 = vmatpush.bf16.msrb.mxu1 %v5199_v47  ;;  %v5445_v43 = vor.u32 %v6004_v39, %v5442_v26  ;;  %v5413_v47 = vor.u32 %v5997_v45, %v5410_v3  ;;  %v5658_v39 = vld [vmem:[%s8043_s24 + $0x48] sm:$0xf]  ;;  %v6114_v26 = vld [vmem:[%s8043_s24 + $0x50] sm:$0xf0]  ;;  %v6144_v45 = vld [vmem:[%s8043_s24 + $0x140] sm:$0xf0] }
 0x75a   : > { %3707 = vmatpush.bf16.msrb.mxu3 %v5405_v48  ;;  %v5421_v48 = vor.u32 %v5998_v4, %v5418_v11  ;;  %v6122_v3 = vld [vmem:[%s8043_s24 + $0x94] sm:$0xf]  ;;  %v5696_v4 = vld [vmem:[%s8043_s24 + $0x9c] sm:$0xf0] }
 0x75c   : > { %3782 = vmatpush.bf16.msrb.mxu0 %v5489_v49  ;;  %3383 = vmatmul.bf16.vlgmr.msrb.gmra.mxu1 %v7353_v6  ;;  %v5541_v6 = vor.u32 %v6028_v20, %v5538_v0  ;;  %v5613_v49 = vor.u32 %v6046_v8, %v5610_v31  ;;  %v5694_v20 = vld [vmem:[%s8043_s24 + $0x90] sm:$0xf]  ;;  %v6123_v0 = vld [vmem:[%s8043_s24 + $0x98] sm:$0xf0]  ;;  %v5699_v31 = vor.u32 %v6122_v3, %v5696_v4  ;;  %v5648_v3 = vld [vmem:[%s8043_s24 + $0x3c] sm:$0xf0] }
 0x75d   : > { %3720 = vmatpush.bf16.msra.mxu1 %v5597_v52  ;;  %3708 = vmatmul.bf16.vlgmr.msrb.gmra.mxu3 %v7397_v12  ;;  %v6146_v4 = vld [vmem:[%s8043_s24 + $0x154] sm:$0xf] }
 0x75e   : > { %3772 = vmatpush.bf16.msra.mxu3 %v5605_v30 }
 0x760   : > { %3783 = vmatpush.bf16.msrb.mxu0 %v5465_v54 }
 0x761   : > { %3752 = vmatpush.bf16.msrb.mxu1 %v5581_v46 }
 0x762   : > { %3804 = vmatpush.bf16.msrb.mxu3 %v5589_v55 }
 0x764   : > { %3784 = vmatpush.bf16.msrb.mxu0 %v5441_v32  ;;  %v5706_v32 = vld [vmem:[%s8043_s24 + $0xa8] sm:$0xf] }
 0x765   : > { %3753 = vmatpush.bf16.msrb.mxu1 %v5557_v53 }
 0x766   : > { %3805 = vmatpush.bf16.msrb.mxu3 %v5565_v40  ;;  %v6126_v40 = vld [vmem:[%s8043_s24 + $0xb0] sm:$0xf0] }
 0x767   : > { %v5707_v59 = vor.u32 %v6126_v40, %v5706_v32  ;;  %v6116_v32 = vld [vmem:[%s8043_s24 + $0x64] sm:$0xf] }
 0x768   : > { %3785 = vmatpush.bf16.msrb.mxu0 %v5417_v23  ;;  %v5695_v23 = vor.u32 %v6123_v0, %v5694_v20  ;;  %v5898_v20 = vld [vmem:[%s8043_s24 + $0x228] sm:$0xf]  ;;  %v6174_v0 = vld [vmem:[%s8043_s24 + $0x230] sm:$0xf0] }
 0x769   : > { %3754 = vmatpush.bf16.msrb.mxu1 %v5533_v21  ;;  %4395 = vmatpush.bf16.msra.mxu2 %v5707_v59  ;;  %v5672_v59 = vld [vmem:[%s8043_s24 + $0x6c] sm:$0xf0] }
 0x76a   : > { %3806 = vmatpush.bf16.msrb.mxu3 %v5541_v6 }
 0x76b   : > { %3786 = vmatmul.bf16.vlgmr.msrb.gmra.mxu0 %v7397_v12 }
 0x76c   : > { %5615 = vmatmul.msk.bf16.vlgmr.msra.gmra.mxu1 %vm1674_vm1, %v7385_v57 }
 0x76d   : > { %3755 = vmatpush.bf16.msrb.mxu1 %v5509_v60  ;;  %5617 = vmatmul.msk.bf16.vlgmr.msra.gmra.mxu3 %vm1674_vm1, %v7385_v57  ;;  %v5683_v60 = vor.u32 %v6120_v10, %v5682_v28  ;;  %v6105_v28 = vld [vmem:[%s8043_s24 + $0x8] sm:$0xf0]  ;;  %v5742_v10 = vld [vmem:[%s8043_s24 + $0xf0] sm:$0xf] }
 0x76e   : > { %3807 = vmatpush.bf16.msrb.mxu3 %v5517_v1  ;;  %4396 = vmatpush.bf16.msra.mxu2 %v5695_v23  ;;  %v6150_v1 = vld [vmem:[%s8043_s24 + $0x170] sm:$0xf0]  ;;  %v5622_v23 = vld [vmem:[%s8043_s24] sm:$0xf] }
 0x76f   : > { %v5803_v63 = vor.u32 %v6150_v1, %v5802_v58  ;;  %v5623_v58 = vor.u32 %v6105_v28, %v5622_v23  ;;  %v6113_v1 = vld [vmem:[%s8043_s24 + $0x4c] sm:$0xf] }
 0x771   : > { %3756 = vmatpush.bf16.msrb.mxu1 %v5485_v5  ;;  %4408 = vmatpush.bf16.msra.mxu0 %v5803_v63  ;;  %v6117_v5 = vld [vmem:[%s8043_s24 + $0x68] sm:$0xf0]  ;;  %v5660_v63 = vld [vmem:[%s8043_s24 + $0x54] sm:$0xf0] }
 0x772   : > { %3808 = vmatpush.bf16.msrb.mxu3 %v5493_v17  ;;  %4397 = vmatpush.bf16.msra.mxu2 %v5683_v60  ;;  %v5790_v17 = vld [vmem:[%s8043_s24 + $0x150] sm:$0xf]  ;;  %v5671_v33 = vor.u32 %v6117_v5, %v5670_v14  ;;  %v6135_v60 = vld [vmem:[%s8043_s24 + $0xf8] sm:$0xf0]  ;;  %v5663_v5 = vor.u32 %v6113_v1, %v5660_v63  ;;  %v6104_v1 = vld [vmem:[%s8043_s24 + $0x4] sm:$0xf] }
 0x773   : > { %v5743_v14 = vor.u32 %v6135_v60, %v5742_v10  ;;  %v6173_v10 = vld [vmem:[%s8043_s24 + $0x22c] sm:$0xf]  ;;  %v5624_v63 = vld [vmem:[%s8043_s24 + $0xc] sm:$0xf0] }
 0x775   : > { %3757 = vmatpush.bf16.msrb.mxu1 %v5461_v36  ;;  %v5708_v36 = vld [vmem:[%s8043_s24 + $0xb4] sm:$0xf0] }
 0x776   : > { %3809 = vmatpush.bf16.msrb.mxu3 %v5469_v61  ;;  %v5791_v61 = vor.u32 %v6147_v34, %v5790_v17  ;;  %v5711_v37 = vor.u32 %v6125_v35, %v5708_v36  ;;  %4398 = vmatpush.bf16.msra.mxu2 %v5671_v33  ;;  %v6149_v17 = vld [vmem:[%s8043_s24 + $0x16c] sm:$0xf]  ;;  %v5804_v33 = vld [vmem:[%s8043_s24 + $0x174] sm:$0xf0]  ;;  %v7575_v34 = vld [vmem:[%s8044_s28] sm:$0x3f] }
 0x777   : > { %v5807_v36 = vor.u32 %v6149_v17, %v5804_v33  ;;  %v5768_v17 = vld [vmem:[%s8043_s24 + $0x12c] sm:$0xf0] }
 0x778   : > { %4409 = vmatpush.bf16.msra.mxu0 %v5791_v61  ;;  %v5886_v61 = vld [vmem:[%s8043_s24 + $0x210] sm:$0xf] }
 0x779   : > { %3758 = vmatpush.bf16.msrb.mxu1 %v5437_v42  ;;  %v5778_v42 = vld [vmem:[%s8043_s24 + $0x138] sm:$0xf]  ;;  %v5810_v33 = vld [vmem:[%s8043_s24 + $0x170] sm:$0xf] }
 0x77a   : > { %3810 = vmatpush.bf16.msrb.mxu3 %v5445_v43  ;;  %v5659_v43 = vor.u32 %v6114_v26, %v5658_v39  ;;  %v5779_v8 = vor.u32 %v6144_v45, %v5778_v42  ;;  %v5730_v26 = vld [vmem:[%s8043_s24 + $0xd8] sm:$0xf]  ;;  %v6132_v42 = vld [vmem:[%s8043_s24 + $0xe0] sm:$0xf0]  ;;  %v6110_v45 = vld [vmem:[%s8043_s24 + $0x34] sm:$0xf] }
 0x77c   : > { %4399 = vmatpush.bf16.msra.mxu2 %v5659_v43  ;;  %4410 = vmatpush.bf16.msra.mxu0 %v5779_v8  ;;  %v5731_v43 = vor.u32 %v6132_v42, %v5730_v26  ;;  %v3833_v8 = vperm.slane %v7575_v34, 1 }
 0x77d   : > { %3759 = vmatpush.bf16.msrb.mxu1 %v5413_v47 }
 0x77e   : > { %3811 = vmatpush.bf16.msrb.mxu3 %v5421_v48  ;;  %v5646_v48 = vld [vmem:[%s8043_s24 + $0x30] sm:$0xf] }
 0x780   : > { %3760 = vmatmul.bf16.vlgmr.msrb.gmra.mxu1 %v7397_v12 }
 0x781   : > { %3824 = vmatpush.bf16.msra.mxu1 %v5613_v49  ;;  %3812 = vmatmul.bf16.vlgmr.msrb.gmra.mxu3 %v7397_v12  ;;  %v6111_v49 = vld [vmem:[%s8043_s24 + $0x38] sm:$0xf0] }
 0x782   : > { %4434 = vmatpush.bf16.msra.mxu3 %v5711_v37  ;;  %v6171_v37 = vld [vmem:[%s8043_s24 + $0x218] sm:$0xf0] }
 0x783   : > { %v5887_v39 = vor.u32 %v6171_v37, %v5886_v61  ;;  %v5850_v37 = vld [vmem:[%s8043_s24 + $0x1c8] sm:$0xf] }
 0x786   : > { %4435 = vmatpush.bf16.msra.mxu3 %v5699_v31  ;;  %v5651_v31 = vor.u32 %v6110_v45, %v5648_v3  ;;  %v6170_v45 = vld [vmem:[%s8043_s24 + $0x214] sm:$0xf]  ;;  %v5888_v3 = vld [vmem:[%s8043_s24 + $0x21c] sm:$0xf0] }
 0x790   : > { %5619 = vmatmul.msk.bf16.vlgmr.msra.gmra.mxu1 %vm1674_vm1, %v7385_v57 }
 0x793   : > { %v3254_v44 = vpop.f32.mrf.mxu0 }
 0x799   : > { %v7420_v51 = vpop.f32.mrf.mxu2 }
 0x79b   : > { %v3256_v50 = vpop.f32.mrf.mxu0 }
 0x7a1   : > { %v3282_v52 = vpop.f32.mrf.mxu2 }
 0x7a2   : > { %v5647_v52 = vor.u32 %v6111_v49, %v5646_v48  ;;  %v5792_v48 = vld [vmem:[%s8043_s24 + $0x15c] sm:$0xf0] }
 0x7a3   : > { %v3306_v30 = vpop.f32.mrf.mxu0 }
 0x7a4   : > { %4400 = vmatpush.bf16.msra.mxu2 %v5647_v52  ;;  %v6168_v52 = vld [vmem:[%s8043_s24 + $0x200] sm:$0xf0] }
 0x7a8   : > { %v3267_v19 = vpop.f32.mrf.mxu1 }
 0x7a9   : > { %v3268_v41 = vadd.f32 %v3267_v19, %v3254_v44  ;;  %v7422_v25 = vpop.f32.mrf.mxu2  ;;  %v5766_v44 = vld [vmem:[%s8043_s24 + $0x120] sm:$0xf]  ;;  %v6119_v19 = vld [vmem:[%s8043_s24 + $0x7c] sm:$0xf] }
 0x7ab   : > { %v3308_v46 = vpop.f32.mrf.mxu0 }
 0x7ae   : > { %v7424_v54 = vpop.f32.mrf.mxu3 }
 0x7b0   : > { %v3269_v55 = vpop.f32.mrf.mxu1 }
 0x7b1   : > { %v3360_v56 = vpop.f32.mrf.mxu2 }
 0x7b3   : > { %v7426_v16 = vpop.f32.mrf.mxu0 }
 0x7b4   : > { %v3372_v49 = vadd.f32 %v7426_v16, %v7422_v25  ;;  %v5718_v25 = vld [vmem:[%s8043_s24 + $0xc0] sm:$0xf]  ;;  %v6129_v16 = vld [vmem:[%s8043_s24 + $0xc8] sm:$0xf0] }
 0x7b6   : > { %v3295_v12 = vpop.f32.mrf.mxu3 }
 0x7b7   : > { %v5634_v12 = vld [vmem:[%s8043_s24 + $0x18] sm:$0xf] }
 0x7b8   : > { %v3319_v22 = vpop.f32.mrf.mxu1 }
 0x7b9   : > { %v7428_v57 = vadd.f32 %v3319_v22, %v3306_v30  ;;  %v3696_v2 = vpop.f32.mrf.mxu2  ;;  %v6141_v30 = vld [vmem:[%s8043_s24 + $0x128] sm:$0xf0]  ;;  %v6108_v22 = vld [vmem:[%s8043_s24 + $0x20] sm:$0xf0] }
 0x7ba   : > { %v5767_v46 = vor.u32 %v6141_v30, %v5766_v44  ;;  %v5795_v44 = vor.u32 %v6146_v4, %v5792_v48  ;;  %v3294_v30 = vadd.f32 %v7424_v54, %v7420_v51  ;;  %v6107_v51 = vld [vmem:[%s8043_s24 + $0x1c] sm:$0xf]  ;;  %v5636_v54 = vld [vmem:[%s8043_s24 + $0x24] sm:$0xf0]  ;;  %v5891_v4 = vor.u32 %v6170_v45, %v5888_v3  ;;  %v6128_v45 = vld [vmem:[%s8043_s24 + $0xc4] sm:$0xf] }
 0x7bb   : > { %v3373_v29 = vpop.f32.mrf.mxu0  ;;  %v5720_v3 = vld [vmem:[%s8043_s24 + $0xcc] sm:$0xf0] }
 0x7bc   : > { %4411 = vmatpush.bf16.msra.mxu0 %v5767_v46  ;;  %v5635_v29 = vor.u32 %v6108_v22, %v5634_v12  ;;  %v5719_v22 = vor.u32 %v6129_v16, %v5718_v25  ;;  %v3832_v25 = vperm.slane %v7575_v34, 0  ;;  %v3835_v16 = vperm.slane %v7575_v34, 3 }
 0x7be   : > { %v7430_v62 = vpop.f32.mrf.mxu3  ;;  %4401 = vmatpush.bf16.msra.mxu2 %v5635_v29 }
 0x7c0   : > { %v3321_v53 = vpop.f32.mrf.mxu1 }
 0x7c1   : > { %v3698_v7 = vpop.f32.mrf.mxu2  ;;  %v6138_v53 = vld [vmem:[%s8043_s24 + $0x110] sm:$0xf0] }
 0x7c2   : > { %4402 = vmatpush.bf16.msra.mxu2 %v5623_v58 }
 0x7c4   : > { %v3683_v15 = vpop.f32.mrf.mxu0 }
 0x7c5   : > { %v3684_v18 = vadd.f32 %v3683_v15, %v3268_v41  ;;  %v5684_v41 = vld [vmem:[%s8043_s24 + $0x84] sm:$0xf0] }
 0x7c6   : > { %v3334_v21 = vpop.f32.mrf.mxu3  ;;  %v5687_v55 = vor.u32 %v6119_v19, %v5684_v41  ;;  %4447 = vmatpush.bf16.msrb.mxu2 %v5807_v36  ;;  %v7613_v19 = vpop.xlane.xlu0 %2862 }
 0x7c7   : > { %v7444_v6 = vadd.f32 %v3696_v2, %v3684_v18  ;;  %v5754_v2 = vld [vmem:[%s8043_s24 + $0x108] sm:$0xf]  ;;  %v5675_v18 = vor.u32 %v6116_v32, %v5672_v59  ;;  %v5899_v21 = vor.u32 %v6174_v0, %v5898_v20  ;;  %v3845_v32 = vmul.f32 %v3833_v8, %v7613_v19  ;;  %v5862_v0 = vld [vmem:[%s8043_s24 + $0x1e0] sm:$0xf]  ;;  %v5756_v8 = vld [vmem:[%s8043_s24 + $0x114] sm:$0xf0] }
 0x7c8   : > { %v7446_v24 = vpop.f32.mrf.mxu1  ;;  %4436 = vmatpush.bf16.msra.mxu3 %v5687_v55  ;;  %v5755_v7 = vor.u32 %v6138_v53, %v5754_v2  ;;  %v6143_v2 = vld [vmem:[%s8043_s24 + $0x13c] sm:$0xf]  ;;  %v5780_v59 = vld [vmem:[%s8043_s24 + $0x144] sm:$0xf0] }
 0x7c9   : > { %4421 = vmatpush.bf16.msrb.mxu1 %v5899_v21  ;;  %v5783_v20 = vor.u32 %v6143_v2, %v5780_v59  ;;  %v6165_v21 = vld [vmem:[%s8043_s24 + $0x1e8] sm:$0xf0] }
 0x7ca   : > { %4412 = vmatpush.bf16.msra.mxu0 %v5755_v7  ;;  %4448 = vmatpush.bf16.msrb.mxu2 %v5795_v44  ;;  %v5639_v7 = vor.u32 %v6107_v51, %v5636_v54  ;;  %v5863_v28 = vor.u32 %v6165_v21, %v5862_v0  ;;  %v5798_v44 = vld [vmem:[%s8043_s24 + $0x158] sm:$0xf]  ;;  %v6134_v51 = vld [vmem:[%s8043_s24 + $0xf4] sm:$0xf]  ;;  %v5744_v54 = vld [vmem:[%s8043_s24 + $0xfc] sm:$0xf0] }
 0x7cb   : > { %v7460_v9 = vpop.f32.mrf.mxu2 }
 0x7cc   : > { %v3685_v13 = vpop.f32.mrf.mxu0  ;;  %4437 = vmatpush.bf16.msra.mxu3 %v5675_v18 }
 0x7cd   : > { %4422 = vmatpush.bf16.msrb.mxu1 %v5887_v39 }
 0x7ce   : > { %v7471_v27 = vpop.f32.mrf.mxu3  ;;  %4413 = vmatpush.bf16.msra.mxu0 %v5743_v14  ;;  %4449 = vmatpush.bf16.msrb.mxu2 %v5783_v20  ;;  %v5864_v20 = vld [vmem:[%s8043_s24 + $0x1ec] sm:$0xf0] }
 0x7d0   : > { %v3347_v38 = vpop.f32.mrf.mxu1  ;;  %4438 = vmatpush.bf16.msra.mxu3 %v5663_v5  ;;  %v5627_v5 = vor.u32 %v6104_v1, %v5624_v63  ;;  %v6153_v1 = vld [vmem:[%s8043_s24 + $0x188] sm:$0xf0] }
 0x7d1   : > { %v3836_v38 = vperm.slane %v7575_v34, 4 }
 0x7d2   : > { %4414 = vmatpush.bf16.msra.mxu0 %v5731_v43 }
 0x7d3   : > { %v3737_v11 = vpop.f32.mrf.mxu2  ;;  %v3848_v12 = vmul.f32 %v3836_v38, %v7613_v19  ;;  %v6162_v38 = vld [vmem:[%s8043_s24 + $0x1d0] sm:$0xf0] }
 0x7d4   : > { %v7500_v47 = vpop.f32.mrf.mxu0  ;;  %4439 = vmatpush.bf16.msra.mxu3 %v5651_v31  ;;  %v5851_v43 = vor.u32 %v6162_v38, %v5850_v37 }
 0x7d6   : > { %v3399_v50 = vpop.f32.mrf.mxu3  ;;  %4415 = vmatpush.bf16.msra.mxu0 %v5719_v22  ;;  %v5876_v22 = vld [vmem:[%s8043_s24 + $0x204] sm:$0xf0] }
 0x7d7   : > { %v5874_v50 = vld [vmem:[%s8043_s24 + $0x1f8] sm:$0xf] }
 0x7d8   : > { %v5875_v46 = vor.u32 %v6168_v52, %v5874_v50  ;;  %4440 = vmatpush.bf16.msra.mxu3 %v5639_v7  ;;  %v6148_v50 = vld [vmem:[%s8043_s24 + $0x160] sm:$0xf0]  ;;  %v5826_v7 = vld [vmem:[%s8043_s24 + $0x198] sm:$0xf] }
 0x7d9   : > { %v7520_v56 = vpop.f32.mrf.mxu1 }
 0x7da   : > { %4423 = vmatpush.bf16.msrb.mxu1 %v5875_v46  ;;  %v6159_v46 = vld [vmem:[%s8043_s24 + $0x1b8] sm:$0xf0] }
 0x7db   : > { %v7537_v40 = vpop.f32.mrf.mxu2 }
 0x7dc   : > { %v3750_v15 = vpop.f32.mrf.mxu0  ;;  %4441 = vmatpush.bf16.msra.mxu3 %v5627_v5 }
 0x7de   : > { %4424 = vmatpush.bf16.msrb.mxu1 %v5863_v28  ;;  %v5732_v28 = vld [vmem:[%s8043_s24 + $0xe4] sm:$0xf0] }
 0x7e0   : > { %v3709_v13 = vpop.f32.mrf.mxu3 }
 0x7e1   : > { %v3386_v35 = vpop.f32.mrf.mxu1  ;;  %v3710_v29 = vadd.f32 %v3709_v13, %v3294_v30  ;;  %v6140_v13 = vld [vmem:[%s8043_s24 + $0x124] sm:$0xf]  ;;  %v5799_v30 = vor.u32 %v6148_v50, %v5798_v44  ;;  %v6139_v44 = vld [vmem:[%s8043_s24 + $0x118] sm:$0xf0]  ;;  %v7787_v50 = vld [vmem:[%s900_s17] sm:$0x7] }
 0x7e2   : > { %v6151_v35 = vld [vmem:[%s8043_s24 + $0x178] sm:$0xf0]  ;;  %v5771_v36 = vor.u32 %v6140_v13, %v5768_v17  ;;  %4425 = vmatpush.bf16.msrb.mxu1 %v5851_v43  ;;  %v3844_v13 = vmul.f32 %v3832_v25, %v7613_v19 }
 0x7e3   : > { %v3802_v11 = vpop.f32.mrf.mxu2  ;;  %v5811_v61 = vor.u32 %v6151_v35, %v5810_v33  ;;  %v6161_v33 = vld [vmem:[%s8043_s24 + $0x1cc] sm:$0xf]  ;;  %v5852_v35 = vld [vmem:[%s8043_s24 + $0x1d4] sm:$0xf0] }
 0x7e4   : > { %4450 = vmatpush.bf16.msrb.mxu2 %v5771_v36  ;;  %v6137_v11 = vld [vmem:[%s8043_s24 + $0x10c] sm:$0xf]  ;;  %v5714_v36 = vld [vmem:[%s8043_s24 + $0xb0] sm:$0xf] }
 0x7e5   : > { %4486 = vmatpush.bf16.msrb.mxu3 %v5811_v61 }
 0x7e8   : > { %v3787_v41 = vpop.f32.mrf.mxu0  ;;  %v3711_v53 = vpop.f32.mrf.mxu3 }
 0x7e9   : > { %v3788_v55 = vadd.f32 %v3787_v41, %v3372_v49  ;;  %v3722_v18 = vpop.f32.mrf.mxu1  ;;  %v5759_v49 = vor.u32 %v6137_v11, %v5756_v8  ;;  %v5838_v41 = vld [vmem:[%s8043_s24 + $0x1b0] sm:$0xf]  ;;  %4487 = vmatpush.bf16.msrb.mxu3 %v5799_v30  ;;  %v5786_v53 = vld [vmem:[%s8043_s24 + $0x140] sm:$0xf]  ;;  %v3850_v11 = vadd.f32 %v3844_v13, %v7444_v6  ;;  %v5723_v8 = vor.u32 %v6128_v45, %v5720_v3  ;;  %v6158_v6 = vld [vmem:[%s8043_s24 + $0x1b4] sm:$0xf] }
 0x7ea   : > { %v3723_v23 = vadd.f32 %v3722_v18, %v3710_v29  ;;  %v5747_v29 = vor.u32 %v6134_v51, %v5744_v54  ;;  %v6164_v18 = vld [vmem:[%s8043_s24 + $0x1e4] sm:$0xf] }
 0x7eb   : > { %v3801_v15 = vadd.f32 %v7537_v40, %v3788_v55  ;;  %v5900_v40 = vld [vmem:[%s8043_s24 + $0x234] sm:$0xf0]  ;;  %v6167_v55 = vld [vmem:[%s8043_s24 + $0x1fc] sm:$0xf]  ;;  %4451 = vmatpush.bf16.msrb.mxu2 %v5759_v49  ;;  %v5867_v21 = vor.u32 %v6164_v18, %v5864_v20  ;;  %v5762_v49 = vld [vmem:[%s8043_s24 + $0x110] sm:$0xf] }
 0x7ec   : > { %v5903_v60 = vor.u32 %v6173_v10, %v5900_v40  ;;  %v3851_v14 = vadd.f32 %v3845_v32, %v3723_v23  ;;  %v5879_v2 = vor.u32 %v6167_v55, %v5876_v22  ;;  %v6145_v32 = vld [vmem:[%s8043_s24 + $0x148] sm:$0xf0]  ;;  %v6131_v23 = vld [vmem:[%s8043_s24 + $0xdc] sm:$0xf]  ;;  %v5774_v10 = vld [vmem:[%s8043_s24 + $0x128] sm:$0xf]  ;;  %v5763_v30 = vor.u32 %v6139_v44, %v5762_v49 }
 0x7ed   : > { %v3854_v58 = vadd.f32 %v3848_v12, %v3801_v15  ;;  %v5839_v12 = vor.u32 %v6159_v46, %v5838_v41  ;;  %v5787_v59 = vor.u32 %v6145_v32, %v5786_v53  ;;  %v6156_v15 = vld [vmem:[%s8043_s24 + $0x1a0] sm:$0xf0]  ;;  %v5735_v40 = vor.u32 %v6131_v23, %v5732_v28  ;;  %v5702_v46 = vld [vmem:[%s8043_s24 + $0x98] sm:$0xf]  ;;  %v6155_v20 = vld [vmem:[%s8043_s24 + $0x19c] sm:$0xf] }
 0x7ee   : > { %4460 = vmatpush.bf16.msrb.mxu0 %v5903_v60  ;;  %v3857_v26 = vmul.f32 %v3851_v14, %v3851_v14  ;;  %v5827_v0 = vor.u32 %v6156_v15, %v5826_v7  ;;  %v5814_v60 = vld [vmem:[%s8043_s24 + $0x180] sm:$0xf]  ;;  %v3346_v14 = vadd.f32 %v7446_v24, %v7430_v62  ;;  %v6127_v24 = vld [vmem:[%s8043_s24 + $0xb8] sm:$0xf0]  ;;  %v6124_v55 = vld [vmem:[%s8043_s24 + $0xa0] sm:$0xf0]  ;;  %v3856_v22 = vmul.f32 %v3850_v11, %v3850_v11 }
 0x7ef   : > { %v3860_v39 = vmul.f32 %v3854_v58, %v3854_v58  ;;  %4426 = vmatpush.bf16.msrb.mxu1 %v5839_v12  ;;  %4452 = vmatpush.bf16.msrb.mxu2 %v5747_v29  ;;  %v6142_v58 = vld [vmem:[%s8043_s24 + $0x130] sm:$0xf0]  ;;  %v5815_v62 = vor.u32 %v6153_v1, %v5814_v60  ;;  %v5750_v12 = vld [vmem:[%s8043_s24 + $0xf8] sm:$0xf]  ;;  %v6136_v29 = vld [vmem:[%s8043_s24 + $0x100] sm:$0xf0]  ;;  %v3736_v23 = vadd.f32 %v7460_v9, %v7428_v57 }
 0x7f0   : > { %v3789_v42 = vpop.f32.mrf.mxu0  ;;  %v7686_v48 = vpop.f32.mrf.mxu3  ;;  %4488 = vmatpush.bf16.msrb.mxu3 %v5787_v59  ;;  %v5775_v17 = vor.u32 %v6142_v58, %v5774_v10  ;;  %v3834_v53 = vperm.slane %v7575_v34, 2  ;;  %v3904_v59 = vperm.slane %v7787_v50, 1  ;;  %v5751_v15 = vor.u32 %v6136_v29, %v5750_v12  ;;  %v5738_v58 = vld [vmem:[%s8043_s24 + $0xe0] sm:$0xf]  ;;  %v6133_v60 = vld [vmem:[%s8043_s24 + $0xe8] sm:$0xf0] }
 0x7f1   : > { %v7684_v31 = vadd.f32 %v3860_v39, %v3857_v26  ;;  %v3724_v52 = vpop.f32.mrf.mxu1  ;;  %v3847_v39 = vmul.f32 %v3835_v16, %v7613_v19  ;;  %v5855_v26 = vor.u32 %v6161_v33, %v5852_v35  ;;  %v5715_v42 = vor.u32 %v6127_v24, %v5714_v36  ;;  %v6115_v11 = vld [vmem:[%s8043_s24 + $0x58] sm:$0xf0]  ;;  %v5642_v12 = vld [vmem:[%s8043_s24 + $0x20] sm:$0xf] }
 0x7f2   : > { %4461 = vmatpush.bf16.msrb.mxu0 %v5891_v4  ;;  %v3837_v1 = vperm.slane %v7575_v34, 5  ;;  %v5739_v13 = vor.u32 %v6133_v60, %v5738_v58  ;;  %v6152_v34 = vld [vmem:[%s8043_s24 + $0x184] sm:$0xf]  ;;  %v3903_v29 = vperm.slane %v7787_v50, 0 }
 0x7f3   : > { %6303 = vrsqrt.f32 %v7684_v31  ;;  %4427 = vmatpush.bf16.msrb.mxu1 %v5827_v0  ;;  %4453 = vmatpush.bf16.msrb.mxu2 %v5735_v40  ;;  %v5828_v0 = vld [vmem:[%s8043_s24 + $0x1a4] sm:$0xf0]  ;;  %v6121_v40 = vld [vmem:[%s8043_s24 + $0x88] sm:$0xf0]  ;;  %vm3884_vm4 = vcmp.eq.f32.partialorder %v7684_v31, inf  ;;  %v3887_v57 = vand.u32 2147483648, %v7684_v31 }
 0x7f4   : > { %4489 = vmatpush.bf16.msrb.mxu3 %v5775_v17  ;;  %v5831_v10 = vor.u32 %v6155_v20, %v5828_v0  ;;  %vm3886_vm5 = vcmp.eq.f32.partialorder %v7684_v31, 0.0  ;;  %v3398_v17 = vadd.f32 %v7471_v27, %v7520_v56  ;;  %v6118_v27 = vld [vmem:[%s8043_s24 + $0x70] sm:$0xf0]  ;;  %v5726_v56 = vld [vmem:[%s8043_s24 + $0xc8] sm:$0xf]  ;;  %v3849_v3 = vmul.f32 %v3837_v1, %v7613_v19 }
 0x7f5   : > { %v6175_v20 = vld [vmem:[%s8043_s24 + $0x238] sm:$0xf0]  ;;  %v6172_v60 = vld [vmem:[%s8043_s24 + $0x220] sm:$0xf0] }
 0x7f6   : > { %4462 = vmatpush.bf16.msrb.mxu0 %v5879_v2  ;;  %v5703_v2 = vor.u32 %v6124_v55, %v5702_v46 }
 0x7f7   : > { %4428 = vmatpush.bf16.msrb.mxu1 %v5815_v62  ;;  %4454 = vmatpush.bf16.msrb.mxu2 %v5723_v8 }
 0x7f8   : > { %v3776_v5 = vpop.f32.mrf.mxu3  ;;  %4490 = vmatpush.bf16.msrb.mxu3 %v5763_v30 }
 0x7f9   : > { %v6304_v63 = vpop.eup %6303  ;;  %v3846_v5 = vmul.f32 %v3834_v53, %v7613_v19 }
 0x7fa   : > { %v3878_v37 = vmul.f32 %v6304_v63, %v7684_v31  ;;  %4463 = vmatpush.bf16.msrb.mxu0 %v5867_v21  ;;  %v5690_v21 = vld [vmem:[%s8043_s24 + $0x80] sm:$0xf] }
 0x7fb   : > { %4473 = vmatpush.bf16.msra.mxu1 %v5715_v42 }
 0x7fc   : > { %v3879_v43 = vmul.f32 %v6304_v63, %v3878_v37  ;;  %4491 = vmatpush.bf16.msrb.mxu3 %v5751_v15  ;;  %v5906_v15 = vld [vmem:[%s8043_s24 + $0x230] sm:$0xf] }
 0x7fd   : > { %v3761_v61 = vpop.f32.mrf.mxu1 }
 0x7fe   : > { %v3762_v38 = vadd.f32 %v3761_v61, %v3346_v14  ;;  %v3880_v52 = vmul.f32 0.5, %v3879_v43  ;;  %4464 = vmatpush.bf16.msrb.mxu0 %v5855_v26  ;;  %v3749_v14 = vadd.f32 %v7500_v47, %v3736_v23  ;;  %v5678_v47 = vld [vmem:[%s8043_s24 + $0x68] sm:$0xf]  ;;  %v6130_v61 = vld [vmem:[%s8043_s24 + $0xd0] sm:$0xf0] }
 0x7ff   : > { %4474 = vmatpush.bf16.msra.mxu1 %v5703_v2  ;;  %v5679_v24 = vor.u32 %v6118_v27, %v5678_v47 }
 0x800   : > { %v3775_v4 = vadd.f32 %v7686_v48, %v3762_v38  ;;  %v5840_v48 = vld [vmem:[%s8043_s24 + $0x1bc] sm:$0xf0]  ;;  %v3881_v25 = vsub.f32 1.5, %v3880_v52  ;;  %4492 = vmatpush.bf16.msrb.mxu3 %v5739_v13  ;;  %v5727_v38 = vor.u32 %v6130_v61, %v5726_v56  ;;  %v3852_v43 = vadd.f32 %v3846_v5, %v3749_v14  ;;  %v6169_v13 = vld [vmem:[%s8043_s24 + $0x208] sm:$0xf0] }
 0x801   : > { %v5843_v16 = vor.u32 %v6158_v6, %v5840_v48  ;;  %v6112_v6 = vld [vmem:[%s8043_s24 + $0x40] sm:$0xf0] }
 0x802   : > { %v3853_v41 = vadd.f32 %v3847_v39, %v3775_v4  ;;  %v3882_v7 = vmul.f32 %v6304_v63, %v3881_v25  ;;  %v5691_v63 = vor.u32 %v6121_v40, %v5690_v21  ;;  %v5666_v4 = vld [vmem:[%s8043_s24 + $0x50] sm:$0xf]  ;;  %v3858_v30 = vmul.f32 %v3852_v43, %v3852_v43  ;;  %v6160_v43 = vld [vmem:[%s8043_s24 + $0x1c0] sm:$0xf0] }
 0x803   : > { %4465 = vmatpush.bf16.msrb.mxu0 %v5843_v16  ;;  %v5667_v49 = vor.u32 %v6115_v11, %v5666_v4  ;;  %v5907_v40 = vor.u32 %v6175_v20, %v5906_v15  ;;  %v6157_v4 = vld [vmem:[%s8043_s24 + $0x1a8] sm:$0xf0] }
 0x804   : > { %v3859_v51 = vmul.f32 %v3853_v41, %v3853_v41  ;;  %v3813_v54 = vpop.f32.mrf.mxu3  ;;  %v3883_v28 = vmul.f32 %v3882_v7, %v7684_v31  ;;  %4475 = vmatpush.bf16.msra.mxu1 %v5691_v63  ;;  %4493 = vmatpush.bf16.msrb.mxu3 %v5727_v38  ;;  %v5654_v41 = vld [vmem:[%s8043_s24 + $0x38] sm:$0xf]  ;;  %v6106_v7 = vld [vmem:[%s8043_s24 + $0x10] sm:$0xf0]  ;;  %v5882_v63 = vld [vmem:[%s8043_s24 + $0x200] sm:$0xf] }
 0x805   : > { %v3763_v32 = vpop.f32.mrf.mxu1  ;;  %v3814_v37 = vadd.f32 %v3813_v54, %v3398_v17  ;;  %v5655_v46 = vor.u32 %v6112_v6, %v5654_v41  ;;  %v5883_v17 = vor.u32 %v6169_v13, %v5882_v63 }
 0x806   : > { %v7809_v18 = vadd.f32 %v3859_v51, %v3856_v22  ;;  %v3885_v9 = vsel %vm3884_vm4, %v7684_v31, %v3883_v28  ;;  %v5816_v31 = vld [vmem:[%s8043_s24 + $0x18c] sm:$0xf0]  ;;  %v6109_v51 = vld [vmem:[%s8043_s24 + $0x28] sm:$0xf0]  ;;  %v5630_v32 = vld [vmem:[%s8043_s24 + $0x8] sm:$0xf] }
 0x807   : > { %v7842_v33 = vsel %vm3886_vm5, %v3887_v57, %v3885_v9  ;;  %4466 = vmatpush.bf16.msrb.mxu0 %v5831_v10  ;;  %v5819_v36 = vor.u32 %v6152_v34, %v5816_v31  ;;  %v5643_v54 = vor.u32 %v6109_v51, %v5642_v12  ;;  %v5631_v0 = vor.u32 %v6106_v7, %v5630_v32  ;;  %v5870_v34 = vld [vmem:[%s8043_s24 + $0x1e8] sm:$0xf]  ;;  %v6166_v31 = vld [vmem:[%s8043_s24 + $0x1f0] sm:$0xf0] }
 0x808   : > { %6305 = vrsqrt.f32 %v7809_v18  ;;  %v3910_v35 = vsub.f32 %v7842_v33, %v3904_v59  ;;  %4476 = vmatpush.bf16.msra.mxu1 %v5679_v24  ;;  %vm3872_vm6 = vcmp.eq.f32.partialorder %v7809_v18, inf  ;;  %v3875_v53 = vand.u32 2147483648, %v7809_v18  ;;  %v6163_v24 = vld [vmem:[%s8043_s24 + $0x1d8] sm:$0xf0] }
 0x809   : > { %vm3874_vm7 = vcmp.eq.f32.partialorder %v7809_v18, 0.0  ;;  %v5871_v56 = vor.u32 %v6166_v31, %v5870_v34 }
 0x80a   : > { %v7863_v26 = vpack.c.bf16 %v3910_v35, %v3910_v35  ;;  %v3905_v35 = vperm.slane %v7787_v50, 2 }
 0x80b   : > { %4467 = vmatpush.bf16.msrb.mxu0 %v5819_v36 }
 0x80c   : > { %v3815_v62 = vpop.f32.mrf.mxu3  ;;  %4416 = vmatmul.bf16.vlgmr.msra.gmra.mxu0 %v7863_v26  ;;  %4477 = vmatpush.bf16.msra.mxu1 %v5667_v49 }
 0x80d   : > { %v3826_v39 = vpop.f32.mrf.mxu1  ;;  %v5858_v62 = vld [vmem:[%s8043_s24 + $0x1d0] sm:$0xf] }
 0x80e   : > { %v6306_v42 = vpop.eup %6305  ;;  %v3827_v45 = vadd.f32 %v3826_v39, %v3814_v37  ;;  %v5859_v39 = vor.u32 %v6163_v24, %v5858_v62 }
 0x80f   : > { %v3866_v8 = vmul.f32 %v6306_v42, %v7809_v18 }
 0x810   : > { %v3855_v44 = vadd.f32 %v3849_v3, %v3827_v45  ;;  %4478 = vmatpush.bf16.msra.mxu1 %v5655_v46  ;;  %v5834_v3 = vld [vmem:[%s8043_s24 + $0x1a0] sm:$0xf] }
 0x811   : > { %v3867_v52 = vmul.f32 %v6306_v42, %v3866_v8  ;;  %v5835_v11 = vor.u32 %v6157_v4, %v5834_v3  ;;  %v5822_v8 = vld [vmem:[%s8043_s24 + $0x188] sm:$0xf] }
 0x812   : > { %v3861_v19 = vmul.f32 %v3855_v44, %v3855_v44 }
 0x813   : > { %v3868_v48 = vmul.f32 0.5, %v3867_v52 }
 0x814   : > { %v3864_v25 = vadd.f32 %v3861_v19, %v3858_v30  ;;  %4479 = vmatpush.bf16.msra.mxu1 %v5643_v54 }
 0x815   : > { %v3828_v16 = vpop.f32.mrf.mxu1  ;;  %v3869_v55 = vsub.f32 1.5, %v3868_v48 }
 0x816   : > { %6307 = vrsqrt.f32 %v3864_v25  ;;  %vm3896_vm8 = vcmp.eq.f32.partialorder %v3864_v25, inf  ;;  %v3899_v36 = vand.u32 2147483648, %v3864_v25  ;;  %vm3898_vm9 = vcmp.eq.f32.partialorder %v3864_v25, 0.0 }
 0x817   : > { %v3870_v22 = vmul.f32 %v6306_v42, %v3869_v55  ;;  %v5846_v42 = vld [vmem:[%s8043_s24 + $0x1b8] sm:$0xf] }
 0x818   : > { %4480 = vmatpush.bf16.msra.mxu1 %v5631_v0  ;;  %v5847_v45 = vor.u32 %v6160_v43, %v5846_v42 }
 0x819   : > { %v3871_v2 = vmul.f32 %v3870_v22, %v7809_v18 }
 0x81b   : > { %v3873_v59 = vsel %vm3872_vm6, %v7809_v18, %v3871_v2  ;;  %v5894_v18 = vld [vmem:[%s8043_s24 + $0x218] sm:$0xf] }
 0x81c   : > { %v6308_v21 = vpop.eup %6307  ;;  %v7904_v23 = vsel %vm3874_vm7, %v3875_v53, %v3873_v59  ;;  %v5895_v9 = vor.u32 %v6172_v60, %v5894_v18 }
 0x81d   : > { %v3909_v28 = vsub.f32 %v7904_v23, %v3903_v29  ;;  %v3890_v10 = vmul.f32 %v6308_v21, %v3864_v25 }
 0x81f   : > { %v3912_v58 = vpack.c.bf16 %v3909_v28, %v3909_v28  ;;  %v3891_v1 = vmul.f32 %v6308_v21, %v3890_v10 }
 0x821   : > { %4403 = vmatmul.bf16.vlgmr.msra.gmra.mxu2 %v3912_v58  ;;  %4442 = vmatmul.bf16.vlgmr.msra.gmra.mxu3 %v3912_v58  ;;  %v3892_v57 = vmul.f32 0.5, %v3891_v1 }
 0x822   : > { %4499 = vmatpush.bf16.msra.mxu2 %v5907_v40 }
 0x823   : > { %v3893_v14 = vsub.f32 1.5, %v3892_v57 }
 0x825   : > { %v3894_v5 = vmul.f32 %v6308_v21, %v3893_v14 }
 0x826   : > { %4500 = vmatpush.bf16.msra.mxu2 %v5895_v9 }
 0x827   : > { %v3895_v47 = vmul.f32 %v3894_v5, %v3864_v25 }
 0x829   : > { %v3897_v27 = vsel %vm3896_vm8, %v3864_v25, %v3895_v47 }
 0x82a   : > { %4501 = vmatpush.bf16.msra.mxu2 %v5883_v17  ;;  %v3900_v61 = vsel %vm3898_vm9, %v3899_v36, %v3897_v27 }
 0x82b   : > { %v3911_v37 = vsub.f32 %v3900_v61, %v3905_v35 }
 0x82d   : > { %v3914_v38 = vpack.c.bf16 %v3911_v37, %v3911_v37 }
 0x82e   : > { %4502 = vmatpush.bf16.msra.mxu2 %v5871_v56 }
 0x82f   : > { %4429 = vmatmul.bf16.vlgmr.msrb.gmra.mxu1 %v3914_v38  ;;  %4468 = vmatmul.bf16.vlgmr.msrb.gmra.mxu0 %v3914_v38 }
 0x831   : > { %4455 = vmatmul.bf16.vlgmr.msrb.gmra.mxu2 %v7863_v26  ;;  %4494 = vmatmul.bf16.vlgmr.msrb.gmra.mxu3 %v7863_v26  ;;  %v6154_v26 = vld [vmem:[%s8043_s24 + $0x190] sm:$0xf0] }
 0x832   : > { %4503 = vmatpush.bf16.msra.mxu2 %v5859_v39  ;;  %v5823_v49 = vor.u32 %v6154_v26, %v5822_v8 }
 0x836   : > { %4504 = vmatpush.bf16.msra.mxu2 %v5847_v45 }
 0x83a   : > { %4505 = vmatpush.bf16.msra.mxu2 %v5835_v11 }
 0x83e   : > { %4506 = vmatpush.bf16.msra.mxu2 %v5823_v49 }
 0x83f   : > { %4481 = vmatmul.bf16.vlgmr.msra.gmra.mxu1 %v3912_v58 }
 0x841   : > { %4507 = vmatmul.bf16.vlgmr.msra.gmra.mxu2 %v3914_v38 }
 0x889   : > { %v4417_v44 = vpop.f32.mrf.mxu0 }
 0x891   : > { %v4419_v52 = vpop.f32.mrf.mxu0 }
 0x8a4   : > { %v4404_v30 = vpop.f32.mrf.mxu2  ;;  %v4443_v19 = vpop.f32.mrf.mxu3 }
 0x8a5   : > { %v4418_v32 = vadd.f32 %v4417_v44, %v4404_v30 }
 0x8ac   : > { %v4406_v41 = vpop.f32.mrf.mxu2  ;;  %v4430_v6 = vpop.f32.mrf.mxu1 }
 0x8ad   : > { %v4445_v48 = vpop.f32.mrf.mxu3  ;;  %v4469_v46 = vpop.f32.mrf.mxu0  ;;  %v4431_v0 = vadd.f32 %v4430_v6, %v4418_v32 }
 0x8b4   : > { %v4432_v25 = vpop.f32.mrf.mxu1  ;;  %v4456_v16 = vpop.f32.mrf.mxu2 }
 0x8b5   : > { %v4471_v55 = vpop.f32.mrf.mxu0  ;;  %v4495_v12 = vpop.f32.mrf.mxu3  ;;  %v4457_v22 = vadd.f32 %v4456_v16, %v4443_v19 }
 0x8b7   : > { %v4470_v29 = vadd.f32 %v4469_v46, %v4457_v22 }
 0x8b9   : > { %v4515_v7 = vrot.slane %v4470_v29, 7 }
 0x8bb   : > { %v4517_v28 = vsel %vm2855_vm2, %v4431_v0, %v4515_v7 }
 0x8bc   : > { %v4458_v51 = vpop.f32.mrf.mxu2  ;;  %v4482_v54 = vpop.f32.mrf.mxu1 }
 0x8bd   : > { %v4497_v2 = vpop.f32.mrf.mxu3  ;;  %v4496_v53 = vadd.f32 %v4495_v12, %v4482_v54 }
 0x8c4   : > { %v4484_v59 = vpop.f32.mrf.mxu1  ;;  %v4508_v15 = vpop.f32.mrf.mxu2 }
 0x8c5   : > { %v4509_v20 = vadd.f32 %v4508_v15, %v4496_v53 }
 0x8c7   : > { %v4516_v21 = vrot.slane %v4509_v20, 6 }
 0x8c9   : > { %v4519_v10 = vsel %vm4518_vm10, %v4517_v28, %v4516_v21 }
 0x8ca   : > { %v4521_v40 = vadd.f32 %v4519_v10, %v7787_v50 }
 0x8cc   : > { %v4523_v58 = vperm.slane %v4521_v40, 0  ;;  %v4524_v18 = vperm.slane %v4521_v40, 1  ;;  %v4525_v60 = vperm.slane %v4521_v40, 2  ;;  %v4510_v1 = vpop.f32.mrf.mxu2 }
 0x8ce   : > { %v4530_v57 = vsel %vm2855_vm2, %v7842_v33, %v4524_v18  ;;  %v4531_v9 = vsel %vm2855_vm2, %v3900_v61, %v4525_v60  ;;  %v4529_v50 = vsel %vm2855_vm2, %v7904_v23, %v4523_v58 }
 0x8cf   : > { %v4535_v63 = vrot.slane %v4530_v57, 6  ;;  %v4536_v13 = vrot.slane %v4531_v9, 4 }
 0x8d1   : > { %v4537_v14 = vsel %vm4518_vm10, %v4529_v50, %v4535_v63 }
 0x8d2   : > { %v4539_v5 = vsel %vm4538_vm11, %v4537_v14, %v4536_v13 }
 0x8d3   : > { %4541 = vst [vmem:[%s905_s16] sm:$0x3f] %v4539_v5 }
 0x8d4 PF: > { %p43_p3 = scmp.ge.s32.totalorder %s6815_s29, 10   ;;  %s8047_s5 = smov %s6595_s1 }
 0x8d5   : > { %s8048_s1 = smov %s6599_s26  ;;  %s8049_s26 = smov %s6827_s21 }
 0x8d6   : > { %s8050_s17 = smov %s6815_s29  ;;  %45 = sbr.rel (!%p43_p3) target bundleno = 27 (0x1b), region = 205 }
 0x8db   :  { %4563 = vsyncpa [#allocation5], 1 }
 0x8dc   :  { %4565 = vsyncpa [#allocation5 + $0x1], 1 }
 0x8dd   :  { %4566 = vsyncpa [#allocation7], 1 }
 0x8de   :  { %4568 = vsyncpa [#allocation7 + $0x1], 1 }
 0x8df   :  { %4569 = vsyncpa [#allocation10], 1 }
 0x8e0   :  { %4570 = vsyncpa [#allocation13], 1 }
 0x8e1   :  { %4571 = vsyncpa [#allocation16], 1 }

</bundles_post_ra>
